<compile_context>
chip_gen: v6e
topology: v6e:2x2x1
jax: 0.10.0
libtpu: 0.0.40
codegen_flags: <defaults>
</compile_context>

<pallas_src>
import functools

import jax
import jax.numpy as jnp
from jax import lax
from jax.experimental import pallas as pl
from jax.experimental.pallas import tpu as pltpu


def _ulysses_fwd_kernel(q_ref, k_ref, v_ref, o_ref, qs_sc, m_sc, l_sc, acc_sc, *,
                        scale, num_heads, head_dim):
    """Online-softmax flash-attention forward for one (batch, q-tile) block.

    q_ref/o_ref: (1, tq, H*D); k_ref/v_ref: (1, tk, H*D).
    Scratch (persist across the kv grid axis):
      qs_sc : (H, tq, D) compute dtype  -- scaled per-head q tiles (written at kv==0)
      m_sc  : (H, tq, 1) f32            -- running max
      l_sc  : (H, tq, 1) f32            -- running denom
      acc_sc: (H, tq, D) f32            -- output accumulator
    """
    kv = pl.program_id(2)

    @pl.when(kv == 0)
    def _init():
        q_blk = q_ref[0]                                      # (tq, H*D)
        for h in range(num_heads):
            d0 = h * head_dim
            # Slice + scale once per q-tile (not per kv step); scale applied in f32.
            qs_sc[h] = (q_blk[:, d0:d0 + head_dim].astype(jnp.float32)
                        * scale).astype(qs_sc.dtype)
        m_sc[...] = jnp.full_like(m_sc, -jnp.inf)
        l_sc[...] = jnp.zeros_like(l_sc)
        acc_sc[...] = jnp.zeros_like(acc_sc)

    k_blk = k_ref[0]   # (tk, H*D)  compute dtype (bf16)
    v_blk = v_ref[0]   # (tk, H*D)

    # Heads are independent; static unroll over the (small) head count.
    for h in range(num_heads):
        d0 = h * head_dim
        q = qs_sc[h]                                          # (tq, D) already scaled
        k = k_blk[:, d0:d0 + head_dim]
        v = v_blk[:, d0:d0 + head_dim]

        # q @ k^T via last-axis contraction (no explicit transpose of k).
        s = lax.dot_general(q, k, (((1,), (1,)), ((), ())),
                            preferred_element_type=jnp.float32)   # (tq, tk) f32

        m_prev = m_sc[h]                                          # (tq, 1)
        m_new = jnp.maximum(m_prev, s.max(axis=-1, keepdims=True))
        alpha = jnp.exp(m_prev - m_new)                           # (tq, 1)
        p = jnp.exp(s - m_new)                                    # (tq, tk) f32

        l_sc[h] = alpha * l_sc[h] + p.sum(axis=-1, keepdims=True)
        acc_sc[h] = alpha * acc_sc[h] + jnp.dot(
            p.astype(v.dtype), v, preferred_element_type=jnp.float32)
        m_sc[h] = m_new

    @pl.when(kv == pl.num_programs(2) - 1)
    def _finalize():
        outs = []
        for h in range(num_heads):
            inv_l = pl.reciprocal(l_sc[h], approx=True)           # EUP, once per tile/head
            outs.append(acc_sc[h] * inv_l)                        # (tq, D) f32
        # Assemble full-width (tq, H*D) slab -> one lane-dense, unmasked store.
        o_ref[0] = jnp.concatenate(outs, axis=-1).astype(o_ref.dtype)


def _pick_tile(s, cap=512):
    # cap=512 keeps the f32 (tq, tk) score/exp temporaries comfortably inside scoped
    # VMEM on every generation (incl. v7x's 64 MiB physical); 1024 is worth a sweep
    # when the unrolled head count is small.
    for t in (cap, 256, 128, 64, 32, 16, 8):
        if t <= s and s % t == 0:
            return t
    return s


def _flash_attention(q, k, v, num_heads, head_dim, softmax_scale, out_dtype):
    """q, k, v: (B, S, H*D) in the compute dtype. Returns (B, S, H*D) in out_dtype."""
    B, S, HD = q.shape
    compute_dtype = q.dtype

    tq = _pick_tile(S)
    tk = _pick_tile(S)
    # Keep >= 2 blocks across the "parallel" (B, q-tile) axes so both TensorCores on a
    # v7x megacore get work.
    while B * (S // tq) < 2 and tq > 8 and tq % 16 == 0 and S % (tq // 2) == 0:
        tq //= 2
    assert S % tq == 0 and S % tk == 0

    grid = (B, S // tq, S // tk)
    kernel = functools.partial(
        _ulysses_fwd_kernel,
        scale=float(softmax_scale),
        num_heads=num_heads,
        head_dim=head_dim,
    )

    return pl.pallas_call(
        kernel,
        out_shape=jax.ShapeDtypeStruct((B, S, HD), out_dtype),
        grid_spec=pltpu.PrefetchScalarGridSpec(
            num_scalar_prefetch=0,
            grid=grid,
            in_specs=[
                pl.BlockSpec((1, tq, HD), lambda b, qi, ki: (b, qi, 0)),
                pl.BlockSpec((1, tk, HD), lambda b, qi, ki: (b, ki, 0)),
                pl.BlockSpec((1, tk, HD), lambda b, qi, ki: (b, ki, 0)),
            ],
            out_specs=pl.BlockSpec((1, tq, HD), lambda b, qi, ki: (b, qi, 0)),
            scratch_shapes=[
                pltpu.VMEM((num_heads, tq, head_dim), compute_dtype),  # scaled q tiles
                pltpu.VMEM((num_heads, tq, 1), jnp.float32),           # running max
                pltpu.VMEM((num_heads, tq, 1), jnp.float32),           # running denom
                pltpu.VMEM((num_heads, tq, head_dim), jnp.float32),    # output accum
            ],
        ),
        compiler_params=pltpu.CompilerParams(
            dimension_semantics=("parallel", "parallel", "arbitrary"),
            # Explicit scoped-VMEM budget: above v5e's 16 MiB default, equal to the
            # v6e/v7x default, well under v7x's 64 MiB physical VMEM.
            vmem_limit_bytes=32 * 1024 * 1024,
        ),
    )(q, k, v)


def ulysses_attention_forward(query, key, value, dropout_p=0.0, softmax_scale=None,
                              causal=False):
    """Single-device UlyssesAttention.forward.

    query/key/value: (batch, seqlen, num_heads, head_dim)  (flash-attn layout).
    Returns: (batch, seqlen, num_heads, head_dim).
    """
    assert dropout_p == 0.0 and not causal  # module defaults
    B, S, H, D = query.shape
    if softmax_scale is None:
        softmax_scale = D ** (-0.5)

    # MXU-friendly compute dtype; accumulation stays f32 inside the kernel.
    compute_dtype = jnp.bfloat16 if query.dtype == jnp.float32 else query.dtype

    def prep(x):
        # (B, S, H, D) -> (B, S, H*D): contiguous reshape, no HBM transpose.
        return x.reshape(B, S, H * D).astype(compute_dtype)

    o = _flash_attention(prep(query), prep(key), prep(value), H, D,
                         softmax_scale, query.dtype)   # (B, S, H*D)
    return o.reshape(B, S, H, D)


def _reference(query, key, value, softmax_scale):
    q = jnp.transpose(query, (0, 2, 1, 3)).astype(jnp.float32)
    k = jnp.transpose(key, (0, 2, 1, 3)).astype(jnp.float32)
    v = jnp.transpose(value, (0, 2, 1, 3)).astype(jnp.float32)
    s = jnp.einsum("bhqd,bhkd->bhqk", q, k) * softmax_scale
    p = jax.nn.softmax(s, axis=-1)
    o = jnp.einsum("bhqk,bhkd->bhqd", p, v)
    return jnp.transpose(o, (0, 2, 1, 3))


if __name__ == "__main__":
    # Small shapes consistent with the module's forward (flash-attn layout B, S, H, D).
    B, S, H, D = 2, 128, 2, 64
    key0 = jax.random.PRNGKey(0)
    kq, kk, kv = jax.random.split(key0, 3)
    query = jax.random.normal(kq, (B, S, H, D), dtype=jnp.float32)
    key_ = jax.random.normal(kk, (B, S, H, D), dtype=jnp.float32)
    value = jax.random.normal(kv, (B, S, H, D), dtype=jnp.float32)

    out = ulysses_attention_forward(query, key_, value)
    out = jax.block_until_ready(out)

    ref = _reference(query, key_, value, D ** (-0.5))
    assert out.shape == (B, S, H, D)
    # bf16 matmul operands (f32 accumulation) + approx reciprocal => loose tolerance.
    assert jnp.allclose(out, ref, atol=3e-2, rtol=3e-2), "mismatch vs reference attention"

    print("KERNEL_OK")
</pallas_src>

<mosaic_0001>
module attributes {stable_mosaic.version = 11 : i64} {
  func.func @_ulysses_fwd_kernel(%arg0: i32, %arg1: i32, %arg2: i32, %arg3: memref<1x128x128xbf16, #tpu.memory_space<vmem>>, %arg4: memref<1x128x128xbf16, #tpu.memory_space<vmem>>, %arg5: memref<1x128x128xbf16, #tpu.memory_space<vmem>>, %arg6: memref<1x128x128xf32, #tpu.memory_space<vmem>>, %arg7: memref<2x128x64xbf16, #tpu.memory_space<vmem>>, %arg8: memref<2x128x1xf32, #tpu.memory_space<vmem>>, %arg9: memref<2x128x1xf32, #tpu.memory_space<vmem>>, %arg10: memref<2x128x64xf32, #tpu.memory_space<vmem>>) attributes {dimension_semantics = [#tpu.dimension_semantics<parallel>, #tpu.dimension_semantics<parallel>, #tpu.dimension_semantics<arbitrary>], iteration_bounds = array<i64: 2, 1, 1>, scalar_prefetch = 0 : i64, scratch_operands = 4 : i64, tpu.core_type = #tpu.core_type<tc>, window_params = [{transform_indices = @transform_0, window_bounds = array<i64: 1, 128, 128>}, {transform_indices = @transform_1, window_bounds = array<i64: 1, 128, 128>}, {transform_indices = @transform_2, window_bounds = array<i64: 1, 128, 128>}, {transform_indices = @transform_3, window_bounds = array<i64: 1, 128, 128>}]} {
    %c0_i32 = arith.constant 0 : i32
    %0 = arith.cmpi eq, %arg2, %c0_i32 : i32
    %1 = arith.extui %0 : i1 to i32
    %c0_i32_0 = arith.constant 0 : i32
    %2 = arith.cmpi ne, %1, %c0_i32_0 : i32
    scf.if %2 {
      %c0_56 = arith.constant 0 : index
      %c0_57 = arith.constant 0 : index
      %c0_58 = arith.constant 0 : index
      %84 = vector.load %arg3[%c0_56, %c0_57, %c0_58] : memref<1x128x128xbf16, #tpu.memory_space<vmem>>, vector<1x128x128xbf16>
      %85 = vector.shape_cast %84 : vector<1x128x128xbf16> to vector<128x128xbf16>
      %86 = vector.extract_strided_slice %85 {offsets = [0, 0], sizes = [128, 64], strides = [1, 1]} : vector<128x128xbf16> to vector<128x64xbf16>
      %87 = arith.extf %86 : vector<128x64xbf16> to vector<128x64xf32>
      %cst_59 = arith.constant 1.250000e-01 : f32
      %88 = vector.broadcast %cst_59 : f32 to vector<128x64xf32>
      %89 = arith.mulf %87, %88 : vector<128x64xf32>
      %90 = arith.truncf %89 : vector<128x64xf32> to vector<128x64xbf16>
      %c0_60 = arith.constant 0 : index
      %c0_61 = arith.constant 0 : index
      %c0_62 = arith.constant 0 : index
      %91 = vector.load %arg7[%c0_60, %c0_61, %c0_62] : memref<2x128x64xbf16, #tpu.memory_space<vmem>>, vector<1x128x64xbf16>
      %92 = vector.shape_cast %91 : vector<1x128x64xbf16> to vector<128x64xbf16>
      %93 = vector.shape_cast %90 : vector<128x64xbf16> to vector<1x128x64xbf16>
      tpu.vector_store %arg7[%c0_60, %c0_61, %c0_62], %93 {strides = array<i32>} : memref<2x128x64xbf16, #tpu.memory_space<vmem>>, vector<1x128x64xbf16>,
      %94 = vector.extract_strided_slice %85 {offsets = [0, 64], sizes = [128, 64], strides = [1, 1]} : vector<128x128xbf16> to vector<128x64xbf16>
      %95 = arith.extf %94 : vector<128x64xbf16> to vector<128x64xf32>
      %cst_63 = arith.constant 1.250000e-01 : f32
      %96 = vector.broadcast %cst_63 : f32 to vector<128x64xf32>
      %97 = arith.mulf %95, %96 : vector<128x64xf32>
      %98 = arith.truncf %97 : vector<128x64xf32> to vector<128x64xbf16>
      %c1_64 = arith.constant 1 : index
      %c0_65 = arith.constant 0 : index
      %c0_66 = arith.constant 0 : index
      %99 = vector.load %arg7[%c1_64, %c0_65, %c0_66] : memref<2x128x64xbf16, #tpu.memory_space<vmem>>, vector<1x128x64xbf16>
      %100 = vector.shape_cast %99 : vector<1x128x64xbf16> to vector<128x64xbf16>
      %101 = vector.shape_cast %98 : vector<128x64xbf16> to vector<1x128x64xbf16>
      tpu.vector_store %arg7[%c1_64, %c0_65, %c0_66], %101 {strides = array<i32>} : memref<2x128x64xbf16, #tpu.memory_space<vmem>>, vector<1x128x64xbf16>,
      %cst_67 = arith.constant 0xFF800000 : f32
      %102 = vector.broadcast %cst_67 : f32 to vector<2x128x1xf32>
      %c0_68 = arith.constant 0 : index
      %c0_69 = arith.constant 0 : index
      %c0_70 = arith.constant 0 : index
      %103 = vector.load %arg8[%c0_68, %c0_69, %c0_70] : memref<2x128x1xf32, #tpu.memory_space<vmem>>, vector<2x128x1xf32>
      tpu.vector_store %arg8[%c0_68, %c0_69, %c0_70], %102 {strides = array<i32>} : memref<2x128x1xf32, #tpu.memory_space<vmem>>, vector<2x128x1xf32>,
      %cst_71 = arith.constant 0.000000e+00 : f32
      %104 = vector.broadcast %cst_71 : f32 to vector<2x128x1xf32>
      %c0_72 = arith.constant 0 : index
      %c0_73 = arith.constant 0 : index
      %c0_74 = arith.constant 0 : index
      %105 = vector.load %arg9[%c0_72, %c0_73, %c0_74] : memref<2x128x1xf32, #tpu.memory_space<vmem>>, vector<2x128x1xf32>
      tpu.vector_store %arg9[%c0_72, %c0_73, %c0_74], %104 {strides = array<i32>} : memref<2x128x1xf32, #tpu.memory_space<vmem>>, vector<2x128x1xf32>,
      %cst_75 = arith.constant 0.000000e+00 : f32
      %106 = vector.broadcast %cst_75 : f32 to vector<2x128x64xf32>
      %c0_76 = arith.constant 0 : index
      %c0_77 = arith.constant 0 : index
      %c0_78 = arith.constant 0 : index
      %107 = vector.load %arg10[%c0_76, %c0_77, %c0_78] : memref<2x128x64xf32, #tpu.memory_space<vmem>>, vector<2x128x64xf32>
      tpu.vector_store %arg10[%c0_76, %c0_77, %c0_78], %106 {strides = array<i32>} : memref<2x128x64xf32, #tpu.memory_space<vmem>>, vector<2x128x64xf32>,
    } else {
    }
    %c0 = arith.constant 0 : index
    %c0_1 = arith.constant 0 : index
    %c0_2 = arith.constant 0 : index
    %3 = vector.load %arg4[%c0, %c0_1, %c0_2] : memref<1x128x128xbf16, #tpu.memory_space<vmem>>, vector<1x128x128xbf16>
    %4 = vector.shape_cast %3 : vector<1x128x128xbf16> to vector<128x128xbf16>
    %c0_3 = arith.constant 0 : index
    %c0_4 = arith.constant 0 : index
    %c0_5 = arith.constant 0 : index
    %5 = vector.load %arg5[%c0_3, %c0_4, %c0_5] : memref<1x128x128xbf16, #tpu.memory_space<vmem>>, vector<1x128x128xbf16>
    %6 = vector.shape_cast %5 : vector<1x128x128xbf16> to vector<128x128xbf16>
    %c0_6 = arith.constant 0 : index
    %c0_7 = arith.constant 0 : index
    %c0_8 = arith.constant 0 : index
    %7 = vector.load %arg7[%c0_6, %c0_7, %c0_8] : memref<2x128x64xbf16, #tpu.memory_space<vmem>>, vector<1x128x64xbf16>
    %8 = vector.shape_cast %7 : vector<1x128x64xbf16> to vector<128x64xbf16>
    %9 = vector.extract_strided_slice %4 {offsets = [0, 0], sizes = [128, 64], strides = [1, 1]} : vector<128x128xbf16> to vector<128x64xbf16>
    %10 = vector.extract_strided_slice %6 {offsets = [0, 0], sizes = [128, 64], strides = [1, 1]} : vector<128x128xbf16> to vector<128x64xbf16>
    %cst = arith.constant dense<0.000000e+00> : vector<128x128xf32>
    %11 = tpu.matmul %8, %9, %cst {dimension_numbers = #tpu.dot_dimension_numbers<[1], [1], [0], [0], [0, 0, 1, 0], [], []>} : vector<128x64xbf16>, vector<128x64xbf16>, vector<128x128xf32> -> vector<128x128xf32>
    %c0_9 = arith.constant 0 : index
    %c0_10 = arith.constant 0 : index
    %c0_11 = arith.constant 0 : index
    %12 = vector.load %arg8[%c0_9, %c0_10, %c0_11] : memref<2x128x1xf32, #tpu.memory_space<vmem>>, vector<1x128x1xf32>
    %13 = vector.shape_cast %12 : vector<1x128x1xf32> to vector<128x1xf32>
    %cst_12 = arith.constant dense<0xFF800000> : vector<128xf32>
    %14 = vector.multi_reduction <maximumf>, %11, %cst_12 [1] : vector<128x128xf32> to vector<128xf32>
    %15 = vector.shape_cast %14 : vector<128xf32> to vector<128x1xf32>
    %16 = arith.maximumf %13, %15 : vector<128x1xf32>
    %17 = arith.subf %13, %16 : vector<128x1xf32>
    %18 = math.exp %17 : vector<128x1xf32>
    %19 = vector.broadcast %16 : vector<128x1xf32> to vector<128x128xf32>
    %20 = arith.subf %11, %19 : vector<128x128xf32>
    %21 = math.exp %20 : vector<128x128xf32>
    %c0_13 = arith.constant 0 : index
    %c0_14 = arith.constant 0 : index
    %c0_15 = arith.constant 0 : index
    %22 = vector.load %arg9[%c0_13, %c0_14, %c0_15] : memref<2x128x1xf32, #tpu.memory_space<vmem>>, vector<1x128x1xf32>
    %23 = vector.shape_cast %22 : vector<1x128x1xf32> to vector<128x1xf32>
    %24 = arith.mulf %18, %23 : vector<128x1xf32>
    %cst_16 = arith.constant dense<0.000000e+00> : vector<128xf32>
    %25 = vector.multi_reduction <add>, %21, %cst_16 [1] : vector<128x128xf32> to vector<128xf32>
    %26 = vector.shape_cast %25 : vector<128xf32> to vector<128x1xf32>
    %27 = arith.addf %24, %26 : vector<128x1xf32>
    %c0_17 = arith.constant 0 : index
    %c0_18 = arith.constant 0 : index
    %c0_19 = arith.constant 0 : index
    %28 = vector.load %arg9[%c0_17, %c0_18, %c0_19] : memref<2x128x1xf32, #tpu.memory_space<vmem>>, vector<1x128x1xf32>
    %29 = vector.shape_cast %28 : vector<1x128x1xf32> to vector<128x1xf32>
    %30 = vector.shape_cast %27 : vector<128x1xf32> to vector<1x128x1xf32>
    tpu.vector_store %arg9[%c0_17, %c0_18, %c0_19], %30 {strides = array<i32>} : memref<2x128x1xf32, #tpu.memory_space<vmem>>, vector<1x128x1xf32>,
    %c0_20 = arith.constant 0 : index
    %c0_21 = arith.constant 0 : index
    %c0_22 = arith.constant 0 : index
    %31 = vector.load %arg10[%c0_20, %c0_21, %c0_22] : memref<2x128x64xf32, #tpu.memory_space<vmem>>, vector<1x128x64xf32>
    %32 = vector.shape_cast %31 : vector<1x128x64xf32> to vector<128x64xf32>
    %33 = vector.broadcast %18 : vector<128x1xf32> to vector<128x64xf32>
    %34 = arith.mulf %33, %32 : vector<128x64xf32>
    %35 = arith.truncf %21 : vector<128x128xf32> to vector<128x128xbf16>
    %cst_23 = arith.constant dense<0.000000e+00> : vector<128x64xf32>
    %36 = tpu.matmul %35, %10, %cst_23 {dimension_numbers = #tpu.dot_dimension_numbers<[1], [0], [0], [1], [0, 0, 1, 1], [], []>} : vector<128x128xbf16>, vector<128x64xbf16>, vector<128x64xf32> -> vector<128x64xf32>
    %37 = arith.addf %34, %36 : vector<128x64xf32>
    %c0_24 = arith.constant 0 : index
    %c0_25 = arith.constant 0 : index
    %c0_26 = arith.constant 0 : index
    %38 = vector.load %arg10[%c0_24, %c0_25, %c0_26] : memref<2x128x64xf32, #tpu.memory_space<vmem>>, vector<1x128x64xf32>
    %39 = vector.shape_cast %38 : vector<1x128x64xf32> to vector<128x64xf32>
    %40 = vector.shape_cast %37 : vector<128x64xf32> to vector<1x128x64xf32>
    tpu.vector_store %arg10[%c0_24, %c0_25, %c0_26], %40 {strides = array<i32>} : memref<2x128x64xf32, #tpu.memory_space<vmem>>, vector<1x128x64xf32>,
    %c0_27 = arith.constant 0 : index
    %c0_28 = arith.constant 0 : index
    %c0_29 = arith.constant 0 : index
    %41 = vector.load %arg8[%c0_27, %c0_28, %c0_29] : memref<2x128x1xf32, #tpu.memory_space<vmem>>, vector<1x128x1xf32>
    %42 = vector.shape_cast %41 : vector<1x128x1xf32> to vector<128x1xf32>
    %43 = vector.shape_cast %16 : vector<128x1xf32> to vector<1x128x1xf32>
    tpu.vector_store %arg8[%c0_27, %c0_28, %c0_29], %43 {strides = array<i32>} : memref<2x128x1xf32, #tpu.memory_space<vmem>>, vector<1x128x1xf32>,
    %c1 = arith.constant 1 : index
    %c0_30 = arith.constant 0 : index
    %c0_31 = arith.constant 0 : index
    %44 = vector.load %arg7[%c1, %c0_30, %c0_31] : memref<2x128x64xbf16, #tpu.memory_space<vmem>>, vector<1x128x64xbf16>
    %45 = vector.shape_cast %44 : vector<1x128x64xbf16> to vector<128x64xbf16>
    %46 = vector.extract_strided_slice %4 {offsets = [0, 64], sizes = [128, 64], strides = [1, 1]} : vector<128x128xbf16> to vector<128x64xbf16>
    %47 = vector.extract_strided_slice %6 {offsets = [0, 64], sizes = [128, 64], strides = [1, 1]} : vector<128x128xbf16> to vector<128x64xbf16>
    %cst_32 = arith.constant dense<0.000000e+00> : vector<128x128xf32>
    %48 = tpu.matmul %45, %46, %cst_32 {dimension_numbers = #tpu.dot_dimension_numbers<[1], [1], [0], [0], [0, 0, 1, 0], [], []>} : vector<128x64xbf16>, vector<128x64xbf16>, vector<128x128xf32> -> vector<128x128xf32>
    %c1_33 = arith.constant 1 : index
    %c0_34 = arith.constant 0 : index
    %c0_35 = arith.constant 0 : index
    %49 = vector.load %arg8[%c1_33, %c0_34, %c0_35] : memref<2x128x1xf32, #tpu.memory_space<vmem>>, vector<1x128x1xf32>
    %50 = vector.shape_cast %49 : vector<1x128x1xf32> to vector<128x1xf32>
    %cst_36 = arith.constant dense<0xFF800000> : vector<128xf32>
    %51 = vector.multi_reduction <maximumf>, %48, %cst_36 [1] : vector<128x128xf32> to vector<128xf32>
    %52 = vector.shape_cast %51 : vector<128xf32> to vector<128x1xf32>
    %53 = arith.maximumf %50, %52 : vector<128x1xf32>
    %54 = arith.subf %50, %53 : vector<128x1xf32>
    %55 = math.exp %54 : vector<128x1xf32>
    %56 = vector.broadcast %53 : vector<128x1xf32> to vector<128x128xf32>
    %57 = arith.subf %48, %56 : vector<128x128xf32>
    %58 = math.exp %57 : vector<128x128xf32>
    %c1_37 = arith.constant 1 : index
    %c0_38 = arith.constant 0 : index
    %c0_39 = arith.constant 0 : index
    %59 = vector.load %arg9[%c1_37, %c0_38, %c0_39] : memref<2x128x1xf32, #tpu.memory_space<vmem>>, vector<1x128x1xf32>
    %60 = vector.shape_cast %59 : vector<1x128x1xf32> to vector<128x1xf32>
    %61 = arith.mulf %55, %60 : vector<128x1xf32>
    %cst_40 = arith.constant dense<0.000000e+00> : vector<128xf32>
    %62 = vector.multi_reduction <add>, %58, %cst_40 [1] : vector<128x128xf32> to vector<128xf32>
    %63 = vector.shape_cast %62 : vector<128xf32> to vector<128x1xf32>
    %64 = arith.addf %61, %63 : vector<128x1xf32>
    %c1_41 = arith.constant 1 : index
    %c0_42 = arith.constant 0 : index
    %c0_43 = arith.constant 0 : index
    %65 = vector.load %arg9[%c1_41, %c0_42, %c0_43] : memref<2x128x1xf32, #tpu.memory_space<vmem>>, vector<1x128x1xf32>
    %66 = vector.shape_cast %65 : vector<1x128x1xf32> to vector<128x1xf32>
    %67 = vector.shape_cast %64 : vector<128x1xf32> to vector<1x128x1xf32>
    tpu.vector_store %arg9[%c1_41, %c0_42, %c0_43], %67 {strides = array<i32>} : memref<2x128x1xf32, #tpu.memory_space<vmem>>, vector<1x128x1xf32>,
    %c1_44 = arith.constant 1 : index
    %c0_45 = arith.constant 0 : index
    %c0_46 = arith.constant 0 : index
    %68 = vector.load %arg10[%c1_44, %c0_45, %c0_46] : memref<2x128x64xf32, #tpu.memory_space<vmem>>, vector<1x128x64xf32>
    %69 = vector.shape_cast %68 : vector<1x128x64xf32> to vector<128x64xf32>
    %70 = vector.broadcast %55 : vector<128x1xf32> to vector<128x64xf32>
    %71 = arith.mulf %70, %69 : vector<128x64xf32>
    %72 = arith.truncf %58 : vector<128x128xf32> to vector<128x128xbf16>
    %cst_47 = arith.constant dense<0.000000e+00> : vector<128x64xf32>
    %73 = tpu.matmul %72, %47, %cst_47 {dimension_numbers = #tpu.dot_dimension_numbers<[1], [0], [0], [1], [0, 0, 1, 1], [], []>} : vector<128x128xbf16>, vector<128x64xbf16>, vector<128x64xf32> -> vector<128x64xf32>
    %74 = arith.addf %71, %73 : vector<128x64xf32>
    %c1_48 = arith.constant 1 : index
    %c0_49 = arith.constant 0 : index
    %c0_50 = arith.constant 0 : index
    %75 = vector.load %arg10[%c1_48, %c0_49, %c0_50] : memref<2x128x64xf32, #tpu.memory_space<vmem>>, vector<1x128x64xf32>
    %76 = vector.shape_cast %75 : vector<1x128x64xf32> to vector<128x64xf32>
    %77 = vector.shape_cast %74 : vector<128x64xf32> to vector<1x128x64xf32>
    tpu.vector_store %arg10[%c1_48, %c0_49, %c0_50], %77 {strides = array<i32>} : memref<2x128x64xf32, #tpu.memory_space<vmem>>, vector<1x128x64xf32>,
    %c1_51 = arith.constant 1 : index
    %c0_52 = arith.constant 0 : index
    %c0_53 = arith.constant 0 : index
    %78 = vector.load %arg8[%c1_51, %c0_52, %c0_53] : memref<2x128x1xf32, #tpu.memory_space<vmem>>, vector<1x128x1xf32>
    %79 = vector.shape_cast %78 : vector<1x128x1xf32> to vector<128x1xf32>
    %80 = vector.shape_cast %53 : vector<128x1xf32> to vector<1x128x1xf32>
    tpu.vector_store %arg8[%c1_51, %c0_52, %c0_53], %80 {strides = array<i32>} : memref<2x128x1xf32, #tpu.memory_space<vmem>>, vector<1x128x1xf32>,
    %c0_i32_54 = arith.constant 0 : i32
    %81 = arith.cmpi eq, %arg2, %c0_i32_54 : i32
    %82 = arith.extui %81 : i1 to i32
    %c0_i32_55 = arith.constant 0 : i32
    %83 = arith.cmpi ne, %82, %c0_i32_55 : i32
    scf.if %83 {
      %c0_56 = arith.constant 0 : index
      %c0_57 = arith.constant 0 : index
      %c0_58 = arith.constant 0 : index
      %84 = vector.load %arg9[%c0_56, %c0_57, %c0_58] : memref<2x128x1xf32, #tpu.memory_space<vmem>>, vector<1x128x1xf32>
      %85 = vector.shape_cast %84 : vector<1x128x1xf32> to vector<128x1xf32>
      %86 = tpu.reciprocal %85 {approx = true} : vector<128x1xf32> -> vector<128x1xf32>
      %c0_59 = arith.constant 0 : index
      %c0_60 = arith.constant 0 : index
      %c0_61 = arith.constant 0 : index
      %87 = vector.load %arg10[%c0_59, %c0_60, %c0_61] : memref<2x128x64xf32, #tpu.memory_space<vmem>>, vector<1x128x64xf32>
      %88 = vector.shape_cast %87 : vector<1x128x64xf32> to vector<128x64xf32>
      %89 = vector.broadcast %86 : vector<128x1xf32> to vector<128x64xf32>
      %90 = arith.mulf %88, %89 : vector<128x64xf32>
      %c1_62 = arith.constant 1 : index
      %c0_63 = arith.constant 0 : index
      %c0_64 = arith.constant 0 : index
      %91 = vector.load %arg9[%c1_62, %c0_63, %c0_64] : memref<2x128x1xf32, #tpu.memory_space<vmem>>, vector<1x128x1xf32>
      %92 = vector.shape_cast %91 : vector<1x128x1xf32> to vector<128x1xf32>
      %93 = tpu.reciprocal %92 {approx = true} : vector<128x1xf32> -> vector<128x1xf32>
      %c1_65 = arith.constant 1 : index
      %c0_66 = arith.constant 0 : index
      %c0_67 = arith.constant 0 : index
      %94 = vector.load %arg10[%c1_65, %c0_66, %c0_67] : memref<2x128x64xf32, #tpu.memory_space<vmem>>, vector<1x128x64xf32>
      %95 = vector.shape_cast %94 : vector<1x128x64xf32> to vector<128x64xf32>
      %96 = vector.broadcast %93 : vector<128x1xf32> to vector<128x64xf32>
      %97 = arith.mulf %95, %96 : vector<128x64xf32>
      %98 = tpu.concatenate %90, %97 in 1 : vector<128x64xf32>, vector<128x64xf32> -> vector<128x128xf32>
      %c0_68 = arith.constant 0 : index
      %c0_69 = arith.constant 0 : index
      %c0_70 = arith.constant 0 : index
      %99 = vector.load %arg6[%c0_68, %c0_69, %c0_70] : memref<1x128x128xf32, #tpu.memory_space<vmem>>, vector<1x128x128xf32>
      %100 = vector.shape_cast %99 : vector<1x128x128xf32> to vector<128x128xf32>
      %101 = vector.shape_cast %98 : vector<128x128xf32> to vector<1x128x128xf32>
      tpu.vector_store %arg6[%c0_68, %c0_69, %c0_70], %101 {strides = array<i32>} : memref<1x128x128xf32, #tpu.memory_space<vmem>>, vector<1x128x128xf32>,
    } else {
    }
    return
  }
  func.func @transform_0(%arg0: i32, %arg1: i32, %arg2: i32) -> (i32, i32, i32) {
    %c0_i32 = arith.constant 0 : i32
    %c0_i32_0 = arith.constant 0 : i32
    return %arg0, %arg1, %c0_i32 : i32, i32, i32
  }
  func.func @transform_1(%arg0: i32, %arg1: i32, %arg2: i32) -> (i32, i32, i32) {
    %c0_i32 = arith.constant 0 : i32
    %c0_i32_0 = arith.constant 0 : i32
    return %arg0, %arg2, %c0_i32 : i32, i32, i32
  }
  func.func @transform_2(%arg0: i32, %arg1: i32, %arg2: i32) -> (i32, i32, i32) {
    %c0_i32 = arith.constant 0 : i32
    %c0_i32_0 = arith.constant 0 : i32
    return %arg0, %arg2, %c0_i32 : i32, i32, i32
  }
  func.func @transform_3(%arg0: i32, %arg1: i32, %arg2: i32) -> (i32, i32, i32) {
    %c0_i32 = arith.constant 0 : i32
    %c0_i32_0 = arith.constant 0 : i32
    return %arg0, %arg1, %c0_i32 : i32, i32, i32
  }
}

</mosaic_0001>

<bundles_post_ra>
// kernel: tpu_custom_call.1
= control target key start
LH: loop header
LB: loop body
LE: loop exit
PB: predicated region body
PF: predicated region fallthrough
CT: control target
= control target key end

     0   :  { %s5266_s0 = inlined_call_operand.hbm [shape: bf16[2,128,128], index: 0, kind: input, shape index: {}]   ;;  %s5267_s1 = inlined_call_operand.hbm [shape: bf16[2,128,128], index: 1, kind: input, shape index: {}]   ;;  %s5268_s2 = inlined_call_operand.hbm [shape: bf16[2,128,128], index: 2, kind: input, shape index: {}]   ;;  %s5269_s3 = inlined_call_operand.hbm [shape: f32[2,128,128], index: 3, kind: output, shape index: {}]  }
   0x1   :  { %5283 = sst [smem:[#allocation27_spill]] %s5267_s1 }
   0x2   :  { %8 = vsyncpa [#allocation7], 0 }
   0x3   :  { %10 = vsyncpa [#allocation7 + $0x1], 0 }
   0x4   :  { %11 = vsyncpa [#allocation10], 0 }
   0x5   :  { %13 = vsyncpa [#allocation10 + $0x1], 0 }
   0x6   :  { %14 = vsyncpa [#allocation8], 0 }
   0x7   :  { %16 = vsyncpa [#allocation8 + $0x1], 0  ;;  %s3782_s12 = smov 0   ;;  %s3784_s13 = smov 0  }
   0x8   :  { %s3786_s14 = smov 0   ;;  %s3788_s15 = smov 0  }
   0x9   :  { %s3790_s16 = smov 0   ;;  %s3792_s17 = smov 0  }
   0xa LB: > { %5284 = sst [smem:[#allocation16_spill]] %s3744_s16  ;;  %s3813_s18 = sadd.s32 4294967295, %s3748_s17   ;;  %s3748_s17 = sphi %s3792_s17, %s22_s17   ;;  %s3744_s16 = sphi %s3790_s16, %s5322_s16   ;;  %s3740_s15 = sphi %s3788_s15, %s5321_s15   ;;  %s3736_s14 = sphi %s3786_s14, %s5325_s14   ;;  %s3732_s13 = sphi %s3784_s13, %s5324_s13   ;;  %s3728_s12 = sphi %s3782_s12, %s5323_s12  }
   0xb   : > { %s2913_s19 = sadd.s32 4294967294, %s3748_s17   ;;  %s41_s20 = sadd.s32 1, %s3744_s16 }
   0xc   : > { %s50_s21 = sadd.s32 1, %s3736_s14  ;;  %p43_p0 = scmp.ge.s32.totalorder %s41_s20, 2 }
   0xd   : > { %p57_p1 = scmp.ne.s32.totalorder %s3736_s14, %s3732_s13  ;;  %p58_p2 = scmp.eq.s32.totalorder %s3748_s17, 0 }
   0xe   : > { %p63_p3 = scmp.ne.s32.totalorder %s3732_s13, %s3728_s12  ;;  %s5327_s20 = smov (%p43_p0, %s41_s20), 0 }
   0xf   : > { %5285 = sst [smem:[#allocation17_spill]] %s5327_s20  ;;  %p3825_p4 = por %p58_p2, %p57_p1 }
  0x10   : > { %p64_p5 = scmp.eq.s32.totalorder %s3813_s18, 0  ;;  %s45_s23 = ssub.s32 %s3744_s16, %s5327_s20 }
  0x11   : > { %p145_p6 = scmp.eq.s32.totalorder %s3813_s18, 1  ;;  %p48_p7 = scmp.eq.s32.totalorder %s45_s23, 0 }
  0x12   : > { %p3833_p8 = por %p64_p5, %p63_p3  ;;  %p151_p10 = scmp.eq.s32.totalorder %s2913_s19, 1 }
  0x13   : > { %p3837_p9 = por %p145_p6, %p57_p1  ;;  %p3288_p13 = scmp.lt.s32.totalorder %s3748_s17, 2 }
  0x14   : > { %s3842_s26 = scalar_select %p48_p7, %s3736_s14, %s50_s21  }
  0x15   : > { %p3844_p11 = por %p151_p10, %p63_p3  ;;  %s5270_s28 = sand.u32 1, %s3736_s14  }
  0x16   : > { %5289 = sst [smem:[#allocation18_spill]] %s3842_s26  ;;  %s3853_s29 = sshll.u32 %s5270_s28, 6 }
  0x17   : > { %s3856_s30 = sshll.u32 %s3744_s16, 10  ;;  %p3860_p0 = pnand %p3288_p13, %p3825_p4 }
  0x18   : > { %s194_s5 = sand.u32 1, %s3748_s17   ;;  %s5292_s1 = sld [smem:[#allocation27_spill]] }
  0x19   : > { %s198_s9 = scalar_lea.vmem [#allocation9], %s3853_s29  ;;  %p2925_p1 = scmp.ge.s32.totalorder %s3748_s17, 1 }
  0x1a   : > { %s207_s10 = sshll.u32 %s198_s9, 4  ;;  %p238_p2 = scmp.lt.s32.totalorder %s3748_s17, 3  ;;  %s208_s10 = int_to_ptr.vmem [resolvable:$true] %s207_s10 }
  0x1b   : > { %s3872_s11 = scalar_lea.sflag [#allocation10], %s194_s5  ;;  %p3582_p3 = pneg %p3860_p0 }
  0x1c   : > { %s3593_s19 = scalar_lea.vmem %s208_s10, 1024  ;;  %s3750_s21 = smov [#allocation9]  }
  0x1d   : > { %p3594_p4 = scmp.ne.s32.totalorder %s208_s10, %s3593_s19  ;;  %s3598_s22 = sshll.u32 %s3750_s21, 4  ;;  %s3599_s22 = int_to_ptr.vmem [resolvable:$false] %s3598_s22 }
  0x1e   : > { %s206_s8 = scalar_lea.hbm %s5292_s1, %s3856_s30  ;;  %s3600_s23 = scalar_lea.vmem %s3599_s22, 2048 }
  0x1f   : > { %p3596_p5 = pnand %p3594_p4, %p3582_p3  ;;  %p3601_p7 = scmp.lt.s32.totalorder %s208_s10, %s3599_s22 }
  0x20   : > { %p3602_p10 = scmp.lt.s32.totalorder %s3600_s23, %s3593_s19 }
  0x21   : > { %p3597_p6 = pneg %p3596_p5 }
  0x22   : > { %p3603_p13 = por %p3602_p10, %p3601_p7 }
  0x24   : > { %p3604_p12 = pnand %p3603_p13, %p3597_p6 }
  0x26   : > { %3607 = shalt.err (!%p3604_p12)
}
  0x27   : > { %s5273_s6 = smov 64   ;;  %s3752_s5 = smov 4  }
  0x28   : > { %3280 = dma.hbm_to_vmem [thread:$0]  (!%p3860_p0), %s206_s8, 1024, %s208_s10, %s3872_s11, %s5273_s6, %s5273_s6, %s3752_s5  }
  0x29   : > { %p3889_p4 = pnand %p2925_p1, %p238_p2  ;;  %s183_s21 = scalar_lea.hbm %s5266_s0, %s3856_s30 }
  0x2a   : > { %s175_s22 = scalar_lea.vmem [#allocation6], %s3853_s29  ;;  %s229_s20 = scalar_lea.hbm %s5268_s2, %s3856_s30 }
  0x2b   : > { %s184_s23 = sshll.u32 %s175_s22, 4  ;;  %s5294_s16 = sand.u32 1, %s3736_s14   ;;  %s185_s23 = int_to_ptr.vmem [resolvable:$true] %s184_s23 }
  0x2c   : > { %s172_s26 = scalar_lea.sflag [#allocation7], %s5294_s16  ;;  %s3621_s8 = scalar_lea.vmem %s185_s23, 1024 }
  0x2d   : > { %p3622_p12 = scmp.ne.s32.totalorder %s185_s23, %s3621_s8  ;;  %s3753_s10 = smov [#allocation6]  }
  0x2e   : > { %s3626_s6 = sshll.u32 %s3753_s10, 4  ;;  %s3627_s6 = int_to_ptr.vmem [resolvable:$false] %s3626_s6 }
  0x2f   : > { %p3624_p1 = pnand %p3622_p12, %p3582_p3  ;;  %s3628_s9 = scalar_lea.vmem %s3627_s6, 2048 }
  0x30   : > { %p3629_p5 = scmp.lt.s32.totalorder %s185_s23, %s3627_s6  ;;  %p3630_p6 = scmp.lt.s32.totalorder %s3628_s9, %s3621_s8 }
  0x31   : > { %p3625_p2 = pneg %p3624_p1 }
  0x32   : > { %p3631_p7 = por %p3630_p6, %p3629_p5 }
  0x34   : > { %p3632_p10 = pnand %p3631_p7, %p3625_p2 }
  0x36   : > { %3635 = shalt.err (!%p3632_p10)
}
  0x37   : > { %s5295_s1 = smov 64   ;;  %s221_s16 = scalar_lea.vmem [#allocation11], %s3853_s29 }
  0x38   : > { %3277 = dma.hbm_to_vmem [thread:$0]  (!%p3860_p0), %s183_s21, 1024, %s185_s23, %s172_s26, %s5295_s1, %s5295_s1, %s3752_s5  }
  0x39   : > { %s230_s28 = sshll.u32 %s221_s16, 4  ;;  %s3754_s6 = smov [#allocation11]   ;;  %s231_s28 = int_to_ptr.vmem [resolvable:$true] %s230_s28 }
  0x3a   : > { %s3649_s19 = scalar_lea.vmem %s231_s28, 1024  ;;  %s3654_s22 = sshll.u32 %s3754_s6, 4  ;;  %s3655_s22 = int_to_ptr.vmem [resolvable:$false] %s3654_s22 }
  0x3b   : > { %p3650_p13 = scmp.ne.s32.totalorder %s231_s28, %s3649_s19  ;;  %s3656_s8 = scalar_lea.vmem %s3655_s22, 2048 }
  0x3c   : > { %p3657_p2 = scmp.lt.s32.totalorder %s231_s28, %s3655_s22  ;;  %p3658_p5 = scmp.lt.s32.totalorder %s3656_s8, %s3649_s19 }
  0x3d   : > { %p3652_p12 = pnand %p3650_p13, %p3582_p3 }
  0x3e   : > { %p3659_p6 = por %p3658_p5, %p3657_p2 }
  0x3f   : > { %p3653_p1 = pneg %p3652_p12 }
  0x41   : > { %p3660_p7 = pnand %p3659_p6, %p3653_p1 }
  0x43   : > { %3663 = shalt.err (!%p3660_p7)
}
  0x44   : > { %3283 = dma.hbm_to_vmem [thread:$0]  (!%p3860_p0), %s229_s20, 1024, %s231_s28, %s3872_s11, %s5295_s1, %s5295_s1, %s3752_s5  }
  0x45   : > { %242 = sbr.rel (%p3889_p4) target bundleno = 1680 (0x690), region = 32 }
  0x4a   : > { %s3930_s21 = sand.u32 1, %s3732_s13  }
  0x4b   : > { %s3933_s4 = sshll.u32 %s3930_s21, 6  ;;  %s245_s23 = scalar_lea.sflag [#allocation7], %s3930_s21 }
  0x4c   : > { %s3937_s10 = scalar_lea.vmem [#allocation6], %s3933_s4 }
  0x4d   : > { %3715 = dma.done.wait (%p3833_p8), %s245_s23, 1024  }
  0x4e   : > { %3717 = vsyncadd (%p3833_p8), %s245_s23, 4294966272  ;;  %s253_s20 = sand.u32 1, %s3813_s18   ;;  %s3945_s11 = scalar_lea.vmem [#allocation9], %s3933_s4 }
  0x4f   : > { %s254_s30 = scalar_lea.sflag [#allocation10], %s253_s20 }
  0x50   : > { %3719 = dma.done.wait (%p3833_p8), %s254_s30, 2048  }
  0x51   : > { %3721 = vsyncadd (%p3833_p8), %s254_s30, 4294965248  ;;  %vm567_vm0 = vcmask 523264   ;;  %v3952_v0 = vld [vmem:[%s3945_s11 + $0x38] sm:$0xff]   ;;  %v3955_v1 = vld [vmem:[%s3945_s11 + $0x30] sm:$0xff]   ;;  %vm420_vm1 = vcmask 519168   ;;  %vm502_vm2 = vcmask 7168  }
  0x52   : > { %3250 = vmatprep.subr.msk.bf16.mxu0 %vm567_vm0, %v3952_v0  ;;  %v775_v2 = vsel %vm567_vm0, %v3952_v0, 0  ;;  %v3964_v3 = vld [vmem:[%s3945_s11 + $0x28] sm:$0xff]   ;;  %v772_v4 = vsel %vm567_vm0, %v3955_v1, 0  ;;  %v3020_v5 = vld [vmem:[%s3937_s10] sm:$0xff]   ;;  %v3052_v7 = vld [vmem:[%s3937_s10 + $0x10] sm:$0xff]   ;;  %s4296_s18 = scalar_lea.vmem [#allocation11], %s3933_s4 }
  0x53   : > { %3123 = vmatpush3.bf16.xpose.msra.mxu0 %v775_v2  ;;  %v3051_v6 = vld [vmem:[%s3937_s10 + $0x8] sm:$0xff]   ;;  %v769_v8 = vsel %vm567_vm0, %v3964_v3, 0  ;;  %v3021_v9 = vunpack.c.l.bf16 %v3020_v5  ;;  %v3022_v10 = vunpack.c.h.bf16 %v3020_v5  ;;  %v3053_v12 = vld [vmem:[%s3937_s10 + $0x18] sm:$0xff]   ;;  %v3029_v14 = vunpack.c.l.bf16 %v3052_v7  ;;  %v3054_v25 = vld [vmem:[%s3937_s10 + $0x20] sm:$0xff]   ;;  %s3758_s24 = smov 64   ;;  %s2929_s5 = sshll.u32 %s3930_s21, 7 }
  0x54   : > { %3251 = vmatprep.subr.msk.bf16.mxu0 %vm567_vm0, %v3955_v1  ;;  %v3025_v11 = vunpack.c.l.bf16 %v3051_v6  ;;  %v3026_v13 = vunpack.c.h.bf16 %v3051_v6  ;;  %v3030_v15 = vunpack.c.h.bf16 %v3052_v7  ;;  %v3033_v16 = vunpack.c.l.bf16 %v3053_v12  ;;  %v3055_v26 = vld [vmem:[%s3937_s10 + $0x28] sm:$0xff]   ;;  %v3056_v31 = vld [vmem:[%s3937_s10 + $0x30] sm:$0xff]   ;;  %v3057_v32 = vld [vmem:[%s3937_s10 + $0x38] sm:$0xff]   ;;  %s5161_s7 = scalar_lea.vmem [#allocation12], %s2929_s5  ;;  %s3018_s9 = sshll.u32 %s3740_s15, 11 }
  0x55   : > { %v340_v17 = vmul.f32 0.125, %v3021_v9  ;;  %v341_v18 = vmul.f32 0.125, %v3022_v10  ;;  %v3034_v20 = vunpack.c.h.bf16 %v3053_v12  ;;  %v344_v22 = vmul.f32 0.125, %v3029_v14  ;;  %v4003_v41 = vld [vmem:[%s3945_s11 + $0x20] sm:$0xff]   ;;  %v4060_v6 = vld [vmem:[%s3945_s11 + $0x10] sm:$0xff]   ;;  %s2773_s1 = sshll.u32 %s5161_s7, 4  ;;  %s5214_s19 = scalar_lea.hbm %s5269_s3, %s3018_s9  ;;  %s5216_s1 = int_to_ptr.vmem [resolvable:$true] %s2773_s1 }
  0x56   : > { %v342_v19 = vmul.f32 0.125, %v3025_v11  ;;  %v343_v21 = vmul.f32 0.125, %v3026_v13  ;;  %v345_v23 = vmul.f32 0.125, %v3030_v15  ;;  %v346_v24 = vmul.f32 0.125, %v3033_v16  ;;  %v4074_v10 = vld [vmem:[%s3945_s11] sm:$0xff]   ;;  %s2758_s15 = scalar_lea.sflag [#allocation8], %s3930_s21 }
  0x57   : > { %v3978_v27 = vpack.c.bf16 %v340_v17, %v340_v17  ;;  %v3980_v28 = vpack.c.bf16 %v341_v18, %v341_v18  ;;  %v347_v30 = vmul.f32 0.125, %v3034_v20  ;;  %v3988_v34 = vpack.c.bf16 %v344_v22, %v344_v22  ;;  %s3664_s6 = scalar_lea.vmem %s5216_s1, 2048  ;;  %s3759_s22 = smov [#allocation12]  }
  0x58   : > { %v3982_v29 = vpack.c.bf16 %v342_v19, %v342_v19  ;;  %v3986_v33 = vpack.c.bf16 %v343_v21, %v343_v21  ;;  %v3990_v35 = vpack.c.bf16 %v345_v23, %v345_v23  ;;  %v3992_v36 = vpack.c.bf16 %v346_v24, %v346_v24  ;;  %p3665_p8 = scmp.ne.s32.totalorder %s5216_s1, %s3664_s6  ;;  %s3668_s8 = sshll.u32 %s3759_s22, 4  ;;  %s3669_s8 = int_to_ptr.vmem [resolvable:$false] %s3668_s8 }
  0x59   : > { %421 = vst.msk [vmem:[#allocation2] sm:$0xf] %vm420_vm1, %v3978_v27  ;;  %422 = vst.msk [vmem:[#allocation2 + $0x4] sm:$0xf] %vm420_vm1, %v3980_v28  ;;  %v4000_v37 = vpack.c.bf16 %v347_v30, %v347_v30  ;;  %v3037_v38 = vunpack.c.l.bf16 %v3054_v25  ;;  %v3038_v39 = vunpack.c.h.bf16 %v3054_v25  ;;  %v3041_v40 = vunpack.c.l.bf16 %v3055_v26  ;;  %s3670_s26 = scalar_lea.vmem %s3669_s8, 4096  ;;  %p3671_p4 = scmp.lt.s32.totalorder %s5216_s1, %s3669_s8 }
  0x5a   : > { %423 = vst.msk [vmem:[#allocation2 + $0x8] sm:$0xf] %vm420_vm1, %v3982_v29  ;;  %424 = vst.msk [vmem:[#allocation2 + $0xc] sm:$0xf] %vm420_vm1, %v3986_v33  ;;  %v3042_v42 = vunpack.c.h.bf16 %v3055_v26  ;;  %v3045_v43 = vunpack.c.l.bf16 %v3056_v31  ;;  %v3046_v44 = vunpack.c.h.bf16 %v3056_v31  ;;  %v3049_v45 = vunpack.c.l.bf16 %v3057_v32  ;;  %p3666_p0 = pnand %p3665_p8, %p3837_p9  ;;  %p3672_p10 = scmp.lt.s32.totalorder %s3670_s26, %s3664_s6 }
  0x5b   : > { %3125 = vmatpush3.bf16.xpose.msra.mxu0 %v772_v4  ;;  %425 = vst.msk [vmem:[#allocation2 + $0x10] sm:$0xf] %vm420_vm1, %v3988_v34  ;;  %426 = vst.msk [vmem:[#allocation2 + $0x14] sm:$0xf] %vm420_vm1, %v3990_v35  ;;  %v348_v46 = vmul.f32 0.125, %v3037_v38  ;;  %v349_v47 = vmul.f32 0.125, %v3038_v39  ;;  %v3050_v49 = vunpack.c.h.bf16 %v3057_v32 }
  0x5c   : > { %3252 = vmatprep.subr.msk.bf16.mxu0 %vm567_vm0, %v3964_v3  ;;  %427 = vst.msk [vmem:[#allocation2 + $0x18] sm:$0xf] %vm420_vm1, %v3992_v36  ;;  %428 = vst.msk [vmem:[#allocation2 + $0x1c] sm:$0xf] %vm420_vm1, %v4000_v37  ;;  %v350_v48 = vmul.f32 0.125, %v3041_v40  ;;  %v351_v50 = vmul.f32 0.125, %v3042_v42  ;;  %p3667_p3 = pneg %p3666_p0  ;;  %p3673_p13 = por %p3672_p10, %p3671_p4 }
  0x5d   : > { %v352_v51 = vmul.f32 0.125, %v3045_v43  ;;  %v353_v52 = vmul.f32 0.125, %v3046_v44  ;;  %v354_v53 = vmul.f32 0.125, %v3049_v45  ;;  %v4015_v54 = vpack.c.bf16 %v348_v46, %v348_v46  ;;  %v4052_v4 = vld [vmem:[%s3945_s11 + $0x18] sm:$0xff]  }
  0x5e   : > { %v4017_v55 = vpack.c.bf16 %v349_v47, %v349_v47  ;;  %v4019_v56 = vpack.c.bf16 %v350_v48, %v350_v48  ;;  %v355_v57 = vmul.f32 0.125, %v3050_v49  ;;  %v4023_v58 = vpack.c.bf16 %v351_v50, %v351_v50  ;;  %v3364_v47 = vld [vmem:[%s4296_s18 + $0x38] sm:$0xff]   ;;  %v3365_v48 = vld [vmem:[%s4296_s18 + $0x30] sm:$0xff]   ;;  %v3366_v49 = vld [vmem:[%s4296_s18 + $0x28] sm:$0xff]   ;;  %p3674_p12 = pnand %p3673_p13, %p3667_p3 }
  0x5f   : > { %v4025_v59 = vpack.c.bf16 %v352_v51, %v352_v51  ;;  %v4027_v60 = vpack.c.bf16 %v353_v52, %v353_v52  ;;  %v4029_v61 = vpack.c.bf16 %v354_v53, %v354_v53  ;;  %429 = vst.msk [vmem:[#allocation2 + $0x20] sm:$0xf] %vm420_vm1, %v4015_v54  ;;  %v766_v2 = vsel %vm567_vm0, %v4003_v41, 0  ;;  %3154 = vmatprep.subr.bf16.mxu1 %v3364_v47  ;;  %v3367_v50 = vld [vmem:[%s4296_s18 + $0x20] sm:$0xff]   ;;  %v3368_v51 = vld [vmem:[%s4296_s18 + $0x18] sm:$0xff]  }
  0x60   : > { %430 = vst.msk [vmem:[#allocation2 + $0x24] sm:$0xf] %vm420_vm1, %v4017_v55  ;;  %431 = vst.msk [vmem:[#allocation2 + $0x28] sm:$0xf] %vm420_vm1, %v4019_v56  ;;  %v4037_v62 = vpack.c.bf16 %v355_v57, %v355_v57  ;;  %v3356_v63 = vld [vmem:[#allocation2] sm:$0xff]   ;;  %v763_v5 = vsel %vm567_vm0, %v4052_v4, 0  ;;  %3155 = vmatpush3.bf16.msra.mxu1 %v3364_v47 }
  0x61   : > { %432 = vst.msk [vmem:[#allocation2 + $0x2c] sm:$0xf] %vm420_vm1, %v4023_v58  ;;  %433 = vst.msk [vmem:[#allocation2 + $0x30] sm:$0xf] %vm420_vm1, %v4025_v59  ;;  %3138 = vmatprep.mubr.msk.bf16.mxu0 %vm567_vm0, %v3356_v63  ;;  %v760_v7 = vsel %vm567_vm0, %v4060_v6, 0  ;;  %v754_v11 = vsel %vm567_vm0, %v4074_v10, 0  ;;  %3156 = vmatprep.subr.bf16.mxu1 %v3365_v48 }
  0x62   : > { %434 = vst.msk [vmem:[#allocation2 + $0x34] sm:$0xf] %vm420_vm1, %v4027_v60  ;;  %435 = vst.msk [vmem:[#allocation2 + $0x38] sm:$0xf] %vm420_vm1, %v4029_v61  ;;  %v3357_v12 = vld [vmem:[#allocation2 + $0x8] sm:$0xff]   ;;  %v3358_v13 = vld [vmem:[#allocation2 + $0x10] sm:$0xff]  }
  0x63   : > { %3127 = vmatpush3.bf16.xpose.msra.mxu0 %v769_v8  ;;  %436 = vst.msk [vmem:[#allocation2 + $0x3c] sm:$0xf] %vm420_vm1, %v4037_v62  ;;  %v4067_v8 = vld [vmem:[%s3945_s11 + $0x8] sm:$0xff]   ;;  %v3359_v14 = vld [vmem:[#allocation2 + $0x18] sm:$0xff]   ;;  %v3755_v19 = vmov -inf   ;;  %v3756_v30 = vmov 0  }
  0x64   : > { %3253 = vmatprep.subr.msk.bf16.mxu0 %vm567_vm0, %v4003_v41  ;;  %v757_v9 = vsel %vm567_vm0, %v4067_v8, 0  ;;  %505 = vst.msk [vmem:[#allocation3 + $0x10] sm:$0xff] %vm502_vm2, %v3755_v19  ;;  %503 = vst.msk [vmem:[#allocation3] sm:$0xff] %vm502_vm2, %v3755_v19  ;;  %3347 = vset.pattern.permute.xlu1 %v3756_v30  ;;  %v3757_v43 = vmov 0.0  }
  0x65   : > { %504 = vst.msk [vmem:[#allocation3 + $0x8] sm:$0xff] %vm502_vm2, %v3755_v19  ;;  %506 = vst.msk [vmem:[#allocation3 + $0x18] sm:$0xff] %vm502_vm2, %v3755_v19  ;;  %3346 = vset.pattern.permute.xlu0 %v3756_v30  ;;  %3157 = vmatpush3.bf16.msra.mxu1 %v3365_v48  ;;  %v3371_v30 = vld [vmem:[%s4296_s18] sm:$0xff]  }
  0x66   : > { %507 = vst.msk [vmem:[#allocation3 + $0x20] sm:$0xff] %vm502_vm2, %v3755_v19  ;;  %508 = vst.msk [vmem:[#allocation3 + $0x28] sm:$0xff] %vm502_vm2, %v3755_v19  ;;  %3158 = vmatprep.subr.bf16.mxu1 %v3366_v49 }
  0x67   : > { %v3360_v15 = vld [vmem:[#allocation2 + $0x20] sm:$0xff]   ;;  %509 = vst.msk [vmem:[#allocation3 + $0x30] sm:$0xff] %vm502_vm2, %v3755_v19  ;;  %510 = vst.msk [vmem:[#allocation3 + $0x38] sm:$0xff] %vm502_vm2, %v3755_v19 }
  0x68   : > { %v3361_v16 = vld [vmem:[#allocation2 + $0x28] sm:$0xff]   ;;  %511 = vst.msk [vmem:[#allocation3 + $0x40] sm:$0xff] %vm502_vm2, %v3755_v19  ;;  %512 = vst.msk [vmem:[#allocation3 + $0x48] sm:$0xff] %vm502_vm2, %v3755_v19 }
  0x69   : > { %v3362_v17 = vld [vmem:[#allocation2 + $0x30] sm:$0xff]   ;;  %513 = vst.msk [vmem:[#allocation3 + $0x50] sm:$0xff] %vm502_vm2, %v3755_v19  ;;  %514 = vst.msk [vmem:[#allocation3 + $0x58] sm:$0xff] %vm502_vm2, %v3755_v19  ;;  %3159 = vmatpush3.bf16.msra.mxu1 %v3366_v49 }
  0x6a   : > { %v3363_v18 = vld [vmem:[#allocation2 + $0x38] sm:$0xff]   ;;  %515 = vst.msk [vmem:[#allocation3 + $0x60] sm:$0xff] %vm502_vm2, %v3755_v19  ;;  %516 = vst.msk [vmem:[#allocation3 + $0x68] sm:$0xff] %vm502_vm2, %v3755_v19  ;;  %3160 = vmatprep.subr.bf16.mxu1 %v3367_v50 }
  0x6b   : > { %3129 = vmatpush3.bf16.xpose.msra.mxu0 %v766_v2  ;;  %517 = vst.msk [vmem:[#allocation3 + $0x70] sm:$0xff] %vm502_vm2, %v3755_v19  ;;  %518 = vst.msk [vmem:[#allocation3 + $0x78] sm:$0xff] %vm502_vm2, %v3755_v19  ;;  %v4303_v52 = vld [vmem:[#allocation3 + $0x10] sm:$0xff]  ;;  %v4305_v57 = vld [vmem:[#allocation3] sm:$0xff] }
  0x6c   : > { %3254 = vmatprep.subr.msk.bf16.mxu0 %vm567_vm0, %v4052_v4  ;;  %519 = vst.msk [vmem:[#allocation3 + $0x80] sm:$0xff] %vm502_vm2, %v3755_v19  ;;  %520 = vst.msk [vmem:[#allocation3 + $0x88] sm:$0xff] %vm502_vm2, %v3755_v19  ;;  %v3369_v2 = vld [vmem:[%s4296_s18 + $0x10] sm:$0xff]  }
  0x6d   : > { %521 = vst.msk [vmem:[#allocation3 + $0x90] sm:$0xff] %vm502_vm2, %v3755_v19  ;;  %522 = vst.msk [vmem:[#allocation3 + $0x98] sm:$0xff] %vm502_vm2, %v3755_v19  ;;  %3161 = vmatpush3.bf16.msra.mxu1 %v3367_v50  ;;  %v4348_v50 = vld [vmem:[#allocation3 + $0x20] sm:$0xff] }
  0x6e   : > { %523 = vst.msk [vmem:[#allocation3 + $0xa0] sm:$0xff] %vm502_vm2, %v3755_v19  ;;  %524 = vst.msk [vmem:[#allocation3 + $0xa8] sm:$0xff] %vm502_vm2, %v3755_v19  ;;  %3162 = vmatprep.subr.bf16.mxu1 %v3368_v51  ;;  %v4343_v47 = vld [vmem:[#allocation3 + $0x38] sm:$0xff] }
  0x6f   : > { %525 = vst.msk [vmem:[#allocation3 + $0xb0] sm:$0xff] %vm502_vm2, %v3755_v19  ;;  %526 = vst.msk [vmem:[#allocation3 + $0xb8] sm:$0xff] %vm502_vm2, %v3755_v19 }
  0x70   : > { %527 = vst.msk [vmem:[#allocation3 + $0xc0] sm:$0xff] %vm502_vm2, %v3755_v19  ;;  %528 = vst.msk [vmem:[#allocation3 + $0xc8] sm:$0xff] %vm502_vm2, %v3755_v19 }
  0x71   : > { %529 = vst.msk [vmem:[#allocation3 + $0xd0] sm:$0xff] %vm502_vm2, %v3755_v19  ;;  %530 = vst.msk [vmem:[#allocation3 + $0xd8] sm:$0xff] %vm502_vm2, %v3755_v19  ;;  %3163 = vmatpush3.bf16.msra.mxu1 %v3368_v51 }
  0x72   : > { %531 = vst.msk [vmem:[#allocation3 + $0xe0] sm:$0xff] %vm502_vm2, %v3755_v19  ;;  %532 = vst.msk [vmem:[#allocation3 + $0xe8] sm:$0xff] %vm502_vm2, %v3755_v19  ;;  %3164 = vmatprep.subr.bf16.mxu1 %v3369_v2 }
  0x73   : > { %3131 = vmatpush3.bf16.xpose.msra.mxu0 %v763_v5  ;;  %533 = vst.msk [vmem:[#allocation3 + $0xf0] sm:$0xff] %vm502_vm2, %v3755_v19  ;;  %534 = vst.msk [vmem:[#allocation3 + $0xf8] sm:$0xff] %vm502_vm2, %v3755_v19 }
  0x74   : > { %3255 = vmatprep.subr.msk.bf16.mxu0 %vm567_vm0, %v4060_v6  ;;  %568 = vst.msk [vmem:[#allocation5] sm:$0xff] %vm567_vm0, %v3757_v43  ;;  %569 = vst.msk [vmem:[#allocation5 + $0x8] sm:$0xff] %vm567_vm0, %v3757_v43 }
  0x75   : > { %535 = vst.msk [vmem:[#allocation4] sm:$0xff] %vm502_vm2, %v3757_v43  ;;  %536 = vst.msk [vmem:[#allocation4 + $0x8] sm:$0xff] %vm502_vm2, %v3757_v43  ;;  %3165 = vmatpush3.bf16.msra.mxu1 %v3369_v2 }
  0x76   : > { %537 = vst.msk [vmem:[#allocation4 + $0x10] sm:$0xff] %vm502_vm2, %v3757_v43  ;;  %538 = vst.msk [vmem:[#allocation4 + $0x18] sm:$0xff] %vm502_vm2, %v3757_v43 }
  0x77   : > { %539 = vst.msk [vmem:[#allocation4 + $0x20] sm:$0xff] %vm502_vm2, %v3757_v43  ;;  %540 = vst.msk [vmem:[#allocation4 + $0x28] sm:$0xff] %vm502_vm2, %v3757_v43 }
  0x78   : > { %541 = vst.msk [vmem:[#allocation4 + $0x30] sm:$0xff] %vm502_vm2, %v3757_v43  ;;  %542 = vst.msk [vmem:[#allocation4 + $0x38] sm:$0xff] %vm502_vm2, %v3757_v43 }
  0x79   : > { %543 = vst.msk [vmem:[#allocation4 + $0x40] sm:$0xff] %vm502_vm2, %v3757_v43  ;;  %544 = vst.msk [vmem:[#allocation4 + $0x48] sm:$0xff] %vm502_vm2, %v3757_v43 }
  0x7a   : > { %545 = vst.msk [vmem:[#allocation4 + $0x50] sm:$0xff] %vm502_vm2, %v3757_v43  ;;  %546 = vst.msk [vmem:[#allocation4 + $0x58] sm:$0xff] %vm502_vm2, %v3757_v43 }
  0x7b   : > { %3133 = vmatpush3.bf16.xpose.msra.mxu0 %v760_v7  ;;  %547 = vst.msk [vmem:[#allocation4 + $0x60] sm:$0xff] %vm502_vm2, %v3757_v43  ;;  %548 = vst.msk [vmem:[#allocation4 + $0x68] sm:$0xff] %vm502_vm2, %v3757_v43  ;;  %v4311_v7 = vld [vmem:[#allocation3 + $0x18] sm:$0xff] }
  0x7c   : > { %3256 = vmatprep.subr.msk.bf16.mxu0 %vm567_vm0, %v4067_v8  ;;  %549 = vst.msk [vmem:[#allocation4 + $0x70] sm:$0xff] %vm502_vm2, %v3757_v43  ;;  %550 = vst.msk [vmem:[#allocation4 + $0x78] sm:$0xff] %vm502_vm2, %v3757_v43 }
  0x7d   : > { %551 = vst.msk [vmem:[#allocation4 + $0x80] sm:$0xff] %vm502_vm2, %v3757_v43  ;;  %552 = vst.msk [vmem:[#allocation4 + $0x88] sm:$0xff] %vm502_vm2, %v3757_v43 }
  0x7e   : > { %553 = vst.msk [vmem:[#allocation4 + $0x90] sm:$0xff] %vm502_vm2, %v3757_v43  ;;  %554 = vst.msk [vmem:[#allocation4 + $0x98] sm:$0xff] %vm502_vm2, %v3757_v43 }
  0x7f   : > { %555 = vst.msk [vmem:[#allocation4 + $0xa0] sm:$0xff] %vm502_vm2, %v3757_v43  ;;  %556 = vst.msk [vmem:[#allocation4 + $0xa8] sm:$0xff] %vm502_vm2, %v3757_v43 }
  0x80   : > { %557 = vst.msk [vmem:[#allocation4 + $0xb0] sm:$0xff] %vm502_vm2, %v3757_v43  ;;  %558 = vst.msk [vmem:[#allocation4 + $0xb8] sm:$0xff] %vm502_vm2, %v3757_v43 }
  0x81   : > { %559 = vst.msk [vmem:[#allocation4 + $0xc0] sm:$0xff] %vm502_vm2, %v3757_v43  ;;  %560 = vst.msk [vmem:[#allocation4 + $0xc8] sm:$0xff] %vm502_vm2, %v3757_v43 }
  0x82   : > { %561 = vst.msk [vmem:[#allocation4 + $0xd0] sm:$0xff] %vm502_vm2, %v3757_v43  ;;  %562 = vst.msk [vmem:[#allocation4 + $0xd8] sm:$0xff] %vm502_vm2, %v3757_v43 }
  0x83   : > { %3135 = vmatpush3.bf16.xpose.msra.mxu0 %v757_v9  ;;  %563 = vst.msk [vmem:[#allocation4 + $0xe0] sm:$0xff] %vm502_vm2, %v3757_v43  ;;  %564 = vst.msk [vmem:[#allocation4 + $0xe8] sm:$0xff] %vm502_vm2, %v3757_v43  ;;  %v4384_v9 = vld [vmem:[#allocation3 + $0x40] sm:$0xff] }
  0x84   : > { %3257 = vmatprep.subr.msk.bf16.mxu0 %vm567_vm0, %v4074_v10  ;;  %565 = vst.msk [vmem:[#allocation4 + $0xf0] sm:$0xff] %vm502_vm2, %v3757_v43  ;;  %566 = vst.msk [vmem:[#allocation4 + $0xf8] sm:$0xff] %vm502_vm2, %v3757_v43 }
  0x85   : > { %570 = vst.msk [vmem:[#allocation5 + $0x10] sm:$0xff] %vm567_vm0, %v3757_v43  ;;  %571 = vst.msk [vmem:[#allocation5 + $0x18] sm:$0xff] %vm567_vm0, %v3757_v43 }
  0x86   : > { %572 = vst.msk [vmem:[#allocation5 + $0x20] sm:$0xff] %vm567_vm0, %v3757_v43  ;;  %573 = vst.msk [vmem:[#allocation5 + $0x28] sm:$0xff] %vm567_vm0, %v3757_v43 }
  0x87   : > { %574 = vst.msk [vmem:[#allocation5 + $0x30] sm:$0xff] %vm567_vm0, %v3757_v43  ;;  %575 = vst.msk [vmem:[#allocation5 + $0x38] sm:$0xff] %vm567_vm0, %v3757_v43 }
  0x88   : > { %576 = vst.msk [vmem:[#allocation5 + $0x40] sm:$0xff] %vm567_vm0, %v3757_v43  ;;  %577 = vst.msk [vmem:[#allocation5 + $0x48] sm:$0xff] %vm567_vm0, %v3757_v43 }
  0x89   : > { %578 = vst.msk [vmem:[#allocation5 + $0x50] sm:$0xff] %vm567_vm0, %v3757_v43  ;;  %579 = vst.msk [vmem:[#allocation5 + $0x58] sm:$0xff] %vm567_vm0, %v3757_v43 }
  0x8a   : > { %580 = vst.msk [vmem:[#allocation5 + $0x60] sm:$0xff] %vm567_vm0, %v3757_v43  ;;  %581 = vst.msk [vmem:[#allocation5 + $0x68] sm:$0xff] %vm567_vm0, %v3757_v43 }
  0x8b   : > { %3137 = vmatpush3.bf16.xpose.msra.mxu0 %v754_v11  ;;  %582 = vst.msk [vmem:[#allocation5 + $0x70] sm:$0xff] %vm567_vm0, %v3757_v43  ;;  %583 = vst.msk [vmem:[#allocation5 + $0x78] sm:$0xff] %vm567_vm0, %v3757_v43 }
  0x8c   : > { %584 = vst.msk [vmem:[#allocation5 + $0x80] sm:$0xff] %vm567_vm0, %v3757_v43  ;;  %585 = vst.msk [vmem:[#allocation5 + $0x88] sm:$0xff] %vm567_vm0, %v3757_v43 }
  0x8d   : > { %586 = vst.msk [vmem:[#allocation5 + $0x90] sm:$0xff] %vm567_vm0, %v3757_v43  ;;  %587 = vst.msk [vmem:[#allocation5 + $0x98] sm:$0xff] %vm567_vm0, %v3757_v43 }
  0x8e   : > { %588 = vst.msk [vmem:[#allocation5 + $0xa0] sm:$0xff] %vm567_vm0, %v3757_v43  ;;  %589 = vst.msk [vmem:[#allocation5 + $0xa8] sm:$0xff] %vm567_vm0, %v3757_v43 }
  0x8f   : > { %590 = vst.msk [vmem:[#allocation5 + $0xb0] sm:$0xff] %vm567_vm0, %v3757_v43  ;;  %591 = vst.msk [vmem:[#allocation5 + $0xb8] sm:$0xff] %vm567_vm0, %v3757_v43 }
  0x90   : > { %592 = vst.msk [vmem:[#allocation5 + $0xc0] sm:$0xff] %vm567_vm0, %v3757_v43  ;;  %593 = vst.msk [vmem:[#allocation5 + $0xc8] sm:$0xff] %vm567_vm0, %v3757_v43 }
  0x91   : > { %594 = vst.msk [vmem:[#allocation5 + $0xd0] sm:$0xff] %vm567_vm0, %v3757_v43  ;;  %595 = vst.msk [vmem:[#allocation5 + $0xd8] sm:$0xff] %vm567_vm0, %v3757_v43 }
  0x92   : > { %3139 = vmatmul.mubr.msk.bf16.vlgmr.msra.gmra.mxu0 %vm567_vm0, %v3357_v12  ;;  %596 = vst.msk [vmem:[#allocation5 + $0xe0] sm:$0xff] %vm567_vm0, %v3757_v43  ;;  %597 = vst.msk [vmem:[#allocation5 + $0xe8] sm:$0xff] %vm567_vm0, %v3757_v43 }
  0x93   : > { %3142 = vmatprep.mubr.msk.bf16.mxu0 %vm567_vm0, %v3358_v13  ;;  %598 = vst.msk [vmem:[#allocation5 + $0xf0] sm:$0xff] %vm567_vm0, %v3757_v43  ;;  %599 = vst.msk [vmem:[#allocation5 + $0xf8] sm:$0xff] %vm567_vm0, %v3757_v43  ;;  %v4321_v13 = vld [vmem:[#allocation3 + $0x8] sm:$0xff] }
  0x9a   : > { %3143 = vmatmul.mubr.msk.bf16.gmra.mxu0 %vm567_vm0, %v3359_v14 }
  0x9b   : > { %3146 = vmatprep.mubr.msk.bf16.mxu0 %vm567_vm0, %v3360_v15  ;;  %v3370_v15 = vld [vmem:[%s4296_s18 + $0x8] sm:$0xff]  }
  0x9c   : > { %3166 = vmatprep.subr.bf16.mxu1 %v3370_v15 }
  0x9d   : > { %3167 = vmatpush3.bf16.msra.mxu1 %v3370_v15 }
  0x9e   : > { %3168 = vmatprep.subr.bf16.mxu1 %v3371_v30 }
  0xa1   : > { %3169 = vmatpush3.bf16.msra.mxu1 %v3371_v30 }
  0xa2   : > { %3147 = vmatmul.mubr.msk.bf16.gmra.mxu0 %vm567_vm0, %v3361_v16 }
  0xa3   : > { %3150 = vmatprep.mubr.msk.bf16.mxu0 %vm567_vm0, %v3362_v17 }
  0xaa   : > { %3151 = vmatmul.mubr.msk.bf16.gmra.mxu0 %vm567_vm0, %v3363_v18  ;;  %v4335_v18 = vld [vmem:[#allocation3 + $0x30] sm:$0xff] }
 0x152   : > { %v4119_v20 = vpop.f32.mrf.mxu0 }
 0x153   : > { %894 = vmax.xlane.f32.xlu1 %v4119_v20 }
 0x154   : > { %v4122_v21 = vpop.f32.mrf.mxu0 }
 0x155   : > { %890 = vmax.xlane.f32.xlu0 %v4122_v21 }
 0x156   : > { %v4125_v22 = vpop.f32.mrf.mxu0 }
 0x157   : > { %896 = vmax.xlane.f32.xlu1 %v4125_v22 }
 0x158   : > { %v4128_v23 = vpop.f32.mrf.mxu0 }
 0x159   : > { %892 = vmax.xlane.f32.xlu0 %v4128_v23 }
 0x15a   : > { %v4131_v24 = vpop.f32.mrf.mxu0 }
 0x15c   : > { %v4133_v25 = vpop.f32.mrf.mxu0 }
 0x15d   : > { %902 = vmax.xlane.f32.xlu0 %v4131_v24 }
 0x15e   : > { %v4136_v26 = vpop.f32.mrf.mxu0 }
 0x15f   : > { %904 = vmax.xlane.f32.xlu1 %v4136_v26 }
 0x160   : > { %v4139_v31 = vpop.f32.mrf.mxu0 }
 0x161   : > { %5296 = vst [vmem:[#allocation19_spill] sm:$0xff] %v4139_v31  ;;  %898 = vmax.xlane.f32.xlu0 %v4133_v25 }
 0x162   : > { %v4142_v32 = vpop.f32.mrf.mxu0 }
 0x163   : > { %900 = vmax.xlane.f32.xlu1 %v4139_v31 }
 0x164   : > { %v4145_v38 = vpop.f32.mrf.mxu0 }
 0x165   : > { %5297 = vst [vmem:[#allocation20_spill] sm:$0xff] %v4145_v38  ;;  %910 = vmax.xlane.f32.xlu0 %v4142_v32 }
 0x166   : > { %v4148_v39 = vpop.f32.mrf.mxu0 }
 0x167   : > { %5298 = vst [vmem:[#allocation21_spill] sm:$0xff] %v4148_v39  ;;  %912 = vmax.xlane.f32.xlu1 %v4148_v39  ;;  %v4434_v39 = vld [vmem:[#allocation3 + $0x68] sm:$0xff] }
 0x168   : > { %v4151_v40 = vpop.f32.mrf.mxu0 }
 0x169   : > { %5299 = vst [vmem:[#allocation22_spill] sm:$0xff] %v4151_v40  ;;  %906 = vmax.xlane.f32.xlu0 %v4145_v38 }
 0x16a   : > { %v4154_v42 = vpop.f32.mrf.mxu0 }
 0x16b   : > { %5300 = vst [vmem:[#allocation23_spill] sm:$0xff] %v4154_v42  ;;  %908 = vmax.xlane.f32.xlu1 %v4151_v40  ;;  %v4422_v40 = vld [vmem:[#allocation3 + $0x60] sm:$0xff] }
 0x16c   : > { %v4285_v44 = vpop.f32.mrf.mxu0 }
 0x16d   : > { %5301 = vst [vmem:[#allocation24_spill] sm:$0xff] %v4285_v44  ;;  %918 = vmax.xlane.f32.xlu0 %v4154_v42  ;;  %v4403_v42 = vld [vmem:[#allocation3 + $0x70] sm:$0xff] }
 0x16e   : > { %v4288_v45 = vpop.f32.mrf.mxu0 }
 0x16f   : > { %5302 = vst [vmem:[#allocation25_spill] sm:$0xff] %v4288_v45  ;;  %920 = vmax.xlane.f32.xlu1 %v4288_v45 }
 0x170   : > { %v4291_v46 = vpop.f32.mrf.mxu0 }
 0x171   : > { %5303 = vst [vmem:[#allocation26_spill] sm:$0xff] %v4291_v46  ;;  %914 = vmax.xlane.f32.xlu0 %v4285_v44 }
 0x173   : > { %916 = vmax.xlane.f32.xlu1 %v4291_v46  ;;  %v4415_v46 = vld [vmem:[#allocation3 + $0x78] sm:$0xff] }
 0x1dc   : > { %v895_v53 = vpop.xlane.xlu1 %894 }
 0x1dd   : > { %v4308_v63 = vmax.f32 %v4303_v52, %v895_v53 }
 0x1de   : > { %v891_v5 = vpop.xlane.xlu0 %890 }
 0x1df   : > { %1510 = vst.msk [vmem:[#allocation3 + $0x10] sm:$0xff] %vm502_vm2, %v4308_v63  ;;  %v4318_v11 = vmax.f32 %v4305_v57, %v891_v5  ;;  %998 = vperm.xlu1 %3347, %v4308_v63   ;;  %v4358_v5 = vld [vmem:[#allocation3 + $0x28] sm:$0xff] }
 0x1e0   : > { %v897_v12 = vpop.xlane.xlu1 %896 }
 0x1e1   : > { %1508 = vst.msk [vmem:[#allocation3] sm:$0xff] %vm502_vm2, %v4318_v11  ;;  %v4326_v14 = vmax.f32 %v4311_v7, %v897_v12  ;;  %988 = vperm.xlu0 %3346, %v4318_v11  }
 0x1e2   : > { %v893_v16 = vpop.xlane.xlu0 %892 }
 0x1e3   : > { %1511 = vst.msk [vmem:[#allocation3 + $0x18] sm:$0xff] %vm502_vm2, %v4326_v14  ;;  %v4333_v17 = vmax.f32 %v4321_v13, %v893_v16  ;;  %v4366_v16 = vld [vmem:[#allocation3 + $0x50] sm:$0xff] }
 0x1e5   : > { %1509 = vst.msk [vmem:[#allocation3 + $0x8] sm:$0xff] %vm502_vm2, %v4333_v17  ;;  %993 = vperm.xlu1 %3347, %v4333_v17  }
 0x1e6   : > { %v903_v43 = vpop.xlane.xlu0 %902 }
 0x1e7   : > { %v4346_v48 = vmax.f32 %v4335_v18, %v903_v43 }
 0x1e8   : > { %v905_v49 = vpop.xlane.xlu1 %904 }
 0x1e9   : > { %1514 = vst.msk [vmem:[#allocation3 + $0x30] sm:$0xff] %vm502_vm2, %v4346_v48  ;;  %v4355_v53 = vmax.f32 %v4343_v47, %v905_v49  ;;  %1003 = vperm.xlu1 %3347, %v4326_v14  }
 0x1ea   : > { %v899_v2 = vpop.xlane.xlu0 %898 }
 0x1eb   : > { %1515 = vst.msk [vmem:[#allocation3 + $0x38] sm:$0xff] %vm502_vm2, %v4355_v53  ;;  %v4363_v12 = vmax.f32 %v4348_v50, %v899_v2  ;;  %1023 = vperm.xlu0 %3346, %v4355_v53   ;;  %v4377_v2 = vld [vmem:[#allocation3 + $0x58] sm:$0xff] }
 0x1ec   : > { %v901_v15 = vpop.xlane.xlu1 %900 }
 0x1ed   : > { %1512 = vst.msk [vmem:[#allocation3 + $0x20] sm:$0xff] %vm502_vm2, %v4363_v12  ;;  %v4373_v43 = vmax.f32 %v4358_v5, %v901_v15  ;;  %1595 = vrot.lane.b32.xlu1 %v3952_v0, %s3758_s24 }
 0x1ee   : > { %v911_v49 = vpop.xlane.xlu0 %910 }
 0x1ef   : > { %1513 = vst.msk [vmem:[#allocation3 + $0x28] sm:$0xff] %vm502_vm2, %v4373_v43  ;;  %v4382_v51 = vmax.f32 %v4366_v16, %v911_v49  ;;  %v4396_v49 = vld [vmem:[#allocation3 + $0x48] sm:$0xff] }
 0x1f0   : > { %v913_v30 = vpop.xlane.xlu1 %912 }
 0x1f1   : > { %1518 = vst.msk [vmem:[#allocation3 + $0x50] sm:$0xff] %vm502_vm2, %v4382_v51  ;;  %v4391_v0 = vmax.f32 %v4377_v2, %v913_v30  ;;  %1038 = vperm.xlu0 %3346, %v4382_v51   ;;  %1593 = vrot.lane.b32.xlu1 %v3955_v1, %s3758_s24 }
 0x1f2   : > { %v907_v19 = vpop.xlane.xlu0 %906 }
 0x1f3   : > { %1519 = vst.msk [vmem:[#allocation3 + $0x58] sm:$0xff] %vm502_vm2, %v4391_v0  ;;  %v4401_v44 = vmax.f32 %v4384_v9, %v907_v19 }
 0x1f4   : > { %v909_v15 = vpop.xlane.xlu1 %908 }
 0x1f5   : > { %1516 = vst.msk [vmem:[#allocation3 + $0x40] sm:$0xff] %vm502_vm2, %v4401_v44  ;;  %v4410_v1 = vmax.f32 %v4396_v49, %v909_v15  ;;  %1028 = vperm.xlu0 %3346, %v4401_v44   ;;  %1591 = vrot.lane.b32.xlu1 %v3964_v3, %s3758_s24 }
 0x1f6   : > { %v919_v19 = vpop.xlane.xlu0 %918 }
 0x1f7   : > { %1517 = vst.msk [vmem:[#allocation3 + $0x48] sm:$0xff] %vm502_vm2, %v4410_v1  ;;  %v4420_v45 = vmax.f32 %v4403_v42, %v919_v19 }
 0x1f8   : > { %v921_v30 = vpop.xlane.xlu1 %920 }
 0x1f9   : > { %v4425_v15 = vmax.f32 %v4415_v46, %v921_v30  ;;  %1018 = vperm.xlu1 %3347, %v4346_v48   ;;  %1589 = vrot.lane.b32.xlu0 %v4003_v41, %s3758_s24  ;;  %1522 = vst.msk [vmem:[#allocation3 + $0x70] sm:$0xff] %vm502_vm2, %v4420_v45 }
 0x1fa   : > { %v915_v19 = vpop.xlane.xlu0 %914 }
 0x1fb   : > { %v953_v31 = vsub.f32 %v4415_v46, %v4425_v15  ;;  %1523 = vst.msk [vmem:[#allocation3 + $0x78] sm:$0xff] %vm502_vm2, %v4425_v15  ;;  %v4441_v30 = vmax.f32 %v4422_v40, %v915_v19 }
 0x1fc   : > { %v917_v38 = vpop.xlane.xlu1 %916 }
 0x1fd   : > { %v935_v41 = vmax.f32 %v4434_v39, %v917_v38  ;;  %1008 = vperm.xlu1 %3347, %v4363_v12   ;;  %v950_v3 = vsub.f32 %v4422_v40, %v4441_v30  ;;  %1520 = vst.msk [vmem:[#allocation3 + $0x60] sm:$0xff] %vm502_vm2, %v4441_v30 }
 0x1ff   : > { %1521 = vst.msk [vmem:[#allocation3 + $0x68] sm:$0xff] %vm502_vm2, %v935_v41  ;;  %1053 = vperm.xlu0 %3346, %v935_v41  }
 0x201   : > { %1013 = vperm.xlu1 %3347, %v4373_v43  }
 0x203   : > { %1063 = vperm.xlu0 %3346, %v4425_v15  }
 0x205   : > { %1043 = vperm.xlu1 %3347, %v4391_v0  }
 0x207   : > { %1585 = vrot.lane.b32.xlu0 %v4060_v6, %s3758_s24  ;;  %v938_v6 = vsub.f32 %v4305_v57, %v4318_v11 }
 0x209   : > { %1033 = vperm.xlu1 %3347, %v4410_v1  }
 0x20b   : > { %437 = vrot.lane.b32.xlu0 %v3978_v27, %s3758_s24  ;;  %v954_v27 = vmul.f32 1.442695, %v938_v6 }
 0x20d   : > { %1058 = vperm.xlu1 %3347, %v4420_v45   ;;  %3380 = vpow2.f32 %v954_v27 }
 0x20f   : > { %441 = vrot.lane.b32.xlu0 %v3982_v29, %s3758_s24  ;;  %v941_v29 = vsub.f32 %v4311_v7, %v4326_v14  ;;  %v5308_v14 = vsub.f32 %v4366_v16, %v4382_v51  ;;  %v5310_v51 = vsub.f32 %v4403_v42, %v4420_v45  ;;  %v984_v42 = vmul.f32 1.442695, %v953_v31 }
 0x211   : > { %1048 = vperm.xlu1 %3347, %v4441_v30  }
 0x213   : > { %1581 = vrot.lane.b32.xlu0 %v4074_v10, %s3758_s24 }
 0x215   : > { %1587 = vrot.lane.b32.xlu1 %v4052_v4, %s3758_s24  ;;  %v945_v4 = vsub.f32 %v4343_v47, %v4355_v53  ;;  %v5309_v47 = vsub.f32 %v4384_v9, %v4401_v44  ;;  %v982_v53 = vmul.f32 1.442695, %v5310_v51  ;;  %v978_v9 = vmul.f32 1.442695, %v950_v3 }
 0x217   : > { %447 = vrot.lane.b32.xlu0 %v3990_v35, %s3758_s24  ;;  %v960_v35 = vmul.f32 1.442695, %v941_v29 }
 0x219   : > { %1583 = vrot.lane.b32.xlu1 %v4067_v8, %s3758_s24  ;;  %3382 = vpow2.f32 %v960_v35  ;;  %v943_v8 = vsub.f32 %v4358_v5, %v4373_v43 }
 0x21a   : > { %v4505_v10 = vpop.eup %3380 }
 0x21b   : > { %451 = vrot.lane.b32.xlu0 %v4000_v37, %s3758_s24  ;;  %v968_v37 = vmul.f32 1.442695, %v945_v4 }
 0x21d   : > { %439 = vrot.lane.b32.xlu1 %v3980_v28, %s3758_s24  ;;  %3384 = vpow2.f32 %v968_v37  ;;  %v964_v28 = vmul.f32 1.442695, %v943_v8 }
 0x21f   : > { %455 = vrot.lane.b32.xlu0 %v4017_v55, %s3758_s24  ;;  %v949_v55 = vsub.f32 %v4377_v2, %v4391_v0  ;;  %3386 = vpow2.f32 %v964_v28 }
 0x221   : > { %443 = vrot.lane.b32.xlu1 %v3986_v33, %s3758_s24  ;;  %v5304_v33 = vsub.f32 %v4321_v13, %v4333_v17 }
 0x223   : > { %459 = vrot.lane.b32.xlu0 %v4023_v58, %s3758_s24  ;;  %v956_v58 = vmul.f32 1.442695, %v5304_v33 }
 0x225   : > { %445 = vrot.lane.b32.xlu1 %v3988_v34, %s3758_s24  ;;  %v976_v34 = vmul.f32 1.442695, %v949_v55  ;;  %3388 = vpow2.f32 %v956_v58 }
 0x226   : > { %v4514_v7 = vpop.eup %3382 }
 0x227   : > { %463 = vrot.lane.b32.xlu0 %v4027_v60, %s3758_s24  ;;  %v947_v60 = vsub.f32 %v4396_v49, %v4410_v1  ;;  %3390 = vpow2.f32 %v976_v34 }
 0x229   : > { %449 = vrot.lane.b32.xlu1 %v3992_v36, %s3758_s24  ;;  %v5305_v36 = vsub.f32 %v4303_v52, %v4308_v63  ;;  %v972_v57 = vmul.f32 1.442695, %v947_v60 }
 0x22a   : > { %v4522_v63 = vpop.eup %3384 }
 0x22b   : > { %467 = vrot.lane.b32.xlu0 %v4037_v62, %s3758_s24  ;;  %v958_v38 = vmul.f32 1.442695, %v5305_v36  ;;  %v951_v62 = vsub.f32 %v4434_v39, %v935_v41  ;;  %v5307_v39 = vsub.f32 %v4335_v18, %v4346_v48 }
 0x22c   : > { %v4530_v13 = vpop.eup %3386 }
 0x22d   : > { %453 = vrot.lane.b32.xlu1 %v4015_v54, %s3758_s24  ;;  %3392 = vpow2.f32 %v958_v38  ;;  %v5306_v54 = vsub.f32 %v4348_v50, %v4363_v12  ;;  %v980_v52 = vmul.f32 1.442695, %v951_v62 }
 0x22e   : > { %3394 = vpow2.f32 %v972_v57 }
 0x22f   : > { %1229 = vperm.xlu0 %3346, %v4505_v10   ;;  %v962_v11 = vmul.f32 1.442695, %v5306_v54 }
 0x231   : > { %457 = vrot.lane.b32.xlu1 %v4019_v56, %s3758_s24  ;;  %v966_v56 = vmul.f32 1.442695, %v5307_v39  ;;  %3396 = vpow2.f32 %v962_v11 }
 0x232   : > { %3398 = vpow2.f32 %v980_v52  ;;  %v4536_v17 = vpop.eup %3388 }
 0x233   : > { %1244 = vperm.xlu0 %3346, %v4514_v7   ;;  %3400 = vpow2.f32 %v966_v56  ;;  %v5311_v56 = vld [vmem:[#allocation20_spill] sm:$0xff] }
 0x234   : > { %v4539_v18 = vpop.eup %3390 }
 0x235   : > { %461 = vrot.lane.b32.xlu1 %v4025_v59, %s3758_s24  ;;  %v974_v59 = vmul.f32 1.442695, %v5308_v14 }
 0x237   : > { %1264 = vperm.xlu0 %3346, %v4522_v63   ;;  %3402 = vpow2.f32 %v974_v59 }
 0x239   : > { %465 = vrot.lane.b32.xlu1 %v4029_v61, %s3758_s24  ;;  %v970_v61 = vmul.f32 1.442695, %v5309_v47  ;;  %v5312_v47 = vld [vmem:[#allocation19_spill] sm:$0xff] }
 0x23a   : > { %v4545_v48 = vpop.eup %3392 }
 0x23b   : > { %1254 = vperm.xlu0 %3346, %v4530_v13   ;;  %v4548_v50 = vpop.eup %3394  ;;  %3404 = vpow2.f32 %v970_v61 }
 0x23c   : > { %3406 = vpow2.f32 %v982_v53 }
 0x23d   : > { %1234 = vperm.xlu1 %3347, %v4536_v17   ;;  %3408 = vpow2.f32 %v978_v9  ;;  %v5313_v9 = vld [vmem:[#allocation21_spill] sm:$0xff] }
 0x23e   : > { %v4554_v5 = vpop.eup %3396  ;;  %3410 = vpow2.f32 %v984_v42 }
 0x23f   : > { %1284 = vperm.xlu0 %3346, %v4539_v18   ;;  %v4557_v44 = vpop.eup %3398 }
 0x240   : > { %v4563_v12 = vpop.eup %3400 }
 0x241   : > { %1239 = vperm.xlu1 %3347, %v4545_v48  }
 0x243   : > { %1274 = vperm.xlu0 %3346, %v4548_v50  }
 0x244   : > { %v4569_v45 = vpop.eup %3402 }
 0x245   : > { %1249 = vperm.xlu1 %3347, %v4554_v5  }
 0x247   : > { %1294 = vperm.xlu0 %3346, %v4557_v44  }
 0x248   : > { %v4572_v16 = vpop.eup %3404 }
 0x249   : > { %1259 = vperm.xlu1 %3347, %v4563_v12   ;;  %v4575_v40 = vpop.eup %3406 }
 0x24a   : > { %v4578_v43 = vpop.eup %3408 }
 0x24b   : > { %v4582_v2 = vpop.eup %3410 }
 0x24d   : > { %1279 = vperm.xlu1 %3347, %v4569_v45  }
 0x251   : > { %1269 = vperm.xlu1 %3347, %v4572_v16  }
 0x255   : > { %1299 = vperm.xlu1 %3347, %v4575_v40  }
 0x259   : > { %1289 = vperm.xlu1 %3347, %v4578_v43  }
 0x25a   : > { %v999_v46 = vpop.permute.xlu1 %998 }
 0x25b   : > { %v1068_v31 = vsub.f32 %v4119_v20, %v999_v46 }
 0x25c   : > { %v989_v0 = vpop.permute.xlu0 %988 }
 0x25d   : > { %v1086_v49 = vmul.f32 1.442695, %v1068_v31  ;;  %v1066_v1 = vsub.f32 %v4122_v21, %v989_v0  ;;  %1304 = vperm.xlu1 %3347, %v4582_v2  }
 0x25f   : > { %3412 = vpow2.f32 %v1086_v49  ;;  %v1082_v15 = vmul.f32 1.442695, %v1066_v1  ;;  %v5314_v1 = vld [vmem:[#allocation22_spill] sm:$0xff] }
 0x260   : > { %v994_v3 = vpop.permute.xlu1 %993 }
 0x261   : > { %v1067_v19 = vsub.f32 %v4128_v23, %v994_v3  ;;  %3414 = vpow2.f32 %v1082_v15 }
 0x263   : > { %v1084_v30 = vmul.f32 1.442695, %v1067_v19  ;;  %v5315_v19 = vld [vmem:[#allocation25_spill] sm:$0xff] }
 0x264   : > { %v1004_v41 = vpop.permute.xlu1 %1003 }
 0x265   : > { %3416 = vpow2.f32 %v1084_v30  ;;  %v1069_v6 = vsub.f32 %v4125_v22, %v1004_v41 }
 0x266   : > { %v1024_v27 = vpop.permute.xlu0 %1023 }
 0x267   : > { %v1088_v20 = vmul.f32 1.442695, %v1069_v6  ;;  %v1073_v55 = vsub.f32 %v4136_v26, %v1024_v27  ;;  %v5316_v27 = vld [vmem:[#allocation26_spill] sm:$0xff] }
 0x268   : > { %v1596_v29 = vpop.permute.xlu1 %1595 }
 0x269   : > { %3418 = vpow2.f32 %v1088_v20  ;;  %3258 = vmatprep.subr.msk.bf16.mxu1 %vm567_vm0, %v1596_v29  ;;  %v1096_v36 = vmul.f32 1.442695, %v1073_v55  ;;  %v1643_v26 = vsel %vm567_vm0, %v1596_v29, 0 }
 0x26c   : > { %v3413_v21 = vpop.eup %3412  ;;  %v1039_v35 = vpop.permute.xlu0 %1038 }
 0x26d   : > { %v1594_v4 = vpop.permute.xlu1 %1593  ;;  %1150 = vadd.xlane.f32.xlu0 %v3413_v21  ;;  %v1076_v62 = vsub.f32 %v4142_v32, %v1039_v35  ;;  %v5317_v35 = vld [vmem:[#allocation23_spill] sm:$0xff] }
 0x26e   : > { %v3415_v28 = vpop.eup %3414  ;;  %v1640_v46 = vsel %vm567_vm0, %v1594_v4, 0 }
 0x270   : > { %v1029_v37 = vpop.permute.xlu0 %1028 }
 0x271   : > { %v1592_v8 = vpop.permute.xlu1 %1591  ;;  %v1074_v14 = vsub.f32 %v5311_v56, %v1029_v37 }
 0x272   : > { %v3417_v23 = vpop.eup %3416  ;;  %v1637_v37 = vsel %vm567_vm0, %v1592_v8, 0 }
 0x273   : > { %1148 = vadd.xlane.f32.xlu0 %v3417_v23  ;;  %v1323_v33 = vpack.c.bf16 %v3417_v23, %v3415_v28 }
 0x274   : > { %v4590_v22 = vpop.permute.xlu0 %1589 }
 0x275   : > { %v1019_v58 = vpop.permute.xlu1 %1018  ;;  %3170 = vmatprep.mubr.bf16.mxu1 %v1323_v33 }
 0x276   : > { %v1072_v34 = vsub.f32 %v4131_v24, %v1019_v58  ;;  %v3419_v60 = vpop.eup %3418  ;;  %v1102_v24 = vmul.f32 1.442695, %v1076_v62 }
 0x277   : > { %v1324_v57 = vpack.c.bf16 %v3419_v60, %v3413_v21 }
 0x278   : > { %v1094_v38 = vmul.f32 1.442695, %v1072_v34 }
 0x279   : > { %v1009_v54 = vpop.permute.xlu1 %1008  ;;  %3171 = vmatmul.mubr.bf16.vlgmr.msra.gmra.mxu1 %v1324_v57 }
 0x27a   : > { %3420 = vpow2.f32 %v1094_v38  ;;  %v1070_v11 = vsub.f32 %v4133_v25, %v1009_v54  ;;  %3187 = vmatpush3.bf16.xpose.msra.mxu1 %v1643_v26  ;;  %v1054_v52 = vpop.permute.xlu0 %1053  ;;  %v1098_v25 = vmul.f32 1.442695, %v1074_v14 }
 0x27b   : > { %3422 = vpow2.f32 %v1096_v36  ;;  %3259 = vmatprep.subr.msk.bf16.mxu1 %vm567_vm0, %v1594_v4  ;;  %v1079_v29 = vsub.f32 %v5316_v27, %v1054_v52  ;;  %v5318_v36 = vld [vmem:[#allocation24_spill] sm:$0xff]  ;;  %v1634_v52 = vsel %vm567_vm0, %v4590_v22, 0 }
 0x27c   : > { %v1090_v39 = vmul.f32 1.442695, %v1070_v11 }
 0x27d   : > { %v1014_v59 = vpop.permute.xlu1 %1013  ;;  %v1108_v58 = vmul.f32 1.442695, %v1079_v29 }
 0x27e   : > { %3424 = vpow2.f32 %v1090_v39  ;;  %v1071_v32 = vsub.f32 %v5312_v47, %v1014_v59  ;;  %v1064_v61 = vpop.permute.xlu0 %1063 }
 0x27f   : > { %3426 = vpow2.f32 %v1102_v24  ;;  %v1081_v30 = vsub.f32 %v5315_v19, %v1064_v61 }
 0x280   : > { %v1092_v51 = vmul.f32 1.442695, %v1071_v32 }
 0x281   : > { %v1044_v53 = vpop.permute.xlu1 %1043  ;;  %1146 = vadd.xlane.f32.xlu1 %v3415_v28  ;;  %v1112_v23 = vmul.f32 1.442695, %v1081_v30 }
 0x282   : > { %3428 = vpow2.f32 %v1092_v51  ;;  %v1077_v42 = vsub.f32 %v5313_v9, %v1044_v53  ;;  %3189 = vmatpush3.bf16.xpose.msra.mxu1 %v1640_v46  ;;  %v4601_v31 = vpop.permute.xlu0 %1585 }
 0x283   : > { %3260 = vmatprep.subr.msk.bf16.mxu1 %vm567_vm0, %v1592_v8  ;;  %3430 = vpow2.f32 %v1098_v25 }
 0x284   : > { %v1104_v0 = vmul.f32 1.442695, %v1077_v42 }
 0x285   : > { %v1034_v49 = vpop.permute.xlu1 %1033  ;;  %1152 = vadd.xlane.f32.xlu1 %v3419_v60 }
 0x286   : > { %3432 = vpow2.f32 %v1104_v0  ;;  %v1075_v15 = vsub.f32 %v5314_v1, %v1034_v49  ;;  %v438_v41 = vpop.permute.xlu0 %437 }
 0x287   : > { %v3421_v3 = vpop.eup %3420  ;;  %486 = vst.msk [vmem:[#allocation2 + $0x40] sm:$0xf] %vm420_vm1, %v438_v41 }
 0x288   : > { %v1100_v6 = vmul.f32 1.442695, %v1075_v15  ;;  %1158 = vadd.xlane.f32.xlu0 %v3421_v3  ;;  %v3423_v20 = vpop.eup %3422  ;;  %v1628_v15 = vsel %vm567_vm0, %v4601_v31, 0 }
 0x289   : > { %v1059_v21 = vpop.permute.xlu1 %1058  ;;  %1160 = vadd.xlane.f32.xlu1 %v3423_v20  ;;  %v1326_v39 = vpack.c.bf16 %v3423_v20, %v3421_v3 }
 0x28a   : > { %3434 = vpow2.f32 %v1100_v6  ;;  %v1080_v4 = vsub.f32 %v5317_v35, %v1059_v21  ;;  %3191 = vmatpush3.bf16.xpose.msra.mxu1 %v1637_v37  ;;  %v442_v55 = vpop.permute.xlu0 %441 }
 0x28b   : > { %v3425_v28 = vpop.eup %3424  ;;  %488 = vst.msk [vmem:[#allocation2 + $0x48] sm:$0xf] %vm420_vm1, %v442_v55  ;;  %3261 = vmatprep.subr.msk.bf16.mxu1 %vm567_vm0, %v4590_v22 }
 0x28c   : > { %v1110_v33 = vmul.f32 1.442695, %v1080_v4  ;;  %1154 = vadd.xlane.f32.xlu0 %v3425_v28  ;;  %v3427_v60 = vpop.eup %3426 }
 0x28d   : > { %v1049_v34 = vpop.permute.xlu1 %1048 }
 0x28e   : > { %3436 = vpow2.f32 %v1110_v33  ;;  %v1078_v38 = vsub.f32 %v5318_v36, %v1049_v34  ;;  %v4614_v8 = vpop.permute.xlu0 %1581 }
 0x28f   : > { %v3429_v57 = vpop.eup %3428  ;;  %3438 = vpow2.f32 %v1112_v23  ;;  %v1622_v21 = vsel %vm567_vm0, %v4614_v8, 0 }
 0x290   : > { %v1106_v62 = vmul.f32 1.442695, %v1078_v38  ;;  %1166 = vadd.xlane.f32.xlu0 %v3427_v60  ;;  %1156 = vadd.xlane.f32.xlu1 %v3429_v57  ;;  %v1325_v54 = vpack.c.bf16 %v3429_v57, %v3425_v28  ;;  %3440 = vpow2.f32 %v1108_v58  ;;  %v3431_v26 = vpop.eup %3430 }
 0x291   : > { %v1588_v11 = vpop.permute.xlu1 %1587 }
 0x292   : > { %3442 = vpow2.f32 %v1106_v62  ;;  %3174 = vmatprep.mubr.bf16.mxu1 %v1325_v54  ;;  %3193 = vmatpush3.bf16.xpose.msra.mxu1 %v1634_v52  ;;  %v448_v56 = vpop.permute.xlu0 %447  ;;  %v1631_v61 = vsel %vm567_vm0, %v1588_v11, 0 }
 0x293   : > { %v3433_v24 = vpop.eup %3432  ;;  %491 = vst.msk [vmem:[#allocation2 + $0x54] sm:$0xf] %vm420_vm1, %v448_v56  ;;  %3175 = vmatmul.mubr.bf16.gmra.mxu1 %v1326_v39  ;;  %3262 = vmatprep.subr.msk.bf16.mxu1 %vm567_vm0, %v1588_v11  ;;  %v1116_v56 = vld [vmem:[#allocation4 + $0x10] sm:$0xff] }
 0x294   : > { %1162 = vadd.xlane.f32.xlu0 %v3431_v26  ;;  %1168 = vadd.xlane.f32.xlu1 %v3433_v24  ;;  %v1328_v51 = vpack.c.bf16 %v3433_v24, %v3427_v60 }
 0x295   : > { %v1584_v14 = vpop.permute.xlu1 %1583 }
 0x296   : > { %v452_v47 = vpop.permute.xlu0 %451  ;;  %v1625_v20 = vsel %vm567_vm0, %v1584_v14, 0 }
 0x297   : > { %v3435_v59 = vpop.eup %3434  ;;  %493 = vst.msk [vmem:[#allocation2 + $0x5c] sm:$0xf] %vm420_vm1, %v452_v47 }
 0x298   : > { %v1327_v32 = vpack.c.bf16 %v3435_v59, %v3431_v26  ;;  %1164 = vadd.xlane.f32.xlu1 %v3435_v59  ;;  %v1132_v59 = vmul.f32 %v4545_v48, %v1116_v56 }
 0x299   : > { %v440_v22 = vpop.permute.xlu1 %439 }
 0x29a   : > { %487 = vst.msk [vmem:[#allocation2 + $0x44] sm:$0xf] %vm420_vm1, %v440_v22  ;;  %3178 = vmatprep.mubr.bf16.mxu1 %v1327_v32  ;;  %3195 = vmatpush3.bf16.xpose.msra.mxu1 %v1631_v61  ;;  %v456_v53 = vpop.permute.xlu0 %455  ;;  %v1115_v61 = vld [vmem:[#allocation4 + $0x8] sm:$0xff] }
 0x29b   : > { %v3437_v25 = vpop.eup %3436  ;;  %495 = vst.msk [vmem:[#allocation2 + $0x64] sm:$0xf] %vm420_vm1, %v456_v53  ;;  %3179 = vmatmul.mubr.bf16.gmra.mxu1 %v1328_v51  ;;  %3263 = vmatprep.subr.msk.bf16.mxu1 %vm567_vm0, %v4601_v31  ;;  %v1131_v51 = vmul.f32 %v4536_v17, %v1115_v61 }
 0x29c   : > { %v3439_v9 = vpop.eup %3438  ;;  %1174 = vadd.xlane.f32.xlu0 %v3437_v25 }
 0x29d   : > { %1176 = vadd.xlane.f32.xlu1 %v3439_v9  ;;  %v444_v42 = vpop.permute.xlu1 %443  ;;  %v3441_v46 = vpop.eup %3440  ;;  %v1330_v30 = vpack.c.bf16 %v3439_v9, %v3437_v25 }
 0x29e   : > { %489 = vst.msk [vmem:[#allocation2 + $0x4c] sm:$0xf] %vm420_vm1, %v444_v42  ;;  %v460_v49 = vpop.permute.xlu0 %459 }
 0x29f   : > { %v3443_v0 = vpop.eup %3442  ;;  %497 = vst.msk [vmem:[#allocation2 + $0x6c] sm:$0xf] %vm420_vm1, %v460_v49  ;;  %v1117_v49 = vld [vmem:[#allocation4 + $0x18] sm:$0xff] }
 0x2a0   : > { %1170 = vadd.xlane.f32.xlu0 %v3443_v0  ;;  %v1329_v1 = vpack.c.bf16 %v3441_v46, %v3443_v0 }
 0x2a1   : > { %1172 = vadd.xlane.f32.xlu1 %v3441_v46  ;;  %v446_v3 = vpop.permute.xlu1 %445  ;;  %v3372_v19 = vld [vmem:[#allocation2 + $0x40] sm:$0xff]  }
 0x2a2   : > { %490 = vst.msk [vmem:[#allocation2 + $0x50] sm:$0xf] %vm420_vm1, %v446_v3  ;;  %3182 = vmatprep.mubr.bf16.mxu1 %v1329_v1  ;;  %3197 = vmatpush3.bf16.xpose.msra.mxu1 %v1628_v15  ;;  %v464_v41 = vpop.permute.xlu0 %463  ;;  %v1114_v46 = vld [vmem:[#allocation4] sm:$0xff]  ;;  %v1120_v15 = vld [vmem:[#allocation4 + $0x30] sm:$0xff]  ;;  %v1133_v3 = vmul.f32 %v4514_v7, %v1117_v49 }
 0x2a3   : > { %499 = vst.msk [vmem:[#allocation2 + $0x74] sm:$0xf] %vm420_vm1, %v464_v41  ;;  %3183 = vmatmul.mubr.bf16.gmra.mxu1 %v1330_v30  ;;  %3264 = vmatprep.subr.msk.bf16.mxu1 %vm567_vm0, %v1584_v14  ;;  %v1130_v48 = vmul.f32 %v4505_v10, %v1114_v46  ;;  %v1136_v41 = vmul.f32 %v4563_v12, %v1120_v15  ;;  %v1124_v7 = vld [vmem:[#allocation4 + $0x50] sm:$0xff]  ;;  %v1127_v15 = vld [vmem:[#allocation4 + $0x68] sm:$0xff] }
 0x2a4   : > { %3202 = vmatprep.mubr.msk.bf16.mxu1 %vm567_vm0, %v3372_v19  ;;  %v1121_v19 = vld [vmem:[#allocation4 + $0x38] sm:$0xff]  ;;  %v1140_v12 = vmul.f32 %v4569_v45, %v1124_v7  ;;  %v1123_v45 = vld [vmem:[#allocation4 + $0x48] sm:$0xff] }
 0x2a5   : > { %v450_v6 = vpop.permute.xlu1 %449  ;;  %v3373_v28 = vld [vmem:[#allocation2 + $0x48] sm:$0xff]   ;;  %v1137_v10 = vmul.f32 %v4522_v63, %v1121_v19  ;;  %v1143_v19 = vmul.f32 %v4557_v44, %v1127_v15 }
 0x2a6   : > { %492 = vst.msk [vmem:[#allocation2 + $0x58] sm:$0xf] %vm420_vm1, %v450_v6  ;;  %v468_v31 = vpop.permute.xlu0 %467 }
 0x2a7   : > { %501 = vst.msk [vmem:[#allocation2 + $0x7c] sm:$0xf] %vm420_vm1, %v468_v31  ;;  %v1118_v31 = vld [vmem:[#allocation4 + $0x20] sm:$0xff] }
 0x2a9   : > { %v454_v27 = vpop.permute.xlu1 %453  ;;  %v3374_v37 = vld [vmem:[#allocation2 + $0x50] sm:$0xff]  }
 0x2aa   : > { %494 = vst.msk [vmem:[#allocation2 + $0x60] sm:$0xf] %vm420_vm1, %v454_v27  ;;  %3199 = vmatpush3.bf16.xpose.msra.mxu1 %v1625_v20  ;;  %v4651_v60 = vpop.permute.xlu0 %1229 }
 0x2ab   : > { %3265 = vmatprep.subr.msk.bf16.mxu1 %vm567_vm0, %v4614_v8 }
 0x2ad   : > { %v458_v29 = vpop.permute.xlu1 %457  ;;  %v3375_v23 = vld [vmem:[#allocation2 + $0x58] sm:$0xff]  }
 0x2ae   : > { %496 = vst.msk [vmem:[#allocation2 + $0x68] sm:$0xf] %vm420_vm1, %v458_v29  ;;  %v4654_v36 = vpop.permute.xlu0 %1244 }
 0x2b1   : > { %v462_v35 = vpop.permute.xlu1 %461  ;;  %v3376_v55 = vld [vmem:[#allocation2 + $0x60] sm:$0xff]  }
 0x2b2   : > { %498 = vst.msk [vmem:[#allocation2 + $0x70] sm:$0xf] %vm420_vm1, %v462_v35  ;;  %3201 = vmatpush3.bf16.xpose.msra.mxu1 %v1622_v21  ;;  %v4658_v57 = vpop.permute.xlu0 %1264  ;;  %v1134_v21 = vmul.f32 %v4554_v5, %v1118_v31 }
 0x2b5   : > { %v466_v4 = vpop.permute.xlu1 %465  ;;  %v3377_v33 = vld [vmem:[#allocation2 + $0x68] sm:$0xff]  }
 0x2b6   : > { %500 = vst.msk [vmem:[#allocation2 + $0x78] sm:$0xf] %vm420_vm1, %v466_v4  ;;  %v4662_v62 = vpop.permute.xlu0 %1254  ;;  %v1119_v4 = vld [vmem:[#allocation4 + $0x28] sm:$0xff] }
 0x2b9   : > { %3203 = vmatmul.mubr.msk.bf16.vlgmr.msra.gmra.mxu1 %vm567_vm0, %v3373_v28  ;;  %v3378_v58 = vld [vmem:[#allocation2 + $0x70] sm:$0xff]   ;;  %v4656_v38 = vpop.permute.xlu1 %1234  ;;  %v1135_v28 = vmul.f32 %v4530_v13, %v1119_v4  ;;  %v1139_v13 = vmul.f32 %v4548_v50, %v1123_v45 }
 0x2ba   : > { %3206 = vmatprep.mubr.msk.bf16.mxu1 %vm567_vm0, %v3374_v37  ;;  %v4666_v11 = vpop.permute.xlu0 %1284 }
 0x2bd   : > { %v3379_v34 = vld [vmem:[#allocation2 + $0x78] sm:$0xff]   ;;  %v4660_v8 = vpop.permute.xlu1 %1239 }
 0x2be   : > { %v4670_v52 = vpop.permute.xlu0 %1274 }
 0x2c1   : > { %3207 = vmatmul.mubr.msk.bf16.gmra.mxu1 %vm567_vm0, %v3375_v23  ;;  %v4664_v54 = vpop.permute.xlu1 %1249 }
 0x2c2   : > { %3210 = vmatprep.mubr.msk.bf16.mxu1 %vm567_vm0, %v3376_v55  ;;  %v4674_v24 = vpop.permute.xlu0 %1294  ;;  %v1122_v55 = vld [vmem:[#allocation4 + $0x40] sm:$0xff] }
 0x2c3   : > { %v1138_v5 = vmul.f32 %v4572_v16, %v1122_v55 }
 0x2c5   : > { %v4668_v26 = vpop.permute.xlu1 %1259 }
 0x2c9   : > { %3211 = vmatmul.mubr.msk.bf16.gmra.mxu1 %vm567_vm0, %v3377_v33  ;;  %v4672_v39 = vpop.permute.xlu1 %1279 }
 0x2ca   : > { %3214 = vmatprep.mubr.msk.bf16.mxu1 %vm567_vm0, %v3378_v58 }
 0x2cd   : > { %v4676_v14 = vpop.permute.xlu1 %1269 }
 0x2d1   : > { %3215 = vmatmul.mubr.msk.bf16.gmra.mxu1 %vm567_vm0, %v3379_v34  ;;  %v4680_v22 = vpop.permute.xlu1 %1299  ;;  %v1125_v34 = vld [vmem:[#allocation4 + $0x58] sm:$0xff] }
 0x2d5   : > { %v4684_v9 = vpop.permute.xlu1 %1289 }
 0x2d9   : > { %v4686_v42 = vpop.permute.xlu1 %1304 }
 0x2f6   : > { %v1151_v47 = vpop.xlane.xlu0 %1150 }
 0x2f7   : > { %v1180_v32 = vadd.f32 %v1151_v47, %v1132_v59  ;;  %v1141_v59 = vmul.f32 %v4539_v18, %v1125_v34 }
 0x2f9   : > { %1197 = vst.msk [vmem:[#allocation4 + $0x10] sm:$0xff] %vm502_vm2, %v1180_v32 }
 0x2fc   : > { %v1149_v25 = vpop.xlane.xlu0 %1148 }
 0x2fd   : > { %v1179_v53 = vadd.f32 %v1149_v25, %v1131_v51  ;;  %v1128_v51 = vld [vmem:[#allocation4 + $0x70] sm:$0xff] }
 0x2ff   : > { %1196 = vst.msk [vmem:[#allocation4 + $0x8] sm:$0xff] %vm502_vm2, %v1179_v53  ;;  %v1129_v53 = vld [vmem:[#allocation4 + $0x78] sm:$0xff] }
 0x300   : > { %v1145_v18 = vmul.f32 %v4582_v2, %v1129_v53  ;;  %v1213_v2 = vld [vmem:[#allocation5 + $0x10] sm:$0xff]  ;;  %v1220_v53 = vld [vmem:[#allocation5 + $0x48] sm:$0xff] }
 0x301   : > { %v1309_v31 = vmul.f32 %v4660_v8, %v1213_v2 }
 0x30a   : > { %v1147_v0 = vpop.xlane.xlu1 %1146 }
 0x30b   : > { %v1178_v1 = vadd.f32 %v1147_v0, %v1130_v48  ;;  %v1144_v48 = vmul.f32 %v4575_v40, %v1128_v51  ;;  %v1126_v0 = vld [vmem:[#allocation4 + $0x60] sm:$0xff] }
 0x30c   : > { %v1142_v50 = vmul.f32 %v4578_v43, %v1126_v0 }
 0x30d   : > { %1195 = vst.msk [vmem:[#allocation4] sm:$0xff] %vm502_vm2, %v1178_v1 }
 0x30e   : > { %v1153_v17 = vpop.xlane.xlu1 %1152 }
 0x30f   : > { %v1181_v30 = vadd.f32 %v1153_v17, %v1133_v3 }
 0x311   : > { %v1159_v6 = vpop.xlane.xlu0 %1158  ;;  %1198 = vst.msk [vmem:[#allocation4 + $0x18] sm:$0xff] %vm502_vm2, %v1181_v30 }
 0x312   : > { %v1184_v20 = vadd.f32 %v1159_v6, %v1136_v41  ;;  %v1161_v27 = vpop.xlane.xlu1 %1160  ;;  %v1211_v6 = vld [vmem:[#allocation5] sm:$0xff] }
 0x313   : > { %v1185_v29 = vadd.f32 %v1161_v27, %v1137_v10  ;;  %v1307_v43 = vmul.f32 %v4651_v60, %v1211_v6  ;;  %v1217_v60 = vld [vmem:[#allocation5 + $0x30] sm:$0xff] }
 0x314   : > { %1201 = vst.msk [vmem:[#allocation4 + $0x30] sm:$0xff] %vm502_vm2, %v1184_v20  ;;  %v1214_v20 = vld [vmem:[#allocation5 + $0x18] sm:$0xff] }
 0x315   : > { %v1155_v35 = vpop.xlane.xlu0 %1154  ;;  %1202 = vst.msk [vmem:[#allocation4 + $0x38] sm:$0xff] %vm502_vm2, %v1185_v29  ;;  %v1212_v29 = vld [vmem:[#allocation5 + $0x8] sm:$0xff]  ;;  %v1310_v44 = vmul.f32 %v4654_v36, %v1214_v20  ;;  %v1218_v36 = vld [vmem:[#allocation5 + $0x38] sm:$0xff] }
 0x316   : > { %v1182_v37 = vadd.f32 %v1155_v35, %v1134_v21  ;;  %v1308_v4 = vmul.f32 %v4656_v38, %v1212_v29  ;;  %v1314_v34 = vmul.f32 %v4658_v57, %v1218_v36  ;;  %v3575_v36 = vld [vmem:[%s4296_s18 + $0x18] sm:$0xff]  }
 0x318   : > { %1199 = vst.msk [vmem:[#allocation4 + $0x20] sm:$0xff] %vm502_vm2, %v1182_v37 }
 0x319   : > { %v1167_v23 = vpop.xlane.xlu0 %1166  ;;  %v1157_v63 = vpop.xlane.xlu1 %1156 }
 0x31a   : > { %v1188_v33 = vadd.f32 %v1167_v23, %v1140_v12  ;;  %v1183_v58 = vadd.f32 %v1157_v63, %v1135_v28  ;;  %v1215_v28 = vld [vmem:[#allocation5 + $0x20] sm:$0xff]  ;;  %v1313_v23 = vmul.f32 %v4668_v26, %v1217_v60  ;;  %v3572_v60 = vld [vmem:[%s4296_s18 + $0x30] sm:$0xff]  }
 0x31b   : > { %v1311_v55 = vmul.f32 %v4664_v54, %v1215_v28  ;;  %v1219_v26 = vld [vmem:[#allocation5 + $0x40] sm:$0xff]  ;;  %v3573_v28 = vld [vmem:[%s4296_s18 + $0x28] sm:$0xff]  }
 0x31c   : > { %1205 = vst.msk [vmem:[#allocation4 + $0x50] sm:$0xff] %vm502_vm2, %v1188_v33  ;;  %1200 = vst.msk [vmem:[#allocation4 + $0x28] sm:$0xff] %vm502_vm2, %v1183_v58  ;;  %v1216_v58 = vld [vmem:[#allocation5 + $0x28] sm:$0xff]  ;;  %v1315_v57 = vmul.f32 %v4676_v14, %v1219_v26 }
 0x31d   : > { %v1163_v56 = vpop.xlane.xlu0 %1162  ;;  %v1169_v32 = vpop.xlane.xlu1 %1168 }
 0x31e   : > { %v1186_v47 = vadd.f32 %v1163_v56, %v1138_v5  ;;  %v1189_v61 = vadd.f32 %v1169_v32, %v1141_v59  ;;  %v1221_v56 = vld [vmem:[#allocation5 + $0x50] sm:$0xff] }
 0x320   : > { %1203 = vst.msk [vmem:[#allocation4 + $0x40] sm:$0xff] %vm502_vm2, %v1186_v47  ;;  %1206 = vst.msk [vmem:[#allocation4 + $0x58] sm:$0xff] %vm502_vm2, %v1189_v61  ;;  %v1312_v47 = vmul.f32 %v4662_v62, %v1216_v58  ;;  %v1317_v61 = vmul.f32 %v4672_v39, %v1221_v56  ;;  %v1316_v39 = vmul.f32 %v4670_v52, %v1220_v53  ;;  %v1744_v56 = vld [vmem:[#allocation3 + $0x88] sm:$0xff]  ;;  %v1747_v53 = vld [vmem:[#allocation3 + $0xa0] sm:$0xff] }
 0x321   : > { %v1165_v25 = vpop.xlane.xlu1 %1164 }
 0x322   : > { %v1187_v46 = vadd.f32 %v1165_v25, %v1139_v13  ;;  %v1222_v13 = vld [vmem:[#allocation5 + $0x58] sm:$0xff] }
 0x323   : > { %v1318_v62 = vmul.f32 %v4666_v11, %v1222_v13 }
 0x324   : > { %1204 = vst.msk [vmem:[#allocation4 + $0x48] sm:$0xff] %vm502_vm2, %v1187_v46 }
 0x325   : > { %v1175_v16 = vpop.xlane.xlu0 %1174 }
 0x326   : > { %v1192_v49 = vadd.f32 %v1175_v16, %v1144_v48  ;;  %v1177_v1 = vpop.xlane.xlu1 %1176  ;;  %v1225_v16 = vld [vmem:[#allocation5 + $0x70] sm:$0xff] }
 0x327   : > { %v1193_v3 = vadd.f32 %v1177_v1, %v1145_v18  ;;  %v1321_v14 = vmul.f32 %v4680_v22, %v1225_v16 }
 0x328   : > { %1209 = vst.msk [vmem:[#allocation4 + $0x70] sm:$0xff] %vm502_vm2, %v1192_v49  ;;  %v1223_v49 = vld [vmem:[#allocation5 + $0x60] sm:$0xff] }
 0x329   : > { %1210 = vst.msk [vmem:[#allocation4 + $0x78] sm:$0xff] %vm502_vm2, %v1193_v3  ;;  %v1171_v17 = vpop.xlane.xlu0 %1170  ;;  %v1226_v3 = vld [vmem:[#allocation5 + $0x78] sm:$0xff]  ;;  %v1319_v11 = vmul.f32 %v4684_v9, %v1223_v49 }
 0x32a   : > { %v1190_v40 = vadd.f32 %v1171_v17, %v1142_v50  ;;  %v1173_v30 = vpop.xlane.xlu1 %1172  ;;  %v1322_v52 = vmul.f32 %v4686_v42, %v1226_v3 }
 0x32b   : > { %v1191_v41 = vadd.f32 %v1173_v30, %v1143_v19  ;;  %v1224_v19 = vld [vmem:[#allocation5 + $0x68] sm:$0xff] }
 0x32c   : > { %1207 = vst.msk [vmem:[#allocation4 + $0x60] sm:$0xff] %vm502_vm2, %v1190_v40  ;;  %v1320_v22 = vmul.f32 %v4674_v24, %v1224_v19 }
 0x32d   : > { %1208 = vst.msk [vmem:[#allocation4 + $0x68] sm:$0xff] %vm502_vm2, %v1191_v41 }
 0x339   : > { %v3172_v10 = vpop.f32.mrf.mxu1 }
 0x33a   : > { %v1478_v27 = vadd.f32 %v3172_v10, %v1309_v31 }
 0x33b   : > { %v1413_v21 = vpop.f32.mrf.mxu1 }
 0x33c   : > { %1494 = vst.msk [vmem:[#allocation5 + $0x10] sm:$0xff] %vm567_vm0, %v1478_v27  ;;  %v1476_v35 = vadd.f32 %v1413_v21, %v1307_v43 }
 0x33d   : > { %v3173_v7 = vpop.f32.mrf.mxu1 }
 0x33e   : > { %1492 = vst.msk [vmem:[#allocation5] sm:$0xff] %vm567_vm0, %v1476_v35  ;;  %v1479_v37 = vadd.f32 %v3173_v7, %v1310_v44 }
 0x33f   : > { %v1416_v12 = vpop.f32.mrf.mxu1 }
 0x340   : > { %1495 = vst.msk [vmem:[#allocation5 + $0x18] sm:$0xff] %vm567_vm0, %v1479_v37  ;;  %v1477_v8 = vadd.f32 %v1416_v12, %v1308_v4 }
 0x342   : > { %1493 = vst.msk [vmem:[#allocation5 + $0x8] sm:$0xff] %vm567_vm0, %v1477_v8 }
 0x353   : > { %v3176_v63 = vpop.f32.mrf.mxu1 }
 0x354   : > { %v1482_v33 = vadd.f32 %v3176_v63, %v1313_v23  ;;  %v3574_v23 = vld [vmem:[%s4296_s18 + $0x38] sm:$0xff]   ;;  %v3576_v63 = vld [vmem:[%s4296_s18 + $0x20] sm:$0xff]  }
 0x355   : > { %v1429_v38 = vpop.f32.mrf.mxu1 }
 0x356   : > { %1498 = vst.msk [vmem:[#allocation5 + $0x30] sm:$0xff] %vm567_vm0, %v1482_v33  ;;  %v1480_v5 = vadd.f32 %v1429_v38, %v1311_v55  ;;  %v3577_v55 = vld [vmem:[%s4296_s18 + $0x10] sm:$0xff]  }
 0x357   : > { %v3177_v59 = vpop.f32.mrf.mxu1  ;;  %v4808_v33 = vld [vmem:[#allocation3 + $0x90] sm:$0xff] }
 0x358   : > { %1496 = vst.msk [vmem:[#allocation5 + $0x20] sm:$0xff] %vm567_vm0, %v1480_v5  ;;  %v1483_v32 = vadd.f32 %v3177_v59, %v1314_v34  ;;  %v4811_v34 = vld [vmem:[#allocation3 + $0x80] sm:$0xff] }
 0x359   : > { %v1432_v45 = vpop.f32.mrf.mxu1 }
 0x35a   : > { %1499 = vst.msk [vmem:[#allocation5 + $0x38] sm:$0xff] %vm567_vm0, %v1483_v32  ;;  %v1481_v54 = vadd.f32 %v1432_v45, %v1312_v47  ;;  %v4817_v32 = vld [vmem:[#allocation3 + $0x98] sm:$0xff] }
 0x35b   : > { %v3180_v51 = vpop.f32.mrf.mxu1 }
 0x35c   : > { %1497 = vst.msk [vmem:[#allocation5 + $0x28] sm:$0xff] %vm567_vm0, %v1481_v54  ;;  %v1486_v25 = vadd.f32 %v3180_v51, %v1317_v61  ;;  %v4822_v61 = vld [vmem:[#allocation3 + $0xb0] sm:$0xff]  ;;  %v4828_v51 = vld [vmem:[#allocation3 + $0xb8] sm:$0xff] }
 0x35d   : > { %v1445_v46 = vpop.f32.mrf.mxu1 }
 0x35e   : > { %1502 = vst.msk [vmem:[#allocation5 + $0x50] sm:$0xff] %vm567_vm0, %v1486_v25  ;;  %v1484_v48 = vadd.f32 %v1445_v46, %v1315_v57 }
 0x35f   : > { %v3181_v18 = vpop.f32.mrf.mxu1 }
 0x360   : > { %1500 = vst.msk [vmem:[#allocation5 + $0x40] sm:$0xff] %vm567_vm0, %v1484_v48  ;;  %v1487_v0 = vadd.f32 %v3181_v18, %v1318_v62  ;;  %v4842_v48 = vld [vmem:[#allocation3 + $0xa8] sm:$0xff] }
 0x361   : > { %v1448_v1 = vpop.f32.mrf.mxu1 }
 0x362   : > { %1503 = vst.msk [vmem:[#allocation5 + $0x58] sm:$0xff] %vm567_vm0, %v1487_v0  ;;  %v1485_v15 = vadd.f32 %v1448_v1, %v1316_v39  ;;  %v4846_v39 = vld [vmem:[#allocation3 + $0xd0] sm:$0xff]  ;;  %v4852_v1 = vld [vmem:[#allocation3 + $0xd8] sm:$0xff] }
 0x363   : > { %v3184_v50 = vpop.f32.mrf.mxu1 }
 0x364   : > { %1501 = vst.msk [vmem:[#allocation5 + $0x48] sm:$0xff] %vm567_vm0, %v1485_v15  ;;  %v1490_v17 = vadd.f32 %v3184_v50, %v1321_v14  ;;  %v4860_v50 = vld [vmem:[#allocation3 + $0xc0] sm:$0xff] }
 0x365   : > { %v1461_v40 = vpop.f32.mrf.mxu1 }
 0x366   : > { %1506 = vst.msk [vmem:[#allocation5 + $0x70] sm:$0xff] %vm567_vm0, %v1490_v17  ;;  %v1488_v30 = vadd.f32 %v1461_v40, %v1319_v11  ;;  %v4869_v40 = vld [vmem:[#allocation3 + $0xc8] sm:$0xff] }
 0x367   : > { %v3185_v41 = vpop.f32.mrf.mxu1 }
 0x368   : > { %1504 = vst.msk [vmem:[#allocation5 + $0x60] sm:$0xff] %vm567_vm0, %v1488_v30  ;;  %v1491_v2 = vadd.f32 %v3185_v41, %v1322_v52 }
 0x369   : > { %v1464_v6 = vpop.f32.mrf.mxu1 }
 0x36a   : > { %1507 = vst.msk [vmem:[#allocation5 + $0x78] sm:$0xff] %vm567_vm0, %v1491_v2  ;;  %v1489_v9 = vadd.f32 %v1464_v6, %v1320_v22  ;;  %v4881_v6 = vld [vmem:[#allocation3 + $0xf0] sm:$0xff] }
 0x36c   : > { %1505 = vst.msk [vmem:[#allocation5 + $0x68] sm:$0xff] %vm567_vm0, %v1489_v9 }
 0x379   : > { %v4748_v31 = vpop.f32.mrf.mxu1 }
 0x37a   : > { %1763 = vmax.xlane.f32.xlu0 %v4748_v31 }
 0x37b   : > { %v4751_v42 = vpop.f32.mrf.mxu1 }
 0x37d   : > { %v4753_v20 = vpop.f32.mrf.mxu1 }
 0x37e   : > { %1759 = vmax.xlane.f32.xlu0 %v4751_v42 }
 0x37f   : > { %v4756_v24 = vpop.f32.mrf.mxu1 }
 0x380   : > { %1761 = vmax.xlane.f32.xlu1 %v4756_v24 }
 0x381   : > { %v4759_v10 = vpop.f32.mrf.mxu1 }
 0x382   : > { %1765 = vmax.xlane.f32.xlu0 %v4753_v20 }
 0x383   : > { %v4762_v43 = vpop.f32.mrf.mxu1 }
 0x384   : > { %1771 = vmax.xlane.f32.xlu1 %v4759_v10 }
 0x385   : > { %v4765_v27 = vpop.f32.mrf.mxu1 }
 0x386   : > { %1773 = vmax.xlane.f32.xlu0 %v4765_v27 }
 0x387   : > { %v4768_v29 = vpop.f32.mrf.mxu1 }
 0x388   : > { %1767 = vmax.xlane.f32.xlu1 %v4762_v43 }
 0x389   : > { %v4771_v21 = vpop.f32.mrf.mxu1 }
 0x38a   : > { %1769 = vmax.xlane.f32.xlu0 %v4768_v29 }
 0x38b   : > { %v4774_v44 = vpop.f32.mrf.mxu1 }
 0x38c   : > { %1779 = vmax.xlane.f32.xlu1 %v4771_v21 }
 0x38d   : > { %v4777_v35 = vpop.f32.mrf.mxu1 }
 0x38e   : > { %1781 = vmax.xlane.f32.xlu0 %v4777_v35 }
 0x38f   : > { %v4780_v7 = vpop.f32.mrf.mxu1 }
 0x390   : > { %1775 = vmax.xlane.f32.xlu1 %v4774_v44 }
 0x391   : > { %v4783_v4 = vpop.f32.mrf.mxu1 }
 0x392   : > { %1777 = vmax.xlane.f32.xlu0 %v4780_v7 }
 0x393   : > { %v4786_v37 = vpop.f32.mrf.mxu1 }
 0x394   : > { %1787 = vmax.xlane.f32.xlu1 %v4783_v4 }
 0x395   : > { %v4789_v12 = vpop.f32.mrf.mxu1 }
 0x396   : > { %1789 = vmax.xlane.f32.xlu0 %v4789_v12 }
 0x397   : > { %v4792_v8 = vpop.f32.mrf.mxu1 }
 0x398   : > { %1783 = vmax.xlane.f32.xlu1 %v4786_v37 }
 0x39a   : > { %1785 = vmax.xlane.f32.xlu0 %v4792_v8 }
 0x3a9   : > { %2213 = vrot.lane.b32.xlu1 %v3572_v60, %s3758_s24 }
 0x3ad   : > { %2211 = vrot.lane.b32.xlu1 %v3573_v28, %s3758_s24 }
 0x3b0   : > { %2215 = vrot.lane.b32.xlu0 %v3574_v23, %s3758_s24  ;;  %v4889_v23 = vld [vmem:[#allocation3 + $0xf8] sm:$0xff] }
 0x3b1   : > { %2207 = vrot.lane.b32.xlu1 %v3575_v36, %s3758_s24 }
 0x3b4   : > { %2209 = vrot.lane.b32.xlu0 %v3576_v63, %s3758_s24 }
 0x3b8   : > { %2205 = vrot.lane.b32.xlu0 %v3577_v55, %s3758_s24 }
 0x403   : > { %v1764_v58 = vpop.xlane.xlu0 %1763 }
 0x404   : > { %v1793_v38 = vmax.f32 %v4808_v33, %v1764_v58 }
 0x406   : > { %2356 = vst.msk [vmem:[#allocation3 + $0x90] sm:$0xff] %vm502_vm2, %v1793_v38  ;;  %1867 = vperm.xlu1 %3347, %v1793_v38   ;;  %v1809_v17 = vsub.f32 %v4808_v33, %v1793_v38  ;;  %v4897_v33 = vld [vmem:[#allocation3 + $0xe0] sm:$0xff] }
 0x407   : > { %v1760_v5 = vpop.xlane.xlu0 %1759 }
 0x408   : > { %v4815_v59 = vmax.f32 %v4811_v34, %v1760_v5  ;;  %v1827_v60 = vmul.f32 1.442695, %v1809_v17  ;;  %v3578_v5 = vld [vmem:[%s4296_s18 + $0x8] sm:$0xff]  }
 0x409   : > { %v1762_v47 = vpop.xlane.xlu1 %1761 }
 0x40a   : > { %2354 = vst.msk [vmem:[#allocation3 + $0x80] sm:$0xff] %vm502_vm2, %v4815_v59  ;;  %v1792_v26 = vmax.f32 %v1744_v56, %v1762_v47  ;;  %1857 = vperm.xlu1 %3347, %v4815_v59   ;;  %v1807_v22 = vsub.f32 %v4811_v34, %v4815_v59  ;;  %v4910_v47 = vld [vmem:[#allocation3 + $0xe8] sm:$0xff] }
 0x40b   : > { %v1766_v45 = vpop.xlane.xlu0 %1765 }
 0x40c   : > { %2355 = vst.msk [vmem:[#allocation3 + $0x88] sm:$0xff] %vm502_vm2, %v1792_v26  ;;  %v4826_v54 = vmax.f32 %v4817_v32, %v1766_v45  ;;  %v1808_v14 = vsub.f32 %v1744_v56, %v1792_v26  ;;  %v1823_v55 = vmul.f32 1.442695, %v1807_v22 }
 0x40d   : > { %v1772_v13 = vpop.xlane.xlu1 %1771 }
 0x40e   : > { %2357 = vst.msk [vmem:[#allocation3 + $0x98] sm:$0xff] %vm502_vm2, %v4826_v54  ;;  %v4833_v57 = vmax.f32 %v4822_v61, %v1772_v13  ;;  %1872 = vperm.xlu0 %3346, %v4826_v54   ;;  %v1825_v52 = vmul.f32 1.442695, %v1808_v14  ;;  %v1810_v38 = vsub.f32 %v4817_v32, %v4826_v54 }
 0x40f   : > { %v1774_v25 = vpop.xlane.xlu0 %1773 }
 0x410   : > { %2360 = vst.msk [vmem:[#allocation3 + $0xb0] sm:$0xff] %vm502_vm2, %v4833_v57  ;;  %v4839_v46 = vmax.f32 %v4828_v51, %v1774_v25  ;;  %1887 = vperm.xlu1 %3347, %v4833_v57   ;;  %3444 = vpow2.f32 %v1825_v52  ;;  %v1829_v25 = vmul.f32 1.442695, %v1810_v38 }
 0x411   : > { %v1768_v62 = vpop.xlane.xlu1 %1767  ;;  %3446 = vpow2.f32 %v1827_v60 }
 0x412   : > { %2361 = vst.msk [vmem:[#allocation3 + $0xb8] sm:$0xff] %vm502_vm2, %v4839_v46  ;;  %v1795_v16 = vmax.f32 %v1747_v53, %v1768_v62  ;;  %1862 = vperm.xlu0 %3346, %v1792_v26   ;;  %v1813_v26 = vsub.f32 %v4822_v61, %v4833_v57  ;;  %3448 = vpow2.f32 %v1823_v55 }
 0x413   : > { %v1770_v18 = vpop.xlane.xlu0 %1769 }
 0x414   : > { %2358 = vst.msk [vmem:[#allocation3 + $0xa0] sm:$0xff] %vm502_vm2, %v1795_v16  ;;  %v4850_v0 = vmax.f32 %v4842_v48, %v1770_v18  ;;  %1877 = vperm.xlu1 %3347, %v1795_v16   ;;  %v1811_v36 = vsub.f32 %v1747_v53, %v1795_v16  ;;  %v1814_v53 = vsub.f32 %v4828_v51, %v4839_v46  ;;  %v1835_v16 = vmul.f32 1.442695, %v1813_v26 }
 0x415   : > { %v1780_v49 = vpop.xlane.xlu1 %1779 }
 0x416   : > { %2359 = vst.msk [vmem:[#allocation3 + $0xa8] sm:$0xff] %vm502_vm2, %v4850_v0  ;;  %v4857_v15 = vmax.f32 %v4846_v39, %v1780_v49  ;;  %1892 = vperm.xlu0 %3346, %v4839_v46   ;;  %v1831_v32 = vmul.f32 1.442695, %v1811_v36  ;;  %v3579_v49 = vld [vmem:[%s4296_s18] sm:$0xff]   ;;  %v1837_v14 = vmul.f32 1.442695, %v1814_v53 }
 0x417   : > { %v1782_v3 = vpop.xlane.xlu0 %1781 }
 0x418   : > { %2364 = vst.msk [vmem:[#allocation3 + $0xd0] sm:$0xff] %vm502_vm2, %v4857_v15  ;;  %v4865_v11 = vmax.f32 %v4852_v1, %v1782_v3  ;;  %1907 = vperm.xlu1 %3347, %v4857_v15   ;;  %3450 = vpow2.f32 %v1831_v32  ;;  %v1817_v18 = vsub.f32 %v4846_v39, %v4857_v15  ;;  %v1812_v3 = vsub.f32 %v4842_v48, %v4850_v0 }
 0x419   : > { %v1776_v19 = vpop.xlane.xlu1 %1775  ;;  %3452 = vpow2.f32 %v1829_v25 }
 0x41a   : > { %v1818_v30 = vsub.f32 %v4852_v1, %v4865_v11  ;;  %2365 = vst.msk [vmem:[#allocation3 + $0xd8] sm:$0xff] %vm502_vm2, %v4865_v11  ;;  %v4876_v41 = vmax.f32 %v4860_v50, %v1776_v19  ;;  %1882 = vperm.xlu0 %3346, %v4850_v0   ;;  %3454 = vpow2.f32 %v1835_v16  ;;  %v1843_v39 = vmul.f32 1.442695, %v1817_v18 }
 0x41b   : > { %v1778_v2 = vpop.xlane.xlu0 %1777  ;;  %3456 = vpow2.f32 %v1837_v14  ;;  %v1833_v52 = vmul.f32 1.442695, %v1812_v3 }
 0x41c   : > { %2362 = vst.msk [vmem:[#allocation3 + $0xc0] sm:$0xff] %vm502_vm2, %v4876_v41  ;;  %v4886_v9 = vmax.f32 %v4869_v40, %v1778_v2  ;;  %1897 = vperm.xlu1 %3347, %v4876_v41   ;;  %v1815_v15 = vsub.f32 %v4860_v50, %v4876_v41  ;;  %3458 = vpow2.f32 %v1843_v39 }
 0x41d   : > { %v1788_v28 = vpop.xlane.xlu1 %1787  ;;  %v4946_v17 = vpop.eup %3444  ;;  %3460 = vpow2.f32 %v1833_v52 }
 0x41e   : > { %2363 = vst.msk [vmem:[#allocation3 + $0xc8] sm:$0xff] %vm502_vm2, %v4886_v9  ;;  %v4894_v63 = vmax.f32 %v4881_v6, %v1788_v28  ;;  %1912 = vperm.xlu0 %3346, %v4865_v11   ;;  %v1816_v48 = vsub.f32 %v4869_v40, %v4886_v9  ;;  %v4951_v0 = vpop.eup %3446  ;;  %v1839_v22 = vmul.f32 1.442695, %v1815_v15  ;;  %v2376_v11 = vld [vmem:[#allocation4 + $0x18] sm:$0xff] }
 0x41f   : > { %v1790_v58 = vpop.xlane.xlu0 %1789  ;;  %v4954_v41 = vpop.eup %3448 }
 0x420   : > { %v1821_v34 = vsub.f32 %v4881_v6, %v4894_v63  ;;  %2368 = vst.msk [vmem:[#allocation3 + $0xf0] sm:$0xff] %vm502_vm2, %v4894_v63  ;;  %2203 = vrot.lane.b32.xlu1 %v3578_v5, %s3758_s24  ;;  %v4908_v56 = vmax.f32 %v4889_v23, %v1790_v58  ;;  %v1841_v2 = vmul.f32 1.442695, %v1816_v48  ;;  %3462 = vpow2.f32 %v1839_v22 }
 0x421   : > { %v1784_v59 = vpop.xlane.xlu1 %1783 }
 0x422   : > { %v4915_v45 = vmax.f32 %v4897_v33, %v1784_v59  ;;  %1902 = vperm.xlu0 %3346, %v4886_v9   ;;  %v1822_v54 = vsub.f32 %v4889_v23, %v4908_v56  ;;  %2369 = vst.msk [vmem:[#allocation3 + $0xf8] sm:$0xff] %vm502_vm2, %v4908_v56  ;;  %3464 = vpow2.f32 %v1841_v2  ;;  %v2380_v23 = vld [vmem:[#allocation4 + $0x38] sm:$0xff] }
 0x423   : > { %v1786_v13 = vpop.xlane.xlu0 %1785 }
 0x424   : > { %v1819_v61 = vsub.f32 %v4897_v33, %v4915_v45  ;;  %2366 = vst.msk [vmem:[#allocation3 + $0xe0] sm:$0xff] %vm502_vm2, %v4915_v45  ;;  %1917 = vperm.xlu1 %3347, %v4915_v45   ;;  %v4930_v57 = vmax.f32 %v4910_v47, %v1786_v13  ;;  %v1845_v33 = vmul.f32 1.442695, %v1818_v30 }
 0x425   : > { %v2214_v62 = vpop.permute.xlu1 %2213  ;;  %v4958_v40 = vpop.eup %3450 }
 0x426   : > { %2201 = vrot.lane.b32.xlu0 %v3579_v49, %s3758_s24  ;;  %v1820_v51 = vsub.f32 %v4910_v47, %v4930_v57  ;;  %2367 = vst.msk [vmem:[#allocation3 + $0xe8] sm:$0xff] %vm502_vm2, %v4930_v57  ;;  %v4961_v60 = vpop.eup %3452 }
 0x427   : > { %v2216_v46 = vpop.permute.xlu0 %2215  ;;  %v4964_v28 = vpop.eup %3454 }
 0x428   : > { %1927 = vperm.xlu1 %3347, %v4894_v63   ;;  %3218 = vmatprep.subr.bf16.mxu0 %v2216_v46  ;;  %v4967_v55 = vpop.eup %3456  ;;  %v2381_v63 = vld [vmem:[#allocation4 + $0x40] sm:$0xff] }
 0x429   : > { %3219 = vmatpush3.bf16.msra.mxu0 %v2216_v46  ;;  %v2212_v19 = vpop.permute.xlu1 %2211  ;;  %v4970_v58 = vpop.eup %3458 }
 0x42a   : > { %1922 = vperm.xlu0 %3346, %v4930_v57   ;;  %3220 = vmatprep.subr.bf16.mxu0 %v2214_v62  ;;  %v4973_v38 = vpop.eup %3460 }
 0x42b   : > { %v2210_v50 = vpop.permute.xlu0 %2209 }
 0x42c   : > { %2104 = vperm.xlu1 %3347, %v4946_v17  }
 0x42d   : > { %3221 = vmatpush3.bf16.msra.mxu0 %v2214_v62  ;;  %v2208_v9 = vpop.permute.xlu1 %2207  ;;  %v4976_v5 = vpop.eup %3462 }
 0x42e   : > { %1932 = vperm.xlu0 %3346, %v4908_v56   ;;  %3222 = vmatprep.subr.bf16.mxu0 %v2212_v19 }
 0x42f   : > { %v2206_v36 = vpop.permute.xlu0 %2205  ;;  %v4979_v59 = vpop.eup %3464 }
 0x430   : > { %2109 = vperm.xlu1 %3347, %v4951_v0  }
 0x431   : > { %3223 = vmatpush3.bf16.msra.mxu0 %v2212_v19 }
 0x432   : > { %2099 = vperm.xlu0 %3346, %v4954_v41   ;;  %3224 = vmatprep.subr.bf16.mxu0 %v2210_v50 }
 0x434   : > { %2119 = vperm.xlu1 %3347, %v4958_v40  }
 0x435   : > { %3225 = vmatpush3.bf16.msra.mxu0 %v2210_v50 }
 0x436   : > { %2114 = vperm.xlu0 %3346, %v4961_v60   ;;  %3226 = vmatprep.subr.bf16.mxu0 %v2208_v9 }
 0x438   : > { %2129 = vperm.xlu1 %3347, %v4964_v28  }
 0x439   : > { %3227 = vmatpush3.bf16.msra.mxu0 %v2208_v9 }
 0x43a   : > { %2134 = vperm.xlu0 %3346, %v4967_v55   ;;  %3228 = vmatprep.subr.bf16.mxu0 %v2206_v36 }
 0x43c   : > { %2149 = vperm.xlu1 %3347, %v4970_v58  }
 0x43d   : > { %3229 = vmatpush3.bf16.msra.mxu0 %v2206_v36 }
 0x43e   : > { %2124 = vperm.xlu0 %3346, %v4973_v38  }
 0x440   : > { %2139 = vperm.xlu1 %3347, %v4976_v5  }
 0x442   : > { %2144 = vperm.xlu0 %3346, %v4979_v59  }
 0x481   : > { %v1868_v26 = vpop.permute.xlu1 %1867 }
 0x482   : > { %v1937_v32 = vsub.f32 %v4748_v31, %v1868_v26 }
 0x484   : > { %v1955_v13 = vmul.f32 1.442695, %v1937_v32 }
 0x485   : > { %v1858_v25 = vpop.permute.xlu1 %1857 }
 0x486   : > { %3466 = vpow2.f32 %v1955_v13  ;;  %v1935_v53 = vsub.f32 %v4751_v42, %v1858_v25 }
 0x488   : > { %v1951_v62 = vmul.f32 1.442695, %v1935_v53 }
 0x489   : > { %v1873_v16 = vpop.permute.xlu0 %1872 }
 0x48a   : > { %3468 = vpow2.f32 %v1951_v62  ;;  %v1938_v18 = vsub.f32 %v4753_v20, %v1873_v16 }
 0x48b   : > { %v1888_v49 = vpop.permute.xlu1 %1887 }
 0x48c   : > { %v1957_v46 = vmul.f32 1.442695, %v1938_v18  ;;  %v1941_v14 = vsub.f32 %v4759_v10, %v1888_v49 }
 0x48d   : > { %v1863_v3 = vpop.permute.xlu0 %1862 }
 0x48e   : > { %3470 = vpow2.f32 %v1957_v46  ;;  %v1936_v39 = vsub.f32 %v4756_v24, %v1863_v3  ;;  %v1963_v19 = vmul.f32 1.442695, %v1941_v14 }
 0x48f   : > { %v1878_v15 = vpop.permute.xlu1 %1877 }
 0x490   : > { %v1953_v31 = vmul.f32 1.442695, %v1936_v39  ;;  %v1939_v52 = vsub.f32 %v4762_v43, %v1878_v15 }
 0x491   : > { %v1893_v48 = vpop.permute.xlu0 %1892 }
 0x492   : > { %3472 = vpow2.f32 %v1953_v31  ;;  %v1942_v42 = vsub.f32 %v4765_v27, %v1893_v48  ;;  %v1959_v2 = vmul.f32 1.442695, %v1939_v52 }
 0x493   : > { %v3467_v22 = vpop.eup %3466  ;;  %v1908_v50 = vpop.permute.xlu1 %1907  ;;  %3474 = vpow2.f32 %v1963_v19 }
 0x494   : > { %v1965_v20 = vmul.f32 1.442695, %v1942_v42  ;;  %2020 = vadd.xlane.f32.xlu0 %v3467_v22  ;;  %v1945_v10 = vsub.f32 %v4771_v21, %v1908_v50 }
 0x495   : > { %v1883_v9 = vpop.permute.xlu0 %1882 }
 0x496   : > { %3476 = vpow2.f32 %v1965_v20  ;;  %v1940_v24 = vsub.f32 %v4768_v29, %v1883_v9  ;;  %v1971_v43 = vmul.f32 1.442695, %v1945_v10 }
 0x497   : > { %v3469_v36 = vpop.eup %3468  ;;  %v1898_v26 = vpop.permute.xlu1 %1897  ;;  %3478 = vpow2.f32 %v1959_v2 }
 0x498   : > { %v1961_v32 = vmul.f32 1.442695, %v1940_v24  ;;  %2016 = vadd.xlane.f32.xlu1 %v3469_v36  ;;  %v1943_v27 = vsub.f32 %v4774_v44, %v1898_v26 }
 0x499   : > { %v1913_v13 = vpop.permute.xlu0 %1912 }
 0x49a   : > { %3480 = vpow2.f32 %v1961_v32  ;;  %v1946_v25 = vsub.f32 %v4777_v35, %v1913_v13  ;;  %v1967_v21 = vmul.f32 1.442695, %v1943_v27 }
 0x49b   : > { %v3471_v53 = vpop.eup %3470  ;;  %v2204_v62 = vpop.permute.xlu1 %2203  ;;  %3482 = vpow2.f32 %v1971_v43  ;;  %v1847_v43 = vmul.f32 1.442695, %v1819_v61  ;;  %v1849_v61 = vmul.f32 1.442695, %v1820_v51  ;;  %v2384_v51 = vld [vmem:[#allocation4 + $0x58] sm:$0xff] }
 0x49c   : > { %v1973_v16 = vmul.f32 1.442695, %v1946_v25  ;;  %2022 = vadd.xlane.f32.xlu1 %v3471_v53  ;;  %3230 = vmatprep.subr.bf16.mxu0 %v2204_v62 }
 0x49d   : > { %v1903_v29 = vpop.permute.xlu0 %1902  ;;  %3231 = vmatpush3.bf16.msra.mxu0 %v2204_v62 }
 0x49e   : > { %3484 = vpow2.f32 %v1973_v16  ;;  %v1944_v18 = vsub.f32 %v4780_v7, %v1903_v29  ;;  %v2194_v7 = vpack.c.bf16 %v3471_v53, %v3467_v22  ;;  %v1853_v29 = vmul.f32 1.442695, %v1822_v54  ;;  %v2382_v54 = vld [vmem:[#allocation4 + $0x48] sm:$0xff] }
 0x49f   : > { %v3473_v49 = vpop.eup %3472  ;;  %v1918_v46 = vpop.permute.xlu1 %1917  ;;  %3486 = vpow2.f32 %v1967_v21 }
 0x4a0   : > { %v1969_v14 = vmul.f32 1.442695, %v1944_v18  ;;  %2018 = vadd.xlane.f32.xlu0 %v3473_v49  ;;  %v2193_v44 = vpack.c.bf16 %v3473_v49, %v3469_v36  ;;  %v1947_v35 = vsub.f32 %v4786_v37, %v1918_v46  ;;  %v3475_v39 = vpop.eup %3474  ;;  %v2374_v18 = vld [vmem:[#allocation4 + $0x8] sm:$0xff] }
 0x4a1   : > { %v2202_v3 = vpop.permute.xlu0 %2201  ;;  %v2378_v49 = vld [vmem:[#allocation4 + $0x28] sm:$0xff] }
 0x4a2   : > { %3488 = vpow2.f32 %v1969_v14  ;;  %3232 = vmatprep.subr.bf16.mxu0 %v2202_v3  ;;  %3234 = vmatprep.mubr.bf16.mxu0 %v2193_v44  ;;  %v1975_v52 = vmul.f32 1.442695, %v1947_v35  ;;  %v1851_v44 = vmul.f32 1.442695, %v1821_v34 }
 0x4a3   : > { %v3477_v15 = vpop.eup %3476  ;;  %3233 = vmatpush3.bf16.msra.mxu0 %v2202_v3  ;;  %v1928_v31 = vpop.permute.xlu1 %1927  ;;  %v2373_v3 = vld [vmem:[#allocation4] sm:$0xff] }
 0x4a4   : > { %v1949_v19 = vsub.f32 %v4783_v4, %v1928_v31  ;;  %2030 = vadd.xlane.f32.xlu1 %v3477_v15  ;;  %2028 = vadd.xlane.f32.xlu0 %v3475_v39  ;;  %v3479_v42 = vpop.eup %3478  ;;  %v2196_v26 = vpack.c.bf16 %v3477_v15, %v3475_v39  ;;  %v2375_v15 = vld [vmem:[#allocation4 + $0x10] sm:$0xff]  ;;  %v2377_v31 = vld [vmem:[#allocation4 + $0x20] sm:$0xff] }
 0x4a5   : > { %v1923_v48 = vpop.permute.xlu0 %1922 }
 0x4a6   : > { %v1979_v50 = vmul.f32 1.442695, %v1949_v19  ;;  %v1948_v20 = vsub.f32 %v4792_v8, %v1923_v48  ;;  %3235 = vmatmul.mubr.bf16.vlgmr.msra.gmra.mxu0 %v2194_v7  ;;  %v2379_v7 = vld [vmem:[#allocation4 + $0x30] sm:$0xff] }
 0x4a7   : > { %v3481_v37 = vpop.eup %3480  ;;  %v5028_v34 = vpop.permute.xlu1 %2104  ;;  %v2383_v48 = vld [vmem:[#allocation4 + $0x50] sm:$0xff] }
 0x4a8   : > { %3490 = vpow2.f32 %v1979_v50  ;;  %v1977_v2 = vmul.f32 1.442695, %v1948_v20  ;;  %2026 = vadd.xlane.f32.xlu1 %v3481_v37  ;;  %2024 = vadd.xlane.f32.xlu0 %v3479_v42  ;;  %v2195_v10 = vpack.c.bf16 %v3481_v37, %v3479_v42  ;;  %v3483_v24 = vpop.eup %3482  ;;  %v2385_v20 = vld [vmem:[#allocation4 + $0x60] sm:$0xff] }
 0x4a9   : > { %3492 = vpow2.f32 %v1975_v52  ;;  %v1933_v9 = vpop.permute.xlu0 %1932 }
 0x4aa   : > { %3494 = vpow2.f32 %v1977_v2  ;;  %v1950_v4 = vsub.f32 %v4789_v12, %v1933_v9  ;;  %3238 = vmatprep.mubr.bf16.mxu0 %v2195_v10 }
 0x4ab   : > { %v3485_v22 = vpop.eup %3484  ;;  %v5032_v37 = vpop.permute.xlu1 %2109 }
 0x4ac   : > { %v1981_v36 = vmul.f32 1.442695, %v1950_v4  ;;  %2038 = vadd.xlane.f32.xlu1 %v3485_v22  ;;  %2036 = vadd.xlane.f32.xlu0 %v3483_v24  ;;  %v3487_v8 = vpop.eup %3486  ;;  %v2198_v12 = vpack.c.bf16 %v3485_v22, %v3483_v24 }
 0x4ad   : > { %v5030_v42 = vpop.permute.xlu0 %2099 }
 0x4ae   : > { %3496 = vpow2.f32 %v1981_v36  ;;  %3239 = vmatmul.mubr.bf16.gmra.mxu0 %v2196_v26 }
 0x4af   : > { %v3489_v32 = vpop.eup %3488  ;;  %3498 = vpow2.f32 %v1847_v43  ;;  %v5036_v9 = vpop.permute.xlu1 %2119 }
 0x4b0   : > { %2034 = vadd.xlane.f32.xlu1 %v3489_v32  ;;  %2032 = vadd.xlane.f32.xlu0 %v3487_v8  ;;  %v2197_v27 = vpack.c.bf16 %v3489_v32, %v3487_v8  ;;  %3500 = vpow2.f32 %v1845_v33  ;;  %v1987_v33 = vld [vmem:[#allocation4 + $0x98] sm:$0xff] }
 0x4b1   : > { %3502 = vpow2.f32 %v1849_v61  ;;  %v5034_v2 = vpop.permute.xlu0 %2114 }
 0x4b2   : > { %3242 = vmatprep.mubr.bf16.mxu0 %v2197_v27  ;;  %3504 = vpow2.f32 %v1853_v29  ;;  %v1986_v27 = vld [vmem:[#allocation4 + $0x90] sm:$0xff]  ;;  %v2003_v29 = vmul.f32 %v4961_v60, %v1987_v33 }
 0x4b3   : > { %3506 = vrcp.f32 %v2374_v18  ;;  %v5040_v36 = vpop.permute.xlu1 %2129 }
 0x4b4   : > { %3508 = vrcp.f32 %v2376_v11  ;;  %v1985_v11 = vld [vmem:[#allocation4 + $0x88] sm:$0xff] }
 0x4b5   : > { %v3491_v13 = vpop.eup %3490  ;;  %3510 = vrcp.f32 %v2378_v49  ;;  %v5038_v4 = vpop.permute.xlu0 %2134 }
 0x4b6   : > { %v3493_v25 = vpop.eup %3492  ;;  %3243 = vmatmul.mubr.bf16.gmra.mxu0 %v2198_v12  ;;  %2044 = vadd.xlane.f32.xlu0 %v3491_v13  ;;  %3512 = vrcp.f32 %v2380_v23  ;;  %v2002_v12 = vmul.f32 %v4951_v0, %v1986_v27  ;;  %v2001_v23 = vmul.f32 %v4946_v17, %v1985_v11  ;;  %v1998_v11 = vld [vmem:[#allocation4 + $0xf0] sm:$0xff] }
 0x4b7   : > { %v3495_v53 = vpop.eup %3494  ;;  %3514 = vrcp.f32 %v2382_v54  ;;  %v5044_v32 = vpop.permute.xlu1 %2149  ;;  %v1990_v54 = vld [vmem:[#allocation4 + $0xb0] sm:$0xff] }
 0x4b8   : > { %v2199_v62 = vpack.c.bf16 %v3495_v53, %v3493_v25  ;;  %3516 = vrcp.f32 %v2384_v51 }
 0x4b9   : > { %3518 = vpow2.f32 %v1851_v44  ;;  %v5042_v26 = vpop.permute.xlu0 %2124 }
 0x4ba   : > { %3246 = vmatprep.mubr.bf16.mxu0 %v2199_v62  ;;  %2040 = vadd.xlane.f32.xlu0 %v3493_v25  ;;  %3520 = vrcp.f32 %v2373_v3  ;;  %v1989_v3 = vld [vmem:[#allocation4 + $0xa8] sm:$0xff] }
 0x4bb   : > { %v3497_v16 = vpop.eup %3496  ;;  %3522 = vrcp.f32 %v2375_v15 }
 0x4bc   : > { %v2200_v21 = vpack.c.bf16 %v3497_v16, %v3491_v13  ;;  %v5004_v45 = vpop.eup %3498  ;;  %3524 = vrcp.f32 %v2377_v31  ;;  %v5049_v13 = vpop.permute.xlu1 %2139 }
 0x4bd   : > { %v5013_v1 = vpop.eup %3500  ;;  %3526 = vrcp.f32 %v2379_v7  ;;  %v5046_v43 = vpop.permute.xlu0 %2144  ;;  %v2005_v7 = vmul.f32 %v4973_v38, %v1989_v3  ;;  %v1992_v38 = vld [vmem:[#allocation4 + $0xc0] sm:$0xff] }
 0x4be   : > { %3247 = vmatmul.mubr.bf16.gmra.mxu0 %v2200_v21  ;;  %v5016_v30 = vpop.eup %3502  ;;  %3528 = vrcp.f32 %v2381_v63  ;;  %v1994_v63 = vld [vmem:[#allocation4 + $0xd0] sm:$0xff] }
 0x4bf   : > { %v5019_v47 = vpop.eup %3504  ;;  %3530 = vrcp.f32 %v2383_v48 }
 0x4c0   : > { %v3507_v56 = vpop.eup %3506  ;;  %3532 = vrcp.f32 %v2385_v20  ;;  %v2010_v20 = vmul.f32 %v4970_v58, %v1994_v63 }
 0x4c1   : > { %2159 = vperm.xlu1 %3347, %v5004_v45   ;;  %v3509_v57 = vpop.eup %3508 }
 0x4c2   : > { %v3511_v46 = vpop.eup %3510 }
 0x4c3   : > { %v3513_v14 = vpop.eup %3512 }
 0x4c4   : > { %v3515_v35 = vpop.eup %3514 }
 0x4c5   : > { %v3517_v39 = vpop.eup %3516 }
 0x4c6   : > { %v5025_v19 = vpop.eup %3518 }
 0x4c7   : > { %v3521_v6 = vpop.eup %3520 }
 0x4c8   : > { %v3523_v52 = vpop.eup %3522 }
 0x4c9   : > { %v3525_v50 = vpop.eup %3524 }
 0x4ca   : > { %v3527_v10 = vpop.eup %3526 }
 0x4cb   : > { %v3529_v24 = vpop.eup %3528 }
 0x4cc   : > { %v3531_v22 = vpop.eup %3530 }
 0x4cd   : > { %v3533_v8 = vpop.eup %3532 }
 0x4d0   : > { %2154 = vperm.xlu0 %3346, %v5013_v1  }
 0x4d4   : > { %2164 = vperm.xlu0 %3346, %v5016_v30  }
 0x4d8   : > { %2174 = vperm.xlu0 %3346, %v5019_v47  }
 0x4dc   : > { %2428 = vperm.xlu0 %3346, %v3507_v56  }
 0x4e0   : > { %2438 = vperm.xlu0 %3346, %v3509_v57   ;;  %v1991_v57 = vld [vmem:[#allocation4 + $0xb8] sm:$0xff] }
 0x4e1   : > { %v2007_v60 = vmul.f32 %v4967_v55, %v1991_v57  ;;  %v1995_v55 = vld [vmem:[#allocation4 + $0xd8] sm:$0xff] }
 0x4e4   : > { %2448 = vperm.xlu0 %3346, %v3511_v46   ;;  %v2006_v46 = vmul.f32 %v4964_v28, %v1990_v54 }
 0x4e5   : > { %2046 = vadd.xlane.f32.xlu1 %v3497_v16 }
 0x4e8   : > { %2458 = vperm.xlu0 %3346, %v3513_v14  }
 0x4e9   : > { %2042 = vadd.xlane.f32.xlu1 %v3495_v53  ;;  %v1984_v53 = vld [vmem:[#allocation4 + $0x80] sm:$0xff] }
 0x4ea   : > { %v2000_v16 = vmul.f32 %v4954_v41, %v1984_v53 }
 0x4ec   : > { %2468 = vperm.xlu0 %3346, %v3515_v35   ;;  %v1988_v35 = vld [vmem:[#allocation4 + $0xa0] sm:$0xff] }
 0x4ed   : > { %v2004_v17 = vmul.f32 %v4958_v40, %v1988_v35 }
 0x4f0   : > { %2478 = vperm.xlu0 %3346, %v3517_v39  }
 0x4fa   : > { %2169 = vperm.xlu1 %3347, %v5025_v19  }
 0x4fe   : > { %2423 = vperm.xlu1 %3347, %v3521_v6  }
 0x502   : > { %2433 = vperm.xlu1 %3347, %v3523_v52  }
 0x506   : > { %2443 = vperm.xlu1 %3347, %v3525_v50  }
 0x50a   : > { %2453 = vperm.xlu1 %3347, %v3527_v10   ;;  %v2011_v10 = vmul.f32 %v5013_v1, %v1995_v55 }
 0x50e   : > { %2463 = vperm.xlu1 %3347, %v3529_v24  }
 0x512   : > { %2473 = vperm.xlu1 %3347, %v3531_v22  }
 0x516   : > { %2483 = vperm.xlu1 %3347, %v3533_v8   ;;  %v1993_v8 = vld [vmem:[#allocation4 + $0xc8] sm:$0xff] }
 0x517   : > { %v2009_v58 = vmul.f32 %v4979_v59, %v1993_v8  ;;  %v2082_v8 = vld [vmem:[#allocation5 + $0x88] sm:$0xff] }
 0x51d   : > { %v2021_v25 = vpop.xlane.xlu0 %2020 }
 0x51e   : > { %v2050_v62 = vadd.f32 %v2021_v25, %v2002_v12 }
 0x520   : > { %2066 = vst.msk [vmem:[#allocation4 + $0x90] sm:$0xff] %vm502_vm2, %v2050_v62  ;;  %v2008_v62 = vmul.f32 %v4976_v5, %v1992_v38  ;;  %v2014_v5 = vmul.f32 %v5025_v19, %v1998_v11 }
 0x521   : > { %v2017_v21 = vpop.xlane.xlu1 %2016 }
 0x522   : > { %v2048_v61 = vadd.f32 %v2017_v21, %v2000_v16 }
 0x524   : > { %2064 = vst.msk [vmem:[#allocation4 + $0x80] sm:$0xff] %vm502_vm2, %v2048_v61 }
 0x525   : > { %v2023_v18 = vpop.xlane.xlu1 %2022 }
 0x526   : > { %v2051_v49 = vadd.f32 %v2023_v18, %v2003_v29 }
 0x527   : > { %v2519_v0 = vld [vmem:[#allocation4 + $0x90] sm:$0xff] }
 0x528   : > { %3534 = vrcp.f32 %v2519_v0  ;;  %2067 = vst.msk [vmem:[#allocation4 + $0x98] sm:$0xff] %vm502_vm2, %v2051_v49 }
 0x529   : > { %v2019_v56 = vpop.xlane.xlu0 %2018 }
 0x52a   : > { %v2049_v41 = vadd.f32 %v2019_v56, %v2001_v23  ;;  %v1996_v56 = vld [vmem:[#allocation4 + $0xe0] sm:$0xff] }
 0x52b   : > { %v2517_v51 = vld [vmem:[#allocation4 + $0x80] sm:$0xff] }
 0x52c   : > { %3536 = vrcp.f32 %v2517_v51  ;;  %2065 = vst.msk [vmem:[#allocation4 + $0x88] sm:$0xff] %vm502_vm2, %v2049_v41  ;;  %v2012_v41 = vmul.f32 %v5004_v45, %v1996_v56 }
 0x52d   : > { %v2029_v14 = vpop.xlane.xlu0 %2028  ;;  %v2031_v44 = vpop.xlane.xlu1 %2030 }
 0x52e   : > { %v2054_v39 = vadd.f32 %v2029_v14, %v2006_v46  ;;  %v2055_v15 = vadd.f32 %v2031_v44, %v2007_v60 }
 0x52f   : > { %v2520_v31 = vld [vmem:[#allocation4 + $0x98] sm:$0xff] }
 0x530   : > { %3538 = vrcp.f32 %v2520_v31  ;;  %2070 = vst.msk [vmem:[#allocation4 + $0xb0] sm:$0xff] %vm502_vm2, %v2054_v39  ;;  %2071 = vst.msk [vmem:[#allocation4 + $0xb8] sm:$0xff] %vm502_vm2, %v2055_v15 }
 0x531   : > { %v2025_v6 = vpop.xlane.xlu0 %2024  ;;  %v2027_v28 = vpop.xlane.xlu1 %2026 }
 0x532   : > { %v2052_v52 = vadd.f32 %v2025_v6, %v2004_v17  ;;  %v2053_v48 = vadd.f32 %v2027_v28, %v2005_v7  ;;  %v2386_v6 = vld [vmem:[#allocation4 + $0x68] sm:$0xff]  ;;  %v2388_v28 = vld [vmem:[#allocation4 + $0x78] sm:$0xff] }
 0x533   : > { %v2518_v50 = vld [vmem:[#allocation4 + $0x88] sm:$0xff] }
 0x534   : > { %3540 = vrcp.f32 %v2518_v50  ;;  %2068 = vst.msk [vmem:[#allocation4 + $0xa0] sm:$0xff] %vm502_vm2, %v2052_v52  ;;  %2069 = vst.msk [vmem:[#allocation4 + $0xa8] sm:$0xff] %vm502_vm2, %v2053_v48  ;;  %v2083_v52 = vld [vmem:[#allocation5 + $0x90] sm:$0xff]  ;;  %v2081_v50 = vld [vmem:[#allocation5 + $0x80] sm:$0xff] }
 0x535   : > { %v3535_v24 = vpop.eup %3534  ;;  %v2037_v40 = vpop.xlane.xlu0 %2036 }
 0x536   : > { %v2039_v22 = vpop.xlane.xlu1 %2038  ;;  %v2058_v27 = vadd.f32 %v2037_v40, %v2010_v20  ;;  %2577 = vperm.xlu0 %3346, %v3535_v24   ;;  %v2179_v20 = vmul.f32 %v5032_v37, %v2083_v52  ;;  %v2178_v37 = vmul.f32 %v5028_v34, %v2082_v8 }
 0x537   : > { %v2059_v12 = vadd.f32 %v2039_v22, %v2011_v10  ;;  %v2523_v25 = vld [vmem:[#allocation4 + $0xb0] sm:$0xff]  ;;  %v2524_v53 = vld [vmem:[#allocation4 + $0xb8] sm:$0xff]  ;;  %v2177_v22 = vmul.f32 %v5030_v42, %v2081_v50  ;;  %v2085_v42 = vld [vmem:[#allocation5 + $0xa0] sm:$0xff] }
 0x538   : > { %3542 = vrcp.f32 %v2523_v25  ;;  %2074 = vst.msk [vmem:[#allocation4 + $0xd0] sm:$0xff] %vm502_vm2, %v2058_v27  ;;  %v2084_v10 = vld [vmem:[#allocation5 + $0x98] sm:$0xff] }
 0x539   : > { %2075 = vst.msk [vmem:[#allocation4 + $0xd8] sm:$0xff] %vm502_vm2, %v2059_v12  ;;  %v3537_v1 = vpop.eup %3536  ;;  %3544 = vrcp.f32 %v2524_v53  ;;  %v2033_v16 = vpop.xlane.xlu0 %2032  ;;  %v2180_v12 = vmul.f32 %v5034_v2, %v2084_v10  ;;  %v2087_v53 = vld [vmem:[#allocation5 + $0xb0] sm:$0xff] }
 0x53a   : > { %v2035_v21 = vpop.xlane.xlu1 %2034  ;;  %v2056_v33 = vadd.f32 %v2033_v16, %v2008_v62  ;;  %2567 = vperm.xlu0 %3346, %v3537_v1   ;;  %v1999_v1 = vld [vmem:[#allocation4 + $0xf8] sm:$0xff] }
 0x53b   : > { %v2057_v61 = vadd.f32 %v2035_v21, %v2009_v58  ;;  %v2521_v29 = vld [vmem:[#allocation4 + $0xa0] sm:$0xff]  ;;  %v2522_v18 = vld [vmem:[#allocation4 + $0xa8] sm:$0xff] }
 0x53c   : > { %3546 = vrcp.f32 %v2521_v29  ;;  %2072 = vst.msk [vmem:[#allocation4 + $0xc0] sm:$0xff] %vm502_vm2, %v2056_v33  ;;  %v2183_v33 = vmul.f32 %v5040_v36, %v2087_v53  ;;  %v2088_v29 = vld [vmem:[#allocation5 + $0xb8] sm:$0xff] }
 0x53d   : > { %2073 = vst.msk [vmem:[#allocation4 + $0xc8] sm:$0xff] %vm502_vm2, %v2057_v61  ;;  %v3539_v49 = vpop.eup %3538  ;;  %3548 = vrcp.f32 %v2522_v18  ;;  %v2015_v61 = vmul.f32 %v5019_v47, %v1999_v1  ;;  %v2184_v56 = vmul.f32 %v5038_v4, %v2088_v29 }
 0x53e   : > { %2582 = vperm.xlu1 %3347, %v3539_v49   ;;  %v5082_v62 = vpop.permute.xlu1 %2159  ;;  %v1997_v49 = vld [vmem:[#allocation4 + $0xe8] sm:$0xff] }
 0x53f   : > { %v2527_v59 = vld [vmem:[#allocation4 + $0xd0] sm:$0xff]  ;;  %v2045_v23 = vpop.xlane.xlu0 %2044 }
 0x540   : > { %v2528_v0 = vld [vmem:[#allocation4 + $0xd8] sm:$0xff]  ;;  %3550 = vrcp.f32 %v2527_v59  ;;  %v2062_v54 = vadd.f32 %v2045_v23, %v2014_v5  ;;  %v2181_v5 = vmul.f32 %v5036_v9, %v2085_v42 }
 0x541   : > { %v3541_v57 = vpop.eup %3540  ;;  %3552 = vrcp.f32 %v2528_v0  ;;  %v2086_v0 = vld [vmem:[#allocation5 + $0xa8] sm:$0xff] }
 0x542   : > { %2078 = vst.msk [vmem:[#allocation4 + $0xf0] sm:$0xff] %vm502_vm2, %v2062_v54  ;;  %2572 = vperm.xlu1 %3347, %v3541_v57   ;;  %v2013_v54 = vmul.f32 %v5016_v30, %v1997_v49  ;;  %v2091_v57 = vld [vmem:[#allocation5 + $0xd0] sm:$0xff]  ;;  %v2182_v9 = vmul.f32 %v5042_v26, %v2086_v0 }
 0x543   : > { %v2525_v51 = vld [vmem:[#allocation4 + $0xc0] sm:$0xff]  ;;  %v2041_v60 = vpop.xlane.xlu0 %2040  ;;  %v2187_v4 = vmul.f32 %v5044_v32, %v2091_v57  ;;  %v2095_v32 = vld [vmem:[#allocation5 + $0xf0] sm:$0xff] }
 0x544   : > { %v2526_v46 = vld [vmem:[#allocation4 + $0xc8] sm:$0xff]  ;;  %3554 = vrcp.f32 %v2525_v51  ;;  %v2060_v14 = vadd.f32 %v2041_v60, %v2012_v41 }
 0x545   : > { %v3543_v44 = vpop.eup %3542  ;;  %3556 = vrcp.f32 %v2526_v46 }
 0x546   : > { %v3545_v19 = vpop.eup %3544  ;;  %2076 = vst.msk [vmem:[#allocation4 + $0xe0] sm:$0xff] %vm502_vm2, %v2060_v14  ;;  %2597 = vperm.xlu0 %3346, %v3543_v44   ;;  %v2089_v14 = vld [vmem:[#allocation5 + $0xc0] sm:$0xff] }
 0x547   : > { %2602 = vperm.xlu1 %3347, %v3545_v19  }
 0x549   : > { %v3547_v35 = vpop.eup %3546  ;;  %v2531_v45 = vld [vmem:[#allocation4 + $0xf0] sm:$0xff] }
 0x54a   : > { %v3549_v3 = vpop.eup %3548  ;;  %2587 = vperm.xlu0 %3346, %v3547_v35   ;;  %v2092_v35 = vld [vmem:[#allocation5 + $0xd8] sm:$0xff] }
 0x54b   : > { %2592 = vperm.xlu1 %3347, %v3549_v3   ;;  %v2155_v36 = vpop.permute.xlu0 %2154  ;;  %v2185_v3 = vmul.f32 %v5049_v13, %v2089_v14 }
 0x54d   : > { %v3551_v39 = vpop.eup %3550  ;;  %v2529_v15 = vld [vmem:[#allocation4 + $0xe0] sm:$0xff] }
 0x54e   : > { %v3553_v31 = vpop.eup %3552  ;;  %3558 = vrcp.f32 %v2529_v15  ;;  %2617 = vperm.xlu0 %3346, %v3551_v39   ;;  %v2090_v39 = vld [vmem:[#allocation5 + $0xc8] sm:$0xff] }
 0x54f   : > { %2622 = vperm.xlu1 %3347, %v3553_v31   ;;  %3560 = vrcp.f32 %v2531_v45  ;;  %v2165_v15 = vpop.permute.xlu0 %2164  ;;  %v2188_v45 = vmul.f32 %v2155_v36, %v2092_v35 }
 0x550   : > { %3562 = vrcp.f32 %v2386_v6 }
 0x551   : > { %v3555_v17 = vpop.eup %3554  ;;  %3564 = vrcp.f32 %v2388_v28  ;;  %v2186_v28 = vmul.f32 %v5046_v43, %v2090_v39 }
 0x552   : > { %v3557_v7 = vpop.eup %3556  ;;  %2607 = vperm.xlu0 %3346, %v3555_v17  }
 0x553   : > { %2612 = vperm.xlu1 %3347, %v3557_v7   ;;  %v2175_v10 = vpop.permute.xlu0 %2174 }
 0x55b   : > { %v3559_v63 = vpop.eup %3558 }
 0x55c   : > { %2627 = vperm.xlu0 %3346, %v3559_v63   ;;  %v3561_v55 = vpop.eup %3560 }
 0x55d   : > { %v3563_v48 = vpop.eup %3562 }
 0x55e   : > { %v3565_v40 = vpop.eup %3564 }
 0x560   : > { %2637 = vperm.xlu0 %3346, %v3561_v55   ;;  %v2093_v55 = vld [vmem:[#allocation5 + $0xe0] sm:$0xff] }
 0x564   : > { %2488 = vperm.xlu0 %3346, %v3563_v48  }
 0x566   : > { %v3236_v24 = vpop.f32.mrf.mxu0 }
 0x567   : > { %v2324_v38 = vadd.f32 %v3236_v24, %v2179_v20  ;;  %v2096_v20 = vld [vmem:[#allocation5 + $0xf8] sm:$0xff] }
 0x568   : > { %v2259_v27 = vpop.f32.mrf.mxu0  ;;  %2498 = vperm.xlu0 %3346, %v3565_v40  }
 0x569   : > { %2340 = vst.msk [vmem:[#allocation5 + $0x90] sm:$0xff] %vm567_vm0, %v2324_v38  ;;  %v2322_v25 = vadd.f32 %v2259_v27, %v2177_v22  ;;  %v2189_v22 = vmul.f32 %v5082_v62, %v2093_v55  ;;  %v2094_v38 = vld [vmem:[#allocation5 + $0xe8] sm:$0xff]  ;;  %v2192_v27 = vmul.f32 %v2175_v10, %v2096_v20 }
 0x56a   : > { %v3237_v58 = vpop.f32.mrf.mxu0 }
 0x56b   : > { %2338 = vst.msk [vmem:[#allocation5 + $0x80] sm:$0xff] %vm567_vm0, %v2322_v25  ;;  %v2325_v16 = vadd.f32 %v3237_v58, %v2180_v12  ;;  %v2387_v25 = vld [vmem:[#allocation4 + $0x70] sm:$0xff]  ;;  %v2190_v58 = vmul.f32 %v2165_v15, %v2094_v38 }
 0x56c   : > { %v2262_v21 = vpop.f32.mrf.mxu0 }
 0x56d   : > { %2341 = vst.msk [vmem:[#allocation5 + $0x98] sm:$0xff] %vm567_vm0, %v2325_v16  ;;  %v2323_v2 = vadd.f32 %v2262_v21, %v2178_v37  ;;  %v5112_v21 = vpop.permute.xlu0 %2428 }
 0x56e   : > { %v3240_v18 = vpop.f32.mrf.mxu0  ;;  %v2047_v11 = vpop.xlane.xlu1 %2046 }
 0x56f   : > { %2339 = vst.msk [vmem:[#allocation5 + $0x88] sm:$0xff] %vm567_vm0, %v2323_v2  ;;  %v2328_v34 = vadd.f32 %v3240_v18, %v2183_v33  ;;  %v2063_v59 = vadd.f32 %v2047_v11, %v2015_v61 }
 0x570   : > { %v2275_v23 = vpop.f32.mrf.mxu0  ;;  %v2551_v36 = vld [vmem:[#allocation5 + $0x90] sm:$0xff] }
 0x571   : > { %2344 = vst.msk [vmem:[#allocation5 + $0xb0] sm:$0xff] %vm567_vm0, %v2328_v34  ;;  %v2326_v47 = vadd.f32 %v2275_v23, %v2181_v5  ;;  %v5116_v61 = vpop.permute.xlu0 %2438 }
 0x572   : > { %2079 = vst.msk [vmem:[#allocation4 + $0xf8] sm:$0xff] %vm502_vm2, %v2063_v59  ;;  %v3241_v41 = vpop.f32.mrf.mxu0  ;;  %v2043_v51 = vpop.xlane.xlu1 %2042  ;;  %v2549_v57 = vld [vmem:[#allocation5 + $0x80] sm:$0xff] }
 0x573   : > { %2342 = vst.msk [vmem:[#allocation5 + $0xa0] sm:$0xff] %vm567_vm0, %v2326_v47  ;;  %v2329_v46 = vadd.f32 %v3241_v41, %v2184_v56  ;;  %v2061_v60 = vadd.f32 %v2043_v51, %v2013_v54 }
 0x574   : > { %v2278_v44 = vpop.f32.mrf.mxu0 }
 0x575   : > { %2345 = vst.msk [vmem:[#allocation5 + $0xb8] sm:$0xff] %vm567_vm0, %v2329_v46  ;;  %v2327_v19 = vadd.f32 %v2278_v44, %v2182_v9  ;;  %v5120_v18 = vpop.permute.xlu0 %2448  ;;  %v2552_v9 = vld [vmem:[#allocation5 + $0x98] sm:$0xff] }
 0x576   : > { %2077 = vst.msk [vmem:[#allocation4 + $0xe8] sm:$0xff] %vm502_vm2, %v2061_v60  ;;  %v3244_v30 = vpop.f32.mrf.mxu0  ;;  %v2170_v7 = vpop.permute.xlu1 %2169  ;;  %v2550_v14 = vld [vmem:[#allocation5 + $0x88] sm:$0xff] }
 0x577   : > { %2343 = vst.msk [vmem:[#allocation5 + $0xa8] sm:$0xff] %vm567_vm0, %v2327_v19  ;;  %v2332_v26 = vadd.f32 %v3244_v30, %v2187_v4  ;;  %v2191_v48 = vmul.f32 %v2170_v7, %v2095_v32 }
 0x578   : > { %v2291_v31 = vpop.f32.mrf.mxu0  ;;  %v2555_v19 = vld [vmem:[#allocation5 + $0xb0] sm:$0xff] }
 0x579   : > { %2348 = vst.msk [vmem:[#allocation5 + $0xd0] sm:$0xff] %vm567_vm0, %v2332_v26  ;;  %v2330_v17 = vadd.f32 %v2291_v31, %v2185_v3  ;;  %v2532_v24 = vld [vmem:[#allocation4 + $0xf8] sm:$0xff]  ;;  %v5124_v49 = vpop.permute.xlu0 %2458 }
 0x57a   : > { %v3245_v6 = vpop.f32.mrf.mxu0  ;;  %v5114_v33 = vpop.permute.xlu1 %2423  ;;  %v2553_v15 = vld [vmem:[#allocation5 + $0xa0] sm:$0xff] }
 0x57b   : > { %2346 = vst.msk [vmem:[#allocation5 + $0xc0] sm:$0xff] %vm567_vm0, %v2330_v17  ;;  %v2333_v63 = vadd.f32 %v3245_v6, %v2188_v45 }
 0x57c   : > { %v2294_v52 = vpop.f32.mrf.mxu0  ;;  %v2556_v3 = vld [vmem:[#allocation5 + $0xb8] sm:$0xff] }
 0x57d   : > { %v2530_v13 = vld [vmem:[#allocation4 + $0xe8] sm:$0xff]  ;;  %2349 = vst.msk [vmem:[#allocation5 + $0xd8] sm:$0xff] %vm567_vm0, %v2333_v63  ;;  %v2331_v50 = vadd.f32 %v2294_v52, %v2186_v28  ;;  %v5128_v34 = vpop.permute.xlu0 %2468 }
 0x57e   : > { %3566 = vrcp.f32 %v2530_v13  ;;  %v3248_v40 = vpop.f32.mrf.mxu0  ;;  %v5118_v29 = vpop.permute.xlu1 %2433  ;;  %v2554_v17 = vld [vmem:[#allocation5 + $0xa8] sm:$0xff] }
 0x57f   : > { %2347 = vst.msk [vmem:[#allocation5 + $0xc8] sm:$0xff] %vm567_vm0, %v2331_v50  ;;  %v2336_v43 = vadd.f32 %v3248_v40, %v2191_v48  ;;  %3568 = vrcp.f32 %v2532_v24 }
 0x580   : > { %v2307_v8 = vpop.f32.mrf.mxu0  ;;  %3570 = vrcp.f32 %v2387_v25  ;;  %v2559_v6 = vld [vmem:[#allocation5 + $0xd0] sm:$0xff] }
 0x581   : > { %2352 = vst.msk [vmem:[#allocation5 + $0xf0] sm:$0xff] %vm567_vm0, %v2336_v43  ;;  %v2334_v12 = vadd.f32 %v2307_v8, %v2189_v22  ;;  %v5132_v0 = vpop.permute.xlu0 %2478 }
 0x582   : > { %v3249_v53 = vpop.f32.mrf.mxu0  ;;  %v5122_v11 = vpop.permute.xlu1 %2443  ;;  %v2557_v48 = vld [vmem:[#allocation5 + $0xc0] sm:$0xff] }
 0x583   : > { %2350 = vst.msk [vmem:[#allocation5 + $0xe0] sm:$0xff] %vm567_vm0, %v2334_v12  ;;  %v2337_v1 = vadd.f32 %v3249_v53, %v2192_v27 }
 0x584   : > { %v2310_v37 = vpop.f32.mrf.mxu0  ;;  %v2560_v55 = vld [vmem:[#allocation5 + $0xd8] sm:$0xff] }
 0x585   : > { %2353 = vst.msk [vmem:[#allocation5 + $0xf8] sm:$0xff] %vm567_vm0, %v2337_v1  ;;  %v2335_v62 = vadd.f32 %v2310_v37, %v2190_v58 }
 0x586   : > { %v5126_v5 = vpop.permute.xlu1 %2453  ;;  %v2558_v10 = vld [vmem:[#allocation5 + $0xc8] sm:$0xff] }
 0x587   : > { %2351 = vst.msk [vmem:[#allocation5 + $0xe8] sm:$0xff] %vm567_vm0, %v2335_v62 }
 0x588   : > { %v2563_v27 = vld [vmem:[#allocation5 + $0xf0] sm:$0xff] }
 0x58a   : > { %v5130_v59 = vpop.permute.xlu1 %2463  ;;  %v2561_v43 = vld [vmem:[#allocation5 + $0xe0] sm:$0xff] }
 0x58b   : > { %v3567_v16 = vpop.eup %3566 }
 0x58c   : > { %2632 = vperm.xlu1 %3347, %v3567_v16   ;;  %v3569_v42 = vpop.eup %3568  ;;  %v2564_v1 = vld [vmem:[#allocation5 + $0xf8] sm:$0xff] }
 0x58d   : > { %v3571_v2 = vpop.eup %3570 }
 0x58e   : > { %v5134_v23 = vpop.permute.xlu1 %2473  ;;  %v2562_v25 = vld [vmem:[#allocation5 + $0xe8] sm:$0xff] }
 0x590   : > { %2642 = vperm.xlu1 %3347, %v3569_v42   ;;  %v2407_v42 = vld [vmem:[#allocation5 + $0x10] sm:$0xff] }
 0x592   : > { %v5137_v54 = vpop.permute.xlu1 %2483 }
 0x594   : > { %2493 = vperm.xlu1 %3347, %v3571_v2  }
 0x5b1   : > { %v2578_v56 = vpop.permute.xlu0 %2577 }
 0x5b2   : > { %v2647_v47 = vmul.f32 %v2578_v56, %v2551_v36  ;;  %v2503_v56 = vmul.f32 %v5118_v29, %v2407_v42 }
 0x5b4   : > { %2681 = vrot.lane.b32.xlu1 %v2647_v47, %s3758_s24 }
 0x5b5   : > { %v2568_v41 = vpop.permute.xlu0 %2567 }
 0x5b6   : > { %v2645_v51 = vmul.f32 %v2568_v41, %v2549_v57  ;;  %v2405_v57 = vld [vmem:[#allocation5] sm:$0xff] }
 0x5b7   : > { %v2501_v41 = vmul.f32 %v5114_v33, %v2405_v57 }
 0x5b8   : > { %2677 = vrot.lane.b32.xlu1 %v2645_v51, %s3758_s24 }
 0x5b9   : > { %v2583_v46 = vpop.permute.xlu1 %2582 }
 0x5ba   : > { %v2648_v60 = vmul.f32 %v2583_v46, %v2552_v9 }
 0x5bc   : > { %2683 = vrot.lane.b32.xlu0 %v2648_v60, %s3758_s24  ;;  %v2408_v60 = vld [vmem:[#allocation5 + $0x18] sm:$0xff] }
 0x5bd   : > { %v2573_v44 = vpop.permute.xlu1 %2572  ;;  %v2504_v29 = vmul.f32 %v5116_v61, %v2408_v60 }
 0x5be   : > { %v2646_v4 = vmul.f32 %v2573_v44, %v2550_v14 }
 0x5c0   : > { %2679 = vrot.lane.b32.xlu0 %v2646_v4, %s3758_s24  ;;  %v2406_v4 = vld [vmem:[#allocation5 + $0x8] sm:$0xff] }
 0x5c1   : > { %v2598_v35 = vpop.permute.xlu0 %2597 }
 0x5c2   : > { %v2651_v30 = vmul.f32 %v2598_v35, %v2555_v19  ;;  %v2603_v26 = vpop.permute.xlu1 %2602  ;;  %v2502_v19 = vmul.f32 %v5112_v21, %v2406_v4 }
 0x5c3   : > { %v2652_v39 = vmul.f32 %v2603_v26, %v2556_v3  ;;  %v2412_v3 = vld [vmem:[#allocation5 + $0x38] sm:$0xff] }
 0x5c4   : > { %2689 = vrot.lane.b32.xlu1 %v2651_v30, %s3758_s24  ;;  %v2411_v30 = vld [vmem:[#allocation5 + $0x30] sm:$0xff] }
 0x5c5   : > { %2691 = vrot.lane.b32.xlu0 %v2652_v39, %s3758_s24  ;;  %v2588_v31 = vpop.permute.xlu0 %2587  ;;  %v2507_v26 = vmul.f32 %v5126_v5, %v2411_v30  ;;  %v2508_v39 = vmul.f32 %v5124_v49, %v2412_v3 }
 0x5c6   : > { %v2649_v45 = vmul.f32 %v2588_v31, %v2553_v15  ;;  %v2593_v32 = vpop.permute.xlu1 %2592 }
 0x5c7   : > { %v2650_v7 = vmul.f32 %v2593_v32, %v2554_v17  ;;  %v2410_v17 = vld [vmem:[#allocation5 + $0x28] sm:$0xff] }
 0x5c8   : > { %2685 = vrot.lane.b32.xlu1 %v2649_v45, %s3758_s24  ;;  %v2409_v45 = vld [vmem:[#allocation5 + $0x20] sm:$0xff] }
 0x5c9   : > { %2687 = vrot.lane.b32.xlu0 %v2650_v7, %s3758_s24  ;;  %v2618_v28 = vpop.permute.xlu0 %2617  ;;  %v2505_v32 = vmul.f32 %v5122_v11, %v2409_v45  ;;  %v2506_v7 = vmul.f32 %v5120_v18, %v2410_v17 }
 0x5ca   : > { %v2655_v63 = vmul.f32 %v2618_v28, %v2559_v6  ;;  %v2623_v13 = vpop.permute.xlu1 %2622  ;;  %v2415_v28 = vld [vmem:[#allocation5 + $0x50] sm:$0xff] }
 0x5cb   : > { %v2656_v52 = vmul.f32 %v2623_v13, %v2560_v55  ;;  %v2416_v55 = vld [vmem:[#allocation5 + $0x58] sm:$0xff]  ;;  %v2511_v13 = vmul.f32 %v5134_v23, %v2415_v28 }
 0x5cc   : > { %2697 = vrot.lane.b32.xlu1 %v2655_v63, %s3758_s24  ;;  %v2512_v11 = vmul.f32 %v5132_v0, %v2416_v55 }
 0x5cd   : > { %2699 = vrot.lane.b32.xlu0 %v2656_v52, %s3758_s24  ;;  %v2608_v50 = vpop.permute.xlu0 %2607 }
 0x5ce   : > { %v2653_v20 = vmul.f32 %v2608_v50, %v2557_v48  ;;  %v2613_v24 = vpop.permute.xlu1 %2612  ;;  %v2413_v50 = vld [vmem:[#allocation5 + $0x40] sm:$0xff] }
 0x5cf   : > { %v2654_v40 = vmul.f32 %v2613_v24, %v2558_v10  ;;  %v2414_v10 = vld [vmem:[#allocation5 + $0x48] sm:$0xff]  ;;  %v2509_v24 = vmul.f32 %v5130_v59, %v2413_v50 }
 0x5d0   : > { %2693 = vrot.lane.b32.xlu1 %v2653_v20, %s3758_s24  ;;  %v2510_v23 = vmul.f32 %v5128_v34, %v2414_v10 }
 0x5d1   : > { %2695 = vrot.lane.b32.xlu0 %v2654_v40, %s3758_s24 }
 0x5d7   : > { %v2628_v22 = vpop.permute.xlu0 %2627 }
 0x5d8   : > { %v2657_v38 = vmul.f32 %v2628_v22, %v2561_v43 }
 0x5da   : > { %2701 = vrot.lane.b32.xlu1 %v2657_v38, %s3758_s24  ;;  %v2417_v38 = vld [vmem:[#allocation5 + $0x60] sm:$0xff] }
 0x5db   : > { %v2638_v8 = vpop.permute.xlu0 %2637 }
 0x5dc   : > { %v2659_v12 = vmul.f32 %v2638_v8, %v2563_v27  ;;  %v2513_v8 = vmul.f32 %v5137_v54, %v2417_v38 }
 0x5de   : > { %2705 = vrot.lane.b32.xlu1 %v2659_v12, %s3758_s24  ;;  %v2419_v12 = vld [vmem:[#allocation5 + $0x70] sm:$0xff] }
 0x5df   : > { %v5157_v2 = vpop.permute.xlu0 %2488 }
 0x5e3   : > { %v5165_v51 = vpop.permute.xlu0 %2498 }
 0x607   : > { %v2633_v53 = vpop.permute.xlu1 %2632 }
 0x608   : > { %v2658_v58 = vmul.f32 %v2633_v53, %v2562_v25 }
 0x60a   : > { %2703 = vrot.lane.b32.xlu0 %v2658_v58, %s3758_s24  ;;  %v2418_v58 = vld [vmem:[#allocation5 + $0x68] sm:$0xff] }
 0x60b   : > { %v2643_v37 = vpop.permute.xlu1 %2642 }
 0x60c   : > { %v2660_v62 = vmul.f32 %v2643_v37, %v2564_v1  ;;  %v2514_v1 = vmul.f32 %v5157_v2, %v2418_v58 }
 0x60e   : > { %2707 = vrot.lane.b32.xlu0 %v2660_v62, %s3758_s24  ;;  %v2420_v62 = vld [vmem:[#allocation5 + $0x78] sm:$0xff] }
 0x60f   : > { %v5154_v16 = vpop.permute.xlu1 %2493  ;;  %v2516_v42 = vmul.f32 %v5165_v51, %v2420_v62 }
 0x610   : > { %v2515_v34 = vmul.f32 %v5154_v16, %v2419_v12 }
 0x626   : > { %v2682_v36 = vpop.permute.xlu1 %2681 }
 0x627   : > { %v2727_v47 = vsel %vm567_vm0, %v2503_v56, %v2682_v36 }
 0x628   : > { %2743 = vst [vmem:[%s5161_s7 + $0x10] sm:$0xff] %v2727_v47 }
 0x62a   : > { %v2678_v9 = vpop.permute.xlu1 %2677 }
 0x62b   : > { %v2725_v46 = vsel %vm567_vm0, %v2501_v41, %v2678_v9 }
 0x62c   : > { %2741 = vst [vmem:[%s5161_s7] sm:$0xff] %v2725_v46 }
 0x62e   : > { %v2684_v14 = vpop.permute.xlu0 %2683 }
 0x62f   : > { %v2728_v44 = vsel %vm567_vm0, %v2504_v29, %v2684_v14 }
 0x630   : > { %2744 = vst [vmem:[%s5161_s7 + $0x18] sm:$0xff] %v2728_v44 }
 0x632   : > { %v2680_v35 = vpop.permute.xlu0 %2679 }
 0x633   : > { %v2726_v33 = vsel %vm567_vm0, %v2502_v19, %v2680_v35 }
 0x634   : > { %2742 = vst [vmem:[%s5161_s7 + $0x8] sm:$0xff] %v2726_v33 }
 0x636   : > { %v2690_v61 = vpop.permute.xlu1 %2689 }
 0x637   : > { %v2692_v15 = vpop.permute.xlu0 %2691  ;;  %v2731_v31 = vsel %vm567_vm0, %v2507_v26, %v2690_v61 }
 0x638   : > { %v2732_v21 = vsel %vm567_vm0, %v2508_v39, %v2692_v15  ;;  %2747 = vst [vmem:[%s5161_s7 + $0x30] sm:$0xff] %v2731_v31 }
 0x639   : > { %2748 = vst [vmem:[%s5161_s7 + $0x38] sm:$0xff] %v2732_v21 }
 0x63a   : > { %v2686_v5 = vpop.permute.xlu1 %2685 }
 0x63b   : > { %v2688_v6 = vpop.permute.xlu0 %2687  ;;  %v2729_v49 = vsel %vm567_vm0, %v2505_v32, %v2686_v5 }
 0x63c   : > { %v2730_v63 = vsel %vm567_vm0, %v2506_v7, %v2688_v6  ;;  %2745 = vst [vmem:[%s5161_s7 + $0x20] sm:$0xff] %v2729_v49 }
 0x63d   : > { %2746 = vst [vmem:[%s5161_s7 + $0x28] sm:$0xff] %v2730_v63 }
 0x63e   : > { %v2698_v52 = vpop.permute.xlu1 %2697 }
 0x63f   : > { %v2700_v18 = vpop.permute.xlu0 %2699  ;;  %v2735_v48 = vsel %vm567_vm0, %v2511_v13, %v2698_v52 }
 0x640   : > { %v2736_v20 = vsel %vm567_vm0, %v2512_v11, %v2700_v18  ;;  %2751 = vst [vmem:[%s5161_s7 + $0x50] sm:$0xff] %v2735_v48 }
 0x641   : > { %2752 = vst [vmem:[%s5161_s7 + $0x58] sm:$0xff] %v2736_v20 }
 0x642   : > { %v2694_v40 = vpop.permute.xlu1 %2693 }
 0x643   : > { %v2696_v22 = vpop.permute.xlu0 %2695  ;;  %v2733_v0 = vsel %vm567_vm0, %v2509_v24, %v2694_v40 }
 0x644   : > { %v2734_v43 = vsel %vm567_vm0, %v2510_v23, %v2696_v22  ;;  %2749 = vst [vmem:[%s5161_s7 + $0x40] sm:$0xff] %v2733_v0 }
 0x645   : > { %2750 = vst [vmem:[%s5161_s7 + $0x48] sm:$0xff] %v2734_v43 }
 0x64c   : > { %v2702_v27 = vpop.permute.xlu1 %2701 }
 0x64d   : > { %v2737_v59 = vsel %vm567_vm0, %v2513_v8, %v2702_v27 }
 0x64e   : > { %2753 = vst [vmem:[%s5161_s7 + $0x60] sm:$0xff] %v2737_v59 }
 0x650   : > { %v2706_v25 = vpop.permute.xlu1 %2705 }
 0x651   : > { %v2739_v53 = vsel %vm567_vm0, %v2515_v34, %v2706_v25 }
 0x652   : > { %2755 = vst [vmem:[%s5161_s7 + $0x70] sm:$0xff] %v2739_v53 }
 0x67c   : > { %v2704_v37 = vpop.permute.xlu0 %2703 }
 0x67d   : > { %v2738_v54 = vsel %vm567_vm0, %v2514_v1, %v2704_v37 }
 0x67e   : > { %2754 = vst [vmem:[%s5161_s7 + $0x68] sm:$0xff] %v2738_v54 }
 0x680   : > { %v2708_v16 = vpop.permute.xlu0 %2707 }
 0x681   : > { %v2740_v2 = vsel %vm567_vm0, %v2516_v42, %v2708_v16 }
 0x682   : > { %2756 = vst [vmem:[%s5161_s7 + $0x78] sm:$0xff] %v2740_v2 }
 0x683   : > { %3677 = shalt.err (!%p3674_p12)
}
 0x684   : > { %s3678_s29 = scalar_lea.hbm %s5214_s19, 2048  ;;  %s3682_s10 = scalar_lea.hbm %s5269_s3, 4096 }
 0x685   : > { %p3679_p1 = scmp.ne.s32.totalorder %s5214_s19, %s3678_s29  ;;  %p3683_p6 = scmp.lt.s32.totalorder %s5214_s19, %s5269_s3 }
 0x686   : > { %p3684_p7 = scmp.lt.s32.totalorder %s3682_s10, %s3678_s29 }
 0x687   : > { %p3680_p2 = pnand %p3679_p1, %p3837_p9 }
 0x688   : > { %p3685_p8 = por %p3684_p7, %p3683_p6 }
 0x689   : > { %p3681_p5 = pneg %p3680_p2 }
 0x68b   : > { %p3686_p0 = pnand %p3685_p8, %p3681_p5 }
 0x68d   : > { %3689 = shalt.err (!%p3686_p0)
}
 0x68e   : > { %s3760_s11 = smov 128   ;;  %s3761_s18 = smov 8  }
 0x68f   : > { %3272 = dma.vmem_to_hbm [thread:$0]  (%p3837_p9), %s5216_s1, 2048, %s5214_s19, %s2758_s15, %s3760_s11, %s3760_s11, %s3761_s18  }
 0x690 PF: > { %s2788_s24 = sand.u32 1, %s3728_s12   ;;  %p5319_p3 = scmp.ge.s32.totalorder %s3748_s17, 2 }
 0x691   : > { %s2789_s5 = scalar_lea.sflag [#allocation8], %s2788_s24 }
 0x692   : > { %p3285_p4 = pnand %p5319_p3, %p3844_p11 }
 0x694   : > { %p3286_p10 = pneg %p3285_p4 }
 0x696   : > { %3723 = dma.done.wait (%p3286_p10), %s2789_s5, 2048  }
 0x697   : > { %3725 = vsyncadd (%p3286_p10), %s2789_s5, 4294965248  ;;  %s22_s17 = sadd.s32 1, %s3748_s17   ;;  %s5320_s25 = sld [smem:[#allocation18_spill]] }
 0x698   : > { %p19_p13 = scmp.ge.s32.totalorder %s22_s17, 4   ;;  %s5321_s15 = sld [smem:[#allocation16_spill]] }
 0x699   : > { %s5322_s16 = sld [smem:[#allocation17_spill]]  ;;  %s5323_s12 = smov %s3732_s13 }
 0x69a   : > { %s5324_s13 = smov %s3736_s14  ;;  %21 = sbr.rel (!%p19_p13) target bundleno = 10 (0xa), region = 114 }
 0x69d   : > { %s5325_s14 = smov %s5320_s25 }
 0x69f   :  { %2794 = vsyncpa [#allocation7], 1 }
 0x6a0   :  { %2796 = vsyncpa [#allocation7 + $0x1], 1 }
 0x6a1   :  { %2797 = vsyncpa [#allocation10], 1 }
 0x6a2   :  { %2799 = vsyncpa [#allocation10 + $0x1], 1 }
 0x6a3   :  { %2800 = vsyncpa [#allocation8], 1 }
 0x6a4   :  { %2802 = vsyncpa [#allocation8 + $0x1], 1 }

</bundles_post_ra>
